<compile_context>
chip_gen: v7x
topology: tpu7x:2x2x1
jax: 0.10.0
libtpu: 0.0.40
codegen_flags: <defaults>
</compile_context>

<pallas_src>
import functools
import math

import jax
import jax.numpy as jnp
from jax.experimental import pallas as pl
from jax.experimental.pallas import tpu as pltpu

_LANE = 128


def _round_up(x, m):
    return (x + m - 1) // m * m


def _pick_tile(dim, cap, align, min_blocks=1):
    """Largest multiple of `align` that divides `dim` (dim % align == 0),
    is <= cap, and (when possible) leaves >= min_blocks grid blocks."""
    limit = min(cap, dim)
    if min_blocks > 1 and dim >= min_blocks * align:
        limit = min(limit, dim // min_blocks)
    best = align
    t = align
    while t <= limit:
        if dim % t == 0:
            best = t
        t += align
    return best


@functools.lru_cache(maxsize=1)
def _vmem_limit_bytes():
    # ~3/4 of physical VMEM: ~96 MiB on v5e/v6e (128 MiB), ~48 MiB on v7x (64 MiB).
    try:
        cap = pltpu.get_tpu_info().vmem_capacity_bytes
        return int(min(96 * 1024 * 1024, max(32 * 1024 * 1024, (cap * 3) // 4)))
    except Exception:
        return 48 * 1024 * 1024


# --------------------------------------------------------------------------
# Tiled matmul with fused bias epilogue (BN scale/shift pre-folded at init)
# --------------------------------------------------------------------------
def _mm_bias_kernel(a_ref, b_ref, bias_ref, o_ref, acc_ref):
    @pl.when(pl.program_id(1) == 0)
    def _():
        acc_ref[...] = jnp.zeros_like(acc_ref)

    acc_ref[...] += jnp.dot(a_ref[...], b_ref[...],
                            preferred_element_type=jnp.float32)

    @pl.when(pl.program_id(1) == pl.num_programs(1) - 1)
    def _():
        o_ref[...] = (acc_ref[...] + bias_ref[...]).astype(o_ref.dtype)


def matmul_bias(a, w, bias, *, out_dtype=jnp.bfloat16):
    """a: (M, K) bf16, w: (K, N) bf16 with K a multiple of 128, bias: (1, N) f32."""
    m, k = a.shape
    k2, n = w.shape
    assert k == k2 and k % _LANE == 0
    mp = _round_up(m, 16)                       # bf16 sublane pack alignment
    if mp != m:
        a = jnp.pad(a, ((0, mp - m), (0, 0)))

    tm = _pick_tile(mp, 512, 16, min_blocks=2 if mp >= 256 else 1)
    tk = k if k <= 2048 else _pick_tile(k, 2048, _LANE)   # full-K reduction tile

    out = pl.pallas_call(
        _mm_bias_kernel,
        out_shape=jax.ShapeDtypeStruct((mp, n), out_dtype),
        grid=(mp // tm, k // tk),
        in_specs=[pl.BlockSpec((tm, tk), lambda i, kk: (i, kk)),
                  pl.BlockSpec((tk, n), lambda i, kk: (kk, 0)),
                  pl.BlockSpec((1, n), lambda i, kk: (0, 0))],
        out_specs=pl.BlockSpec((tm, n), lambda i, kk: (i, 0)),
        scratch_shapes=[pltpu.VMEM((tm, n), jnp.float32)],
        compiler_params=pltpu.CompilerParams(
            dimension_semantics=("parallel", "arbitrary"),
            vmem_limit_bytes=_vmem_limit_bytes()),
    )(a, w, bias)
    return out[:m] if mp != m else out


# --------------------------------------------------------------------------
# Conv2d (bias=False) + BatchNorm (eval) via NHWC im2col + tiled Pallas matmul
# --------------------------------------------------------------------------
def conv2d_bn(x, w_mat, bias, *, kh, kw, stride, padding,
              out_dtype=jnp.bfloat16):
    """x: (N, H, W, Cin) ; w_mat: (Kpad, cout) bf16 with BN scale folded in and
    K zero-padded to a lane multiple at init ; bias: (1, cout) f32 BN shift.
    The im2col matrix is built in one fused bf16 producer and read once."""
    # TODO(synk): a fully implicit GEMM (in-kernel shifted-window DMA from the
    # padded NHWC input) would remove the remaining kh*kw/stride^2 im2col
    # expansion entirely; the expansion here is written once and read once.
    n, h, wd, cin = x.shape
    cout = w_mat.shape[1]
    kpad = w_mat.shape[0]
    ho = (h + 2 * padding - kh) // stride + 1
    wo = (wd + 2 * padding - kw) // stride + 1

    xp = jnp.pad(x.astype(jnp.bfloat16),
                 ((0, 0), (padding, padding), (padding, padding), (0, 0)))
    taps = [xp[:, ki:ki + stride * ho:stride, kj:kj + stride * wo:stride, :]
            for ki in range(kh) for kj in range(kw)]
    a = jnp.concatenate(taps, axis=-1).reshape(n * ho * wo, kh * kw * cin)
    if kpad != kh * kw * cin:
        a = jnp.pad(a, ((0, 0), (0, kpad - kh * kw * cin)))

    out = matmul_bias(a, w_mat, bias, out_dtype=out_dtype)
    return out.reshape(n, ho, wo, cout)


# --------------------------------------------------------------------------
# Multi-step LIF neuron: membrane carried over T only (batch independent)
# --------------------------------------------------------------------------
def _lif_kernel(x_ref, o_ref, v_ref, *, tau, v_th):
    # spikingjelly MultiStepLIFNode: decay_input=True, v_reset=0 (hard reset).
    @pl.when(pl.program_id(1) == 0)
    def _():
        v_ref[...] = jnp.zeros_like(v_ref)

    x = x_ref[0].astype(jnp.float32)
    v = v_ref[...] + (x - v_ref[...]) * (1.0 / tau)
    spike = (v >= v_th).astype(jnp.float32)
    v_ref[...] = v * (1.0 - spike)          # hard reset to 0
    o_ref[0] = spike.astype(o_ref.dtype)


def multistep_lif(x_seq, T, *, tau=2.0, v_threshold=1.0,
                  out_dtype=jnp.bfloat16):
    """x_seq: (T_in, B, ...) with T_in in {1, T}; leading axis is time.
    T_in == 1 means the per-step input is identical across time (stem)."""
    t_in = x_seq.shape[0]
    assert t_in in (1, T)
    feat_shape = x_seq.shape[1:]
    feat = math.prod(feat_shape)
    feat_pad = _round_up(feat, 8 * _LANE)
    rows = feat_pad // _LANE

    xr = x_seq.reshape(t_in, feat)
    if feat_pad != feat:
        xr = jnp.pad(xr, ((0, 0), (0, feat_pad - feat)))
    xr = xr.reshape(t_in, rows, _LANE)

    # Large row tiles (HBM-bound), but keep >= 2 blocks for megacore when possible.
    tile_rows = _pick_tile(rows, 2048, 8, min_blocks=2)
    in_map = (lambda r, t: (t, r, 0)) if t_in == T else (lambda r, t: (0, r, 0))

    out = pl.pallas_call(
        functools.partial(_lif_kernel, tau=tau, v_th=v_threshold),
        out_shape=jax.ShapeDtypeStruct((T, rows, _LANE), out_dtype),
        grid=(rows // tile_rows, T),
        in_specs=[pl.BlockSpec((1, tile_rows, _LANE), in_map)],
        out_specs=pl.BlockSpec((1, tile_rows, _LANE), lambda r, t: (t, r, 0)),
        scratch_shapes=[pltpu.VMEM((tile_rows, _LANE), jnp.float32)],
        compiler_params=pltpu.CompilerParams(
            dimension_semantics=("parallel", "arbitrary")),
    )(xr)
    return out.reshape(T, feat_pad)[:, :feat].reshape((T,) + feat_shape)


# --------------------------------------------------------------------------
# MaxPool 3x3 / stride 2 / padding 1 (NHWC): one read per sample, all 9 taps
# taken in-kernel with static slices (no materialized shifted views).
# --------------------------------------------------------------------------
def _maxpool_kernel(x_ref, o_ref, *, ho, wo, c):
    x = x_ref[0]                                  # (2*ho + 2, wo + 1, 2*c)
    # 3-tap max along W (stride 2): padded cols 2ow / 2ow+1 / 2ow+2.
    y = jnp.maximum(jnp.maximum(x[:, :wo, :c], x[:, :wo, c:]),
                    x[:, 1:wo + 1, :c])           # (2*ho + 2, wo, c)
    # 3-tap max along H (stride 2): rows 2oh / 2oh+1 / 2oh+2 via leading splits.
    ev = y[:2 * ho].reshape(ho, 2, wo, c)
    sh = y[2:2 * ho + 2].reshape(ho, 2, wo, c)
    o_ref[0] = jnp.maximum(jnp.maximum(ev[:, 0], ev[:, 1]), sh[:, 0])


def maxpool2d_3x3_s2_p1(x):
    n, h, w, c = x.shape
    assert h % 2 == 0 and w % 2 == 0
    ho, wo = h // 2, w // 2
    neg = jnp.finfo(x.dtype).min
    xp = jnp.pad(x, ((0, 0), (1, 1), (1, 1), (0, 0)), constant_values=neg)
    # Free NHWC reshape: (W+2, C) -> ((W+2)/2, 2C) puts both W-phases on lanes.
    x2 = xp.reshape(n, h + 2, (w + 2) // 2, 2 * c)

    return pl.pallas_call(
        functools.partial(_maxpool_kernel, ho=ho, wo=wo, c=c),
        out_shape=jax.ShapeDtypeStruct((n, ho, wo, c), x.dtype),
        grid=(n,),
        in_specs=[pl.BlockSpec((1, h + 2, (w + 2) // 2, 2 * c),
                               lambda i: (i, 0, 0, 0))],
        out_specs=pl.BlockSpec((1, ho, wo, c), lambda i: (i, 0, 0, 0)),
        compiler_params=pltpu.CompilerParams(
            dimension_semantics=("parallel",)),
    )(x2)


# --------------------------------------------------------------------------
# Fused tail, gridded over T: spatial mean + mean over T (TET=False) + Linear
# head with a lane-padded (128-wide) output.  f32 (B, C) accumulator scratch.
# --------------------------------------------------------------------------
def _head_kernel(x_ref, w_ref, b_ref, o_ref, acc_ref, *, inv_thw):
    @pl.when(pl.program_id(0) == 0)
    def _():
        acc_ref[...] = jnp.zeros_like(acc_ref)

    acc_ref[...] += jnp.sum(x_ref[0].astype(jnp.float32), axis=1)   # (B, C)

    @pl.when(pl.program_id(0) == pl.num_programs(0) - 1)
    def _():
        feat = acc_ref[...] * inv_thw
        o_ref[...] = (jnp.dot(feat, w_ref[...],
                              preferred_element_type=jnp.float32) + b_ref[...])


def head_pool(x, w, b):
    """x: (T, B, HW, C) spikes; returns head(mean_T(mean_HW(x)))  == reference
    (the Linear head commutes with the means)."""
    T, B, HW, C = x.shape
    nc = w.shape[1]
    ncp = _round_up(nc, _LANE)
    w_p = jnp.pad(w.astype(jnp.float32), ((0, 0), (0, ncp - nc)))
    b_p = jnp.pad(b.astype(jnp.float32), (0, ncp - nc)).reshape(1, ncp)

    out = pl.pallas_call(
        functools.partial(_head_kernel, inv_thw=1.0 / (T * HW)),
        out_shape=jax.ShapeDtypeStruct((B, ncp), jnp.float32),
        grid=(T,),
        in_specs=[pl.BlockSpec((1, B, HW, C), lambda t: (t, 0, 0, 0)),
                  pl.BlockSpec((C, ncp), lambda t: (0, 0)),
                  pl.BlockSpec((1, ncp), lambda t: (0, 0))],
        out_specs=pl.BlockSpec((B, ncp), lambda t: (0, 0)),
        scratch_shapes=[pltpu.VMEM((B, C), jnp.float32)],
        compiler_params=pltpu.CompilerParams(
            dimension_semantics=("arbitrary",)),
    )(x, w_p, b_p)
    return out[:, :nc]


# --------------------------------------------------------------------------
# Parameter init (deterministic; BN eval-mode scale folded into conv weights,
# K zero-padded to a lane multiple and cast to bf16 once at init)
# --------------------------------------------------------------------------
def _trunc_normal(key, shape, std=0.02):
    return std * jax.random.truncated_normal(key, -2.0, 2.0, shape, jnp.float32)


def init_params(key, in_channels, embed_dims, num_classes):
    ks = jax.random.split(key, 6)
    eps = 1e-5

    def conv_bn(k, cin, cout, ksz):
        w = _trunc_normal(k, (cout, cin, ksz, ksz))           # torch OIHW init
        gamma = jnp.ones((cout,), jnp.float32)
        beta = jnp.zeros((cout,), jnp.float32)
        mean = jnp.zeros((cout,), jnp.float32)
        var = jnp.ones((cout,), jnp.float32)
        scale = gamma / jnp.sqrt(var + eps)
        shift = beta - mean * scale
        # (kh, kw, cin, cout) ordering matches the NHWC im2col tap layout.
        kk = ksz * ksz * cin
        kpad = _round_up(kk, _LANE)
        w_mat = w.transpose(2, 3, 1, 0).reshape(kk, cout) * scale[None, :]
        w_mat = jnp.pad(w_mat, ((0, kpad - kk), (0, 0))).astype(jnp.bfloat16)
        return w_mat, shift.reshape(1, cout)

    p = {}
    p["stem_w"], p["stem_b"] = conv_bn(ks[0], in_channels, 64, 7)
    p["ds1_w"], p["ds1_b"] = conv_bn(ks[1], 64, 192, 3)
    p["ds2_w"], p["ds2_b"] = conv_bn(ks[2], 192, embed_dims, 3)
    bound = 1.0 / math.sqrt(embed_dims)
    p["head_w"] = jax.random.uniform(ks[3], (embed_dims, num_classes),
                                     jnp.float32, -bound, bound)
    p["head_b"] = jax.random.uniform(ks[4], (num_classes,),
                                     jnp.float32, -bound, bound)
    return p


# --------------------------------------------------------------------------
# Forward (mirrors SpikeDrivenTransformer.forward with defaults: depths=2,
# TET=False -> stage1/stage2 contain zero MS_Block_Conv blocks)
# --------------------------------------------------------------------------
def spikeformer_forward(x, p, *, T):
    B = x.shape[0]
    x = jnp.transpose(x, (0, 2, 3, 1))          # one-time NCHW -> NHWC

    # stem: Conv7x7/s2 + BN (folded) -> LIF over T -> MaxPool3x3/s2.
    # The stem conv is identical for every time step -> compute once on B and
    # broadcast over T via the LIF input index_map.
    y = conv2d_bn(x, p["stem_w"], p["stem_b"], kh=7, kw=7, stride=2, padding=3)
    spikes = multistep_lif(y[None], T)          # (T, B, H1, W1, 64) bf16 spikes
    s = maxpool2d_3x3_s2_p1(spikes.reshape((T * B,) + spikes.shape[2:]))

    # stage 1: depths // 3 == 0 blocks; downsample1
    y = conv2d_bn(s, p["ds1_w"], p["ds1_b"], kh=3, kw=3, stride=2, padding=1)
    spikes = multistep_lif(y.reshape((T, B) + y.shape[1:]), T)

    # stage 2: 0 blocks; downsample2
    y = conv2d_bn(spikes.reshape((T * B,) + spikes.shape[2:]),
                  p["ds2_w"], p["ds2_b"], kh=3, kw=3, stride=2, padding=1)
    spikes = multistep_lif(y.reshape((T, B) + y.shape[1:]), T)

    # TODO(synk): MS_Block_Conv (stage-3 blocks), MS_SPS patch_embed and TIM
    # definitions are not provided in the reference source; passed through unchanged.

    Tn, Bn, Hn, Wn, Cn = spikes.shape
    # x.flatten(3).mean(3) -> head -> mean over T (TET=False), fused & gridded over T.
    return head_pool(spikes.reshape(Tn, Bn, Hn * Wn, Cn),
                     p["head_w"], p["head_b"])


if __name__ == "__main__":
    key = jax.random.PRNGKey(0)
    T, B, Cin, H, W = 2, 2, 2, 32, 32
    embed_dims, num_classes = 128, 11

    params = init_params(key, Cin, embed_dims, num_classes)
    x = jax.random.normal(jax.random.fold_in(key, 999), (B, Cin, H, W),
                          dtype=jnp.float32)

    fwd = jax.jit(functools.partial(spikeformer_forward, T=T))
    out = jax.block_until_ready(fwd(x, params))

    assert out.shape == (B, num_classes), out.shape
    assert bool(jnp.all(jnp.isfinite(out)))
    print("KERNEL_OK")
</pallas_src>

<mosaic_0001>
module attributes {stable_mosaic.version = 11 : i64} {
  func.func @_mm_bias_kernel(%arg0: i32, %arg1: i32, %arg2: memref<256x128xbf16, #tpu.memory_space<vmem>>, %arg3: memref<128x64xbf16, #tpu.memory_space<vmem>>, %arg4: memref<1x64xf32, #tpu.memory_space<vmem>>, %arg5: memref<256x64xbf16, #tpu.memory_space<vmem>>, %arg6: memref<256x64xf32, #tpu.memory_space<vmem>>) attributes {dimension_semantics = [#tpu.dimension_semantics<parallel>, #tpu.dimension_semantics<arbitrary>], iteration_bounds = array<i64: 2, 1>, scalar_prefetch = 0 : i64, scratch_operands = 1 : i64, tpu.core_type = #tpu.core_type<tc>, window_params = [{transform_indices = @transform_0, window_bounds = array<i64: 256, 128>}, {transform_indices = @transform_1, window_bounds = array<i64: 128, 64>}, {pipeline_mode = #tpu.pipeline_mode<synchronous>, transform_indices = @transform_2, window_bounds = array<i64: 1, 64>}, {transform_indices = @transform_3, window_bounds = array<i64: 256, 64>}]} {
    %c0_i32 = arith.constant 0 : i32
    %0 = arith.cmpi eq, %arg1, %c0_i32 : i32
    %1 = arith.extui %0 : i1 to i32
    %c0_i32_0 = arith.constant 0 : i32
    %2 = arith.cmpi ne, %1, %c0_i32_0 : i32
    scf.if %2 {
      %cst_10 = arith.constant 0.000000e+00 : f32
      %12 = vector.broadcast %cst_10 : f32 to vector<256x64xf32>
      %c0_11 = arith.constant 0 : index
      %c0_12 = arith.constant 0 : index
      %13 = vector.load %arg6[%c0_11, %c0_12] : memref<256x64xf32, #tpu.memory_space<vmem>>, vector<256x64xf32>
      tpu.vector_store %arg6[%c0_11, %c0_12], %12 {strides = array<i32>} : memref<256x64xf32, #tpu.memory_space<vmem>>, vector<256x64xf32>,
    } else {
    }
    %c0 = arith.constant 0 : index
    %c0_1 = arith.constant 0 : index
    %3 = vector.load %arg6[%c0, %c0_1] : memref<256x64xf32, #tpu.memory_space<vmem>>, vector<256x64xf32>
    %c0_2 = arith.constant 0 : index
    %c0_3 = arith.constant 0 : index
    %4 = vector.load %arg2[%c0_2, %c0_3] : memref<256x128xbf16, #tpu.memory_space<vmem>>, vector<256x128xbf16>
    %c0_4 = arith.constant 0 : index
    %c0_5 = arith.constant 0 : index
    %5 = vector.load %arg3[%c0_4, %c0_5] : memref<128x64xbf16, #tpu.memory_space<vmem>>, vector<128x64xbf16>
    %cst = arith.constant dense<0.000000e+00> : vector<256x64xf32>
    %6 = tpu.matmul %4, %5, %cst {dimension_numbers = #tpu.dot_dimension_numbers<[1], [0], [0], [1], [0, 0, 1, 1], [], []>} : vector<256x128xbf16>, vector<128x64xbf16>, vector<256x64xf32> -> vector<256x64xf32>
    %7 = arith.addf %3, %6 : vector<256x64xf32>
    %c0_6 = arith.constant 0 : index
    %c0_7 = arith.constant 0 : index
    %8 = vector.load %arg6[%c0_6, %c0_7] : memref<256x64xf32, #tpu.memory_space<vmem>>, vector<256x64xf32>
    tpu.vector_store %arg6[%c0_6, %c0_7], %7 {strides = array<i32>} : memref<256x64xf32, #tpu.memory_space<vmem>>, vector<256x64xf32>,
    %c0_i32_8 = arith.constant 0 : i32
    %9 = arith.cmpi eq, %arg1, %c0_i32_8 : i32
    %10 = arith.extui %9 : i1 to i32
    %c0_i32_9 = arith.constant 0 : i32
    %11 = arith.cmpi ne, %10, %c0_i32_9 : i32
    scf.if %11 {
      %c0_10 = arith.constant 0 : index
      %c0_11 = arith.constant 0 : index
      %12 = vector.load %arg6[%c0_10, %c0_11] : memref<256x64xf32, #tpu.memory_space<vmem>>, vector<256x64xf32>
      %c0_12 = arith.constant 0 : index
      %c0_13 = arith.constant 0 : index
      %13 = vector.load %arg4[%c0_12, %c0_13] : memref<1x64xf32, #tpu.memory_space<vmem>>, vector<1x64xf32>
      %14 = vector.broadcast %13 : vector<1x64xf32> to vector<256x64xf32>
      %15 = arith.addf %12, %14 : vector<256x64xf32>
      %16 = arith.truncf %15 : vector<256x64xf32> to vector<256x64xbf16>
      %c0_14 = arith.constant 0 : index
      %c0_15 = arith.constant 0 : index
      %17 = vector.load %arg5[%c0_14, %c0_15] : memref<256x64xbf16, #tpu.memory_space<vmem>>, vector<256x64xbf16>
      tpu.vector_store %arg5[%c0_14, %c0_15], %16 {strides = array<i32>} : memref<256x64xbf16, #tpu.memory_space<vmem>>, vector<256x64xbf16>,
    } else {
    }
    return
  }
  func.func @transform_0(%arg0: i32, %arg1: i32) -> (i32, i32) {
    %c0_i32 = arith.constant 0 : i32
    return %arg0, %arg1 : i32, i32
  }
  func.func @transform_1(%arg0: i32, %arg1: i32) -> (i32, i32) {
    %c0_i32 = arith.constant 0 : i32
    %c0_i32_0 = arith.constant 0 : i32
    return %arg1, %c0_i32 : i32, i32
  }
  func.func @transform_2(%arg0: i32, %arg1: i32) -> (i32, i32) {
    %c0_i32 = arith.constant 0 : i32
    %c0_i32_0 = arith.constant 0 : i32
    %c0_i32_1 = arith.constant 0 : i32
    return %c0_i32, %c0_i32_0 : i32, i32
  }
  func.func @transform_3(%arg0: i32, %arg1: i32) -> (i32, i32) {
    %c0_i32 = arith.constant 0 : i32
    %c0_i32_0 = arith.constant 0 : i32
    return %arg0, %c0_i32 : i32, i32
  }
}

module attributes {stable_mosaic.version = 11 : i64} {
  func.func @_lif_kernel(%arg0: i32, %arg1: i32, %arg2: memref<1x128x128xbf16, #tpu.memory_space<vmem>>, %arg3: memref<1x128x128xbf16, #tpu.memory_space<vmem>>, %arg4: memref<128x128xf32, #tpu.memory_space<vmem>>) attributes {dimension_semantics = [#tpu.dimension_semantics<parallel>, #tpu.dimension_semantics<arbitrary>], iteration_bounds = array<i64: 2, 2>, scalar_prefetch = 0 : i64, scratch_operands = 1 : i64, tpu.core_type = #tpu.core_type<tc>, window_params = [{transform_indices = @transform_0, window_bounds = array<i64: 1, 128, 128>}, {transform_indices = @transform_1, window_bounds = array<i64: 1, 128, 128>}]} {
    %c0_i32 = arith.constant 0 : i32
    %0 = arith.cmpi eq, %arg1, %c0_i32 : i32
    %1 = arith.extui %0 : i1 to i32
    %c0_i32_0 = arith.constant 0 : i32
    %2 = arith.cmpi ne, %1, %c0_i32_0 : i32
    scf.if %2 {
      %cst_14 = arith.constant 0.000000e+00 : f32
      %24 = vector.broadcast %cst_14 : f32 to vector<128x128xf32>
      %c0_15 = arith.constant 0 : index
      %c0_16 = arith.constant 0 : index
      %25 = vector.load %arg4[%c0_15, %c0_16] : memref<128x128xf32, #tpu.memory_space<vmem>>, vector<128x128xf32>
      tpu.vector_store %arg4[%c0_15, %c0_16], %24 {strides = array<i32>} : memref<128x128xf32, #tpu.memory_space<vmem>>, vector<128x128xf32>,
    } else {
    }
    %c0 = arith.constant 0 : index
    %c0_1 = arith.constant 0 : index
    %c0_2 = arith.constant 0 : index
    %3 = vector.load %arg2[%c0, %c0_1, %c0_2] : memref<1x128x128xbf16, #tpu.memory_space<vmem>>, vector<1x128x128xbf16>
    %4 = vector.shape_cast %3 : vector<1x128x128xbf16> to vector<128x128xbf16>
    %5 = arith.extf %4 : vector<128x128xbf16> to vector<128x128xf32>
    %c0_3 = arith.constant 0 : index
    %c0_4 = arith.constant 0 : index
    %6 = vector.load %arg4[%c0_3, %c0_4] : memref<128x128xf32, #tpu.memory_space<vmem>>, vector<128x128xf32>
    %c0_5 = arith.constant 0 : index
    %c0_6 = arith.constant 0 : index
    %7 = vector.load %arg4[%c0_5, %c0_6] : memref<128x128xf32, #tpu.memory_space<vmem>>, vector<128x128xf32>
    %8 = arith.subf %5, %7 : vector<128x128xf32>
    %cst = arith.constant 5.000000e-01 : f32
    %9 = vector.broadcast %cst : f32 to vector<128x128xf32>
    %10 = arith.mulf %8, %9 : vector<128x128xf32>
    %11 = arith.addf %6, %10 : vector<128x128xf32>
    %cst_7 = arith.constant 1.000000e+00 : f32
    %12 = vector.broadcast %cst_7 : f32 to vector<128x128xf32>
    %13 = arith.cmpf oge, %11, %12 : vector<128x128xf32>
    %14 = arith.extui %13 : vector<128x128xi1> to vector<128x128xi32>
    %15 = arith.sitofp %14 : vector<128x128xi32> to vector<128x128xf32>
    %cst_8 = arith.constant 1.000000e+00 : f32
    %16 = vector.broadcast %cst_8 : f32 to vector<128x128xf32>
    %17 = arith.subf %16, %15 : vector<128x128xf32>
    %18 = arith.mulf %11, %17 : vector<128x128xf32>
    %c0_9 = arith.constant 0 : index
    %c0_10 = arith.constant 0 : index
    %19 = vector.load %arg4[%c0_9, %c0_10] : memref<128x128xf32, #tpu.memory_space<vmem>>, vector<128x128xf32>
    tpu.vector_store %arg4[%c0_9, %c0_10], %18 {strides = array<i32>} : memref<128x128xf32, #tpu.memory_space<vmem>>, vector<128x128xf32>,
    %20 = arith.truncf %15 : vector<128x128xf32> to vector<128x128xbf16>
    %c0_11 = arith.constant 0 : index
    %c0_12 = arith.constant 0 : index
    %c0_13 = arith.constant 0 : index
    %21 = vector.load %arg3[%c0_11, %c0_12, %c0_13] : memref<1x128x128xbf16, #tpu.memory_space<vmem>>, vector<1x128x128xbf16>
    %22 = vector.shape_cast %21 : vector<1x128x128xbf16> to vector<128x128xbf16>
    %23 = vector.shape_cast %20 : vector<128x128xbf16> to vector<1x128x128xbf16>
    tpu.vector_store %arg3[%c0_11, %c0_12, %c0_13], %23 {strides = array<i32>} : memref<1x128x128xbf16, #tpu.memory_space<vmem>>, vector<1x128x128xbf16>,
    return
  }
  func.func @transform_0(%arg0: i32, %arg1: i32) -> (i32, i32, i32) {
    %c0_i32 = arith.constant 0 : i32
    %c0_i32_0 = arith.constant 0 : i32
    %c0_i32_1 = arith.constant 0 : i32
    return %c0_i32, %arg0, %c0_i32_0 : i32, i32, i32
  }
  func.func @transform_1(%arg0: i32, %arg1: i32) -> (i32, i32, i32) {
    %c0_i32 = arith.constant 0 : i32
    %c0_i32_0 = arith.constant 0 : i32
    return %arg1, %arg0, %c0_i32 : i32, i32, i32
  }
}

module attributes {stable_mosaic.version = 11 : i64} {
  func.func @_maxpool_kernel(%arg0: i32, %arg1: memref<1x18x9x128xbf16, #tpu.memory_space<vmem>>, %arg2: memref<1x8x8x64xbf16, #tpu.memory_space<vmem>>) attributes {dimension_semantics = [#tpu.dimension_semantics<parallel>], iteration_bounds = array<i64: 4>, scalar_prefetch = 0 : i64, scratch_operands = 0 : i64, tpu.core_type = #tpu.core_type<tc>, window_params = [{transform_indices = @transform_0, window_bounds = array<i64: 1, 18, 9, 128>}, {transform_indices = @transform_1, window_bounds = array<i64: 1, 8, 8, 64>}]} {
    %c0 = arith.constant 0 : index
    %c0_0 = arith.constant 0 : index
    %c0_1 = arith.constant 0 : index
    %c0_2 = arith.constant 0 : index
    %0 = vector.load %arg1[%c0, %c0_0, %c0_1, %c0_2] : memref<1x18x9x128xbf16, #tpu.memory_space<vmem>>, vector<1x18x9x128xbf16>
    %1 = vector.shape_cast %0 : vector<1x18x9x128xbf16> to vector<18x9x128xbf16>
    %2 = vector.extract_strided_slice %1 {offsets = [0, 0, 0], sizes = [18, 8, 64], strides = [1, 1, 1]} : vector<18x9x128xbf16> to vector<18x8x64xbf16>
    %3 = vector.extract_strided_slice %1 {offsets = [0, 0, 64], sizes = [18, 8, 64], strides = [1, 1, 1]} : vector<18x9x128xbf16> to vector<18x8x64xbf16>
    %4 = arith.maximumf %2, %3 : vector<18x8x64xbf16>
    %5 = vector.extract_strided_slice %1 {offsets = [0, 1, 0], sizes = [18, 8, 64], strides = [1, 1, 1]} : vector<18x9x128xbf16> to vector<18x8x64xbf16>
    %6 = arith.maximumf %4, %5 : vector<18x8x64xbf16>
    %7 = vector.extract_strided_slice %6 {offsets = [0, 0, 0], sizes = [16, 8, 64], strides = [1, 1, 1]} : vector<18x8x64xbf16> to vector<16x8x64xbf16>
    %8 = vector.shape_cast %7 : vector<16x8x64xbf16> to vector<8x2x8x64xbf16>
    %9 = vector.extract_strided_slice %6 {offsets = [2, 0, 0], sizes = [16, 8, 64], strides = [1, 1, 1]} : vector<18x8x64xbf16> to vector<16x8x64xbf16>
    %10 = vector.shape_cast %9 : vector<16x8x64xbf16> to vector<8x2x8x64xbf16>
    %11 = vector.extract_strided_slice %8 {offsets = [0, 0, 0, 0], sizes = [8, 1, 8, 64], strides = [1, 1, 1, 1]} : vector<8x2x8x64xbf16> to vector<8x1x8x64xbf16>
    %12 = vector.shape_cast %11 : vector<8x1x8x64xbf16> to vector<8x8x64xbf16>
    %13 = vector.extract_strided_slice %8 {offsets = [0, 1, 0, 0], sizes = [8, 1, 8, 64], strides = [1, 1, 1, 1]} : vector<8x2x8x64xbf16> to vector<8x1x8x64xbf16>
    %14 = vector.shape_cast %13 : vector<8x1x8x64xbf16> to vector<8x8x64xbf16>
    %15 = arith.maximumf %12, %14 : vector<8x8x64xbf16>
    %16 = vector.extract_strided_slice %10 {offsets = [0, 0, 0, 0], sizes = [8, 1, 8, 64], strides = [1, 1, 1, 1]} : vector<8x2x8x64xbf16> to vector<8x1x8x64xbf16>
    %17 = vector.shape_cast %16 : vector<8x1x8x64xbf16> to vector<8x8x64xbf16>
    %18 = arith.maximumf %15, %17 : vector<8x8x64xbf16>
    %c0_3 = arith.constant 0 : index
    %c0_4 = arith.constant 0 : index
    %c0_5 = arith.constant 0 : index
    %c0_6 = arith.constant 0 : index
    %19 = vector.load %arg2[%c0_3, %c0_4, %c0_5, %c0_6] : memref<1x8x8x64xbf16, #tpu.memory_space<vmem>>, vector<1x8x8x64xbf16>
    %20 = vector.shape_cast %19 : vector<1x8x8x64xbf16> to vector<8x8x64xbf16>
    %21 = vector.shape_cast %18 : vector<8x8x64xbf16> to vector<1x8x8x64xbf16>
    tpu.vector_store %arg2[%c0_3, %c0_4, %c0_5, %c0_6], %21 {strides = array<i32>} : memref<1x8x8x64xbf16, #tpu.memory_space<vmem>>, vector<1x8x8x64xbf16>,
    return
  }
  func.func @transform_0(%arg0: i32) -> (i32, i32, i32, i32) {
    %c0_i32 = arith.constant 0 : i32
    %c0_i32_0 = arith.constant 0 : i32
    %c0_i32_1 = arith.constant 0 : i32
    %c0_i32_2 = arith.constant 0 : i32
    return %arg0, %c0_i32, %c0_i32_0, %c0_i32_1 : i32, i32, i32, i32
  }
  func.func @transform_1(%arg0: i32) -> (i32, i32, i32, i32) {
    %c0_i32 = arith.constant 0 : i32
    %c0_i32_0 = arith.constant 0 : i32
    %c0_i32_1 = arith.constant 0 : i32
    %c0_i32_2 = arith.constant 0 : i32
    return %arg0, %c0_i32, %c0_i32_0, %c0_i32_1 : i32, i32, i32, i32
  }
}

module attributes {stable_mosaic.version = 11 : i64} {
  func.func @_mm_bias_kernel(%arg0: i32, %arg1: i32, %arg2: memref<64x640xbf16, #tpu.memory_space<vmem>>, %arg3: memref<640x192xbf16, #tpu.memory_space<vmem>>, %arg4: memref<1x192xf32, #tpu.memory_space<vmem>>, %arg5: memref<64x192xbf16, #tpu.memory_space<vmem>>, %arg6: memref<64x192xf32, #tpu.memory_space<vmem>>) attributes {dimension_semantics = [#tpu.dimension_semantics<parallel>, #tpu.dimension_semantics<arbitrary>], iteration_bounds = array<i64: 1, 1>, scalar_prefetch = 0 : i64, scratch_operands = 1 : i64, tpu.core_type = #tpu.core_type<tc>, window_params = [{transform_indices = @transform_0, window_bounds = array<i64: 64, 640>}, {transform_indices = @transform_1, window_bounds = array<i64: 640, 192>}, {pipeline_mode = #tpu.pipeline_mode<synchronous>, transform_indices = @transform_2, window_bounds = array<i64: 1, 192>}, {transform_indices = @transform_3, window_bounds = array<i64: 64, 192>}]} {
    %c0_i32 = arith.constant 0 : i32
    %0 = arith.cmpi eq, %arg1, %c0_i32 : i32
    %1 = arith.extui %0 : i1 to i32
    %c0_i32_0 = arith.constant 0 : i32
    %2 = arith.cmpi ne, %1, %c0_i32_0 : i32
    scf.if %2 {
      %cst_10 = arith.constant 0.000000e+00 : f32
      %12 = vector.broadcast %cst_10 : f32 to vector<64x192xf32>
      %c0_11 = arith.constant 0 : index
      %c0_12 = arith.constant 0 : index
      %13 = vector.load %arg6[%c0_11, %c0_12] : memref<64x192xf32, #tpu.memory_space<vmem>>, vector<64x192xf32>
      tpu.vector_store %arg6[%c0_11, %c0_12], %12 {strides = array<i32>} : memref<64x192xf32, #tpu.memory_space<vmem>>, vector<64x192xf32>,
    } else {
    }
    %c0 = arith.constant 0 : index
    %c0_1 = arith.constant 0 : index
    %3 = vector.load %arg6[%c0, %c0_1] : memref<64x192xf32, #tpu.memory_space<vmem>>, vector<64x192xf32>
    %c0_2 = arith.constant 0 : index
    %c0_3 = arith.constant 0 : index
    %4 = vector.load %arg2[%c0_2, %c0_3] : memref<64x640xbf16, #tpu.memory_space<vmem>>, vector<64x640xbf16>
    %c0_4 = arith.constant 0 : index
    %c0_5 = arith.constant 0 : index
    %5 = vector.load %arg3[%c0_4, %c0_5] : memref<640x192xbf16, #tpu.memory_space<vmem>>, vector<640x192xbf16>
    %cst = arith.constant dense<0.000000e+00> : vector<64x192xf32>
    %6 = tpu.matmul %4, %5, %cst {dimension_numbers = #tpu.dot_dimension_numbers<[1], [0], [0], [1], [0, 0, 1, 1], [], []>} : vector<64x640xbf16>, vector<640x192xbf16>, vector<64x192xf32> -> vector<64x192xf32>
    %7 = arith.addf %3, %6 : vector<64x192xf32>
    %c0_6 = arith.constant 0 : index
    %c0_7 = arith.constant 0 : index
    %8 = vector.load %arg6[%c0_6, %c0_7] : memref<64x192xf32, #tpu.memory_space<vmem>>, vector<64x192xf32>
    tpu.vector_store %arg6[%c0_6, %c0_7], %7 {strides = array<i32>} : memref<64x192xf32, #tpu.memory_space<vmem>>, vector<64x192xf32>,
    %c0_i32_8 = arith.constant 0 : i32
    %9 = arith.cmpi eq, %arg1, %c0_i32_8 : i32
    %10 = arith.extui %9 : i1 to i32
    %c0_i32_9 = arith.constant 0 : i32
    %11 = arith.cmpi ne, %10, %c0_i32_9 : i32
    scf.if %11 {
      %c0_10 = arith.constant 0 : index
      %c0_11 = arith.constant 0 : index
      %12 = vector.load %arg6[%c0_10, %c0_11] : memref<64x192xf32, #tpu.memory_space<vmem>>, vector<64x192xf32>
      %c0_12 = arith.constant 0 : index
      %c0_13 = arith.constant 0 : index
      %13 = vector.load %arg4[%c0_12, %c0_13] : memref<1x192xf32, #tpu.memory_space<vmem>>, vector<1x192xf32>
      %14 = vector.broadcast %13 : vector<1x192xf32> to vector<64x192xf32>
      %15 = arith.addf %12, %14 : vector<64x192xf32>
      %16 = arith.truncf %15 : vector<64x192xf32> to vector<64x192xbf16>
      %c0_14 = arith.constant 0 : index
      %c0_15 = arith.constant 0 : index
      %17 = vector.load %arg5[%c0_14, %c0_15] : memref<64x192xbf16, #tpu.memory_space<vmem>>, vector<64x192xbf16>
      tpu.vector_store %arg5[%c0_14, %c0_15], %16 {strides = array<i32>} : memref<64x192xbf16, #tpu.memory_space<vmem>>, vector<64x192xbf16>,
    } else {
    }
    return
  }
  func.func @transform_0(%arg0: i32, %arg1: i32) -> (i32, i32) {
    %c0_i32 = arith.constant 0 : i32
    return %arg0, %arg1 : i32, i32
  }
  func.func @transform_1(%arg0: i32, %arg1: i32) -> (i32, i32) {
    %c0_i32 = arith.constant 0 : i32
    %c0_i32_0 = arith.constant 0 : i32
    return %arg1, %c0_i32 : i32, i32
  }
  func.func @transform_2(%arg0: i32, %arg1: i32) -> (i32, i32) {
    %c0_i32 = arith.constant 0 : i32
    %c0_i32_0 = arith.constant 0 : i32
    %c0_i32_1 = arith.constant 0 : i32
    return %c0_i32, %c0_i32_0 : i32, i32
  }
  func.func @transform_3(%arg0: i32, %arg1: i32) -> (i32, i32) {
    %c0_i32 = arith.constant 0 : i32
    %c0_i32_0 = arith.constant 0 : i32
    return %arg0, %c0_i32 : i32, i32
  }
}

module attributes {stable_mosaic.version = 11 : i64} {
  func.func @_lif_kernel(%arg0: i32, %arg1: i32, %arg2: memref<1x24x128xbf16, #tpu.memory_space<vmem>>, %arg3: memref<1x24x128xbf16, #tpu.memory_space<vmem>>, %arg4: memref<24x128xf32, #tpu.memory_space<vmem>>) attributes {dimension_semantics = [#tpu.dimension_semantics<parallel>, #tpu.dimension_semantics<arbitrary>], iteration_bounds = array<i64: 2, 2>, scalar_prefetch = 0 : i64, scratch_operands = 1 : i64, tpu.core_type = #tpu.core_type<tc>, window_params = [{transform_indices = @transform_0, window_bounds = array<i64: 1, 24, 128>}, {transform_indices = @transform_1, window_bounds = array<i64: 1, 24, 128>}]} {
    %c0_i32 = arith.constant 0 : i32
    %0 = arith.cmpi eq, %arg1, %c0_i32 : i32
    %1 = arith.extui %0 : i1 to i32
    %c0_i32_0 = arith.constant 0 : i32
    %2 = arith.cmpi ne, %1, %c0_i32_0 : i32
    scf.if %2 {
      %cst_14 = arith.constant 0.000000e+00 : f32
      %24 = vector.broadcast %cst_14 : f32 to vector<24x128xf32>
      %c0_15 = arith.constant 0 : index
      %c0_16 = arith.constant 0 : index
      %25 = vector.load %arg4[%c0_15, %c0_16] : memref<24x128xf32, #tpu.memory_space<vmem>>, vector<24x128xf32>
      tpu.vector_store %arg4[%c0_15, %c0_16], %24 {strides = array<i32>} : memref<24x128xf32, #tpu.memory_space<vmem>>, vector<24x128xf32>,
    } else {
    }
    %c0 = arith.constant 0 : index
    %c0_1 = arith.constant 0 : index
    %c0_2 = arith.constant 0 : index
    %3 = vector.load %arg2[%c0, %c0_1, %c0_2] : memref<1x24x128xbf16, #tpu.memory_space<vmem>>, vector<1x24x128xbf16>
    %4 = vector.shape_cast %3 : vector<1x24x128xbf16> to vector<24x128xbf16>
    %5 = arith.extf %4 : vector<24x128xbf16> to vector<24x128xf32>
    %c0_3 = arith.constant 0 : index
    %c0_4 = arith.constant 0 : index
    %6 = vector.load %arg4[%c0_3, %c0_4] : memref<24x128xf32, #tpu.memory_space<vmem>>, vector<24x128xf32>
    %c0_5 = arith.constant 0 : index
    %c0_6 = arith.constant 0 : index
    %7 = vector.load %arg4[%c0_5, %c0_6] : memref<24x128xf32, #tpu.memory_space<vmem>>, vector<24x128xf32>
    %8 = arith.subf %5, %7 : vector<24x128xf32>
    %cst = arith.constant 5.000000e-01 : f32
    %9 = vector.broadcast %cst : f32 to vector<24x128xf32>
    %10 = arith.mulf %8, %9 : vector<24x128xf32>
    %11 = arith.addf %6, %10 : vector<24x128xf32>
    %cst_7 = arith.constant 1.000000e+00 : f32
    %12 = vector.broadcast %cst_7 : f32 to vector<24x128xf32>
    %13 = arith.cmpf oge, %11, %12 : vector<24x128xf32>
    %14 = arith.extui %13 : vector<24x128xi1> to vector<24x128xi32>
    %15 = arith.sitofp %14 : vector<24x128xi32> to vector<24x128xf32>
    %cst_8 = arith.constant 1.000000e+00 : f32
    %16 = vector.broadcast %cst_8 : f32 to vector<24x128xf32>
    %17 = arith.subf %16, %15 : vector<24x128xf32>
    %18 = arith.mulf %11, %17 : vector<24x128xf32>
    %c0_9 = arith.constant 0 : index
    %c0_10 = arith.constant 0 : index
    %19 = vector.load %arg4[%c0_9, %c0_10] : memref<24x128xf32, #tpu.memory_space<vmem>>, vector<24x128xf32>
    tpu.vector_store %arg4[%c0_9, %c0_10], %18 {strides = array<i32>} : memref<24x128xf32, #tpu.memory_space<vmem>>, vector<24x128xf32>,
    %20 = arith.truncf %15 : vector<24x128xf32> to vector<24x128xbf16>
    %c0_11 = arith.constant 0 : index
    %c0_12 = arith.constant 0 : index
    %c0_13 = arith.constant 0 : index
    %21 = vector.load %arg3[%c0_11, %c0_12, %c0_13] : memref<1x24x128xbf16, #tpu.memory_space<vmem>>, vector<1x24x128xbf16>
    %22 = vector.shape_cast %21 : vector<1x24x128xbf16> to vector<24x128xbf16>
    %23 = vector.shape_cast %20 : vector<24x128xbf16> to vector<1x24x128xbf16>
    tpu.vector_store %arg3[%c0_11, %c0_12, %c0_13], %23 {strides = array<i32>} : memref<1x24x128xbf16, #tpu.memory_space<vmem>>, vector<1x24x128xbf16>,
    return
  }
  func.func @transform_0(%arg0: i32, %arg1: i32) -> (i32, i32, i32) {
    %c0_i32 = arith.constant 0 : i32
    %c0_i32_0 = arith.constant 0 : i32
    return %arg1, %arg0, %c0_i32 : i32, i32, i32
  }
  func.func @transform_1(%arg0: i32, %arg1: i32) -> (i32, i32, i32) {
    %c0_i32 = arith.constant 0 : i32
    %c0_i32_0 = arith.constant 0 : i32
    return %arg1, %arg0, %c0_i32 : i32, i32, i32
  }
}

module attributes {stable_mosaic.version = 11 : i64} {
  func.func @_lif_kernel(%arg0: i32, %arg1: i32, %arg2: memref<1x8x128xbf16, #tpu.memory_space<vmem>>, %arg3: memref<1x8x128xbf16, #tpu.memory_space<vmem>>, %arg4: memref<8x128xf32, #tpu.memory_space<vmem>>) attributes {dimension_semantics = [#tpu.dimension_semantics<parallel>, #tpu.dimension_semantics<arbitrary>], iteration_bounds = array<i64: 1, 2>, scalar_prefetch = 0 : i64, scratch_operands = 1 : i64, tpu.core_type = #tpu.core_type<tc>, window_params = [{transform_indices = @transform_0, window_bounds = array<i64: 1, 8, 128>}, {transform_indices = @transform_1, window_bounds = array<i64: 1, 8, 128>}]} {
    %c0_i32 = arith.constant 0 : i32
    %0 = arith.cmpi eq, %arg1, %c0_i32 : i32
    %1 = arith.extui %0 : i1 to i32
    %c0_i32_0 = arith.constant 0 : i32
    %2 = arith.cmpi ne, %1, %c0_i32_0 : i32
    scf.if %2 {
      %cst_14 = arith.constant 0.000000e+00 : f32
      %24 = vector.broadcast %cst_14 : f32 to vector<8x128xf32>
      %c0_15 = arith.constant 0 : index
      %c0_16 = arith.constant 0 : index
      %25 = vector.load %arg4[%c0_15, %c0_16] : memref<8x128xf32, #tpu.memory_space<vmem>>, vector<8x128xf32>
      tpu.vector_store %arg4[%c0_15, %c0_16], %24 {strides = array<i32>} : memref<8x128xf32, #tpu.memory_space<vmem>>, vector<8x128xf32>,
    } else {
    }
    %c0 = arith.constant 0 : index
    %c0_1 = arith.constant 0 : index
    %c0_2 = arith.constant 0 : index
    %3 = vector.load %arg2[%c0, %c0_1, %c0_2] : memref<1x8x128xbf16, #tpu.memory_space<vmem>>, vector<1x8x128xbf16>
    %4 = vector.shape_cast %3 : vector<1x8x128xbf16> to vector<8x128xbf16>
    %5 = arith.extf %4 : vector<8x128xbf16> to vector<8x128xf32>
    %c0_3 = arith.constant 0 : index
    %c0_4 = arith.constant 0 : index
    %6 = vector.load %arg4[%c0_3, %c0_4] : memref<8x128xf32, #tpu.memory_space<vmem>>, vector<8x128xf32>
    %c0_5 = arith.constant 0 : index
    %c0_6 = arith.constant 0 : index
    %7 = vector.load %arg4[%c0_5, %c0_6] : memref<8x128xf32, #tpu.memory_space<vmem>>, vector<8x128xf32>
    %8 = arith.subf %5, %7 : vector<8x128xf32>
    %cst = arith.constant 5.000000e-01 : f32
    %9 = vector.broadcast %cst : f32 to vector<8x128xf32>
    %10 = arith.mulf %8, %9 : vector<8x128xf32>
    %11 = arith.addf %6, %10 : vector<8x128xf32>
    %cst_7 = arith.constant 1.000000e+00 : f32
    %12 = vector.broadcast %cst_7 : f32 to vector<8x128xf32>
    %13 = arith.cmpf oge, %11, %12 : vector<8x128xf32>
    %14 = arith.extui %13 : vector<8x128xi1> to vector<8x128xi32>
    %15 = arith.sitofp %14 : vector<8x128xi32> to vector<8x128xf32>
    %cst_8 = arith.constant 1.000000e+00 : f32
    %16 = vector.broadcast %cst_8 : f32 to vector<8x128xf32>
    %17 = arith.subf %16, %15 : vector<8x128xf32>
    %18 = arith.mulf %11, %17 : vector<8x128xf32>
    %c0_9 = arith.constant 0 : index
    %c0_10 = arith.constant 0 : index
    %19 = vector.load %arg4[%c0_9, %c0_10] : memref<8x128xf32, #tpu.memory_space<vmem>>, vector<8x128xf32>
    tpu.vector_store %arg4[%c0_9, %c0_10], %18 {strides = array<i32>} : memref<8x128xf32, #tpu.memory_space<vmem>>, vector<8x128xf32>,
    %20 = arith.truncf %15 : vector<8x128xf32> to vector<8x128xbf16>
    %c0_11 = arith.constant 0 : index
    %c0_12 = arith.constant 0 : index
    %c0_13 = arith.constant 0 : index
    %21 = vector.load %arg3[%c0_11, %c0_12, %c0_13] : memref<1x8x128xbf16, #tpu.memory_space<vmem>>, vector<1x8x128xbf16>
    %22 = vector.shape_cast %21 : vector<1x8x128xbf16> to vector<8x128xbf16>
    %23 = vector.shape_cast %20 : vector<8x128xbf16> to vector<1x8x128xbf16>
    tpu.vector_store %arg3[%c0_11, %c0_12, %c0_13], %23 {strides = array<i32>} : memref<1x8x128xbf16, #tpu.memory_space<vmem>>, vector<1x8x128xbf16>,
    return
  }
  func.func @transform_0(%arg0: i32, %arg1: i32) -> (i32, i32, i32) {
    %c0_i32 = arith.constant 0 : i32
    %c0_i32_0 = arith.constant 0 : i32
    return %arg1, %arg0, %c0_i32 : i32, i32, i32
  }
  func.func @transform_1(%arg0: i32, %arg1: i32) -> (i32, i32, i32) {
    %c0_i32 = arith.constant 0 : i32
    %c0_i32_0 = arith.constant 0 : i32
    return %arg1, %arg0, %c0_i32 : i32, i32, i32
  }
}

module attributes {stable_mosaic.version = 11 : i64} {
  func.func @_mm_bias_kernel(%arg0: i32, %arg1: i32, %arg2: memref<16x1792xbf16, #tpu.memory_space<vmem>>, %arg3: memref<1792x128xbf16, #tpu.memory_space<vmem>>, %arg4: memref<1x128xf32, #tpu.memory_space<vmem>>, %arg5: memref<16x128xbf16, #tpu.memory_space<vmem>>, %arg6: memref<16x128xf32, #tpu.memory_space<vmem>>) attributes {dimension_semantics = [#tpu.dimension_semantics<parallel>, #tpu.dimension_semantics<arbitrary>], iteration_bounds = array<i64: 1, 1>, scalar_prefetch = 0 : i64, scratch_operands = 1 : i64, tpu.core_type = #tpu.core_type<tc>, window_params = [{transform_indices = @transform_0, window_bounds = array<i64: 16, 1792>}, {transform_indices = @transform_1, window_bounds = array<i64: 1792, 128>}, {pipeline_mode = #tpu.pipeline_mode<synchronous>, transform_indices = @transform_2, window_bounds = array<i64: 1, 128>}, {transform_indices = @transform_3, window_bounds = array<i64: 16, 128>}]} {
    %c0_i32 = arith.constant 0 : i32
    %0 = arith.cmpi eq, %arg1, %c0_i32 : i32
    %1 = arith.extui %0 : i1 to i32
    %c0_i32_0 = arith.constant 0 : i32
    %2 = arith.cmpi ne, %1, %c0_i32_0 : i32
    scf.if %2 {
      %cst_10 = arith.constant 0.000000e+00 : f32
      %12 = vector.broadcast %cst_10 : f32 to vector<16x128xf32>
      %c0_11 = arith.constant 0 : index
      %c0_12 = arith.constant 0 : index
      %13 = vector.load %arg6[%c0_11, %c0_12] : memref<16x128xf32, #tpu.memory_space<vmem>>, vector<16x128xf32>
      tpu.vector_store %arg6[%c0_11, %c0_12], %12 {strides = array<i32>} : memref<16x128xf32, #tpu.memory_space<vmem>>, vector<16x128xf32>,
    } else {
    }
    %c0 = arith.constant 0 : index
    %c0_1 = arith.constant 0 : index
    %3 = vector.load %arg6[%c0, %c0_1] : memref<16x128xf32, #tpu.memory_space<vmem>>, vector<16x128xf32>
    %c0_2 = arith.constant 0 : index
    %c0_3 = arith.constant 0 : index
    %4 = vector.load %arg2[%c0_2, %c0_3] : memref<16x1792xbf16, #tpu.memory_space<vmem>>, vector<16x1792xbf16>
    %c0_4 = arith.constant 0 : index
    %c0_5 = arith.constant 0 : index
    %5 = vector.load %arg3[%c0_4, %c0_5] : memref<1792x128xbf16, #tpu.memory_space<vmem>>, vector<1792x128xbf16>
    %cst = arith.constant dense<0.000000e+00> : vector<16x128xf32>
    %6 = tpu.matmul %4, %5, %cst {dimension_numbers = #tpu.dot_dimension_numbers<[1], [0], [0], [1], [0, 0, 1, 1], [], []>} : vector<16x1792xbf16>, vector<1792x128xbf16>, vector<16x128xf32> -> vector<16x128xf32>
    %7 = arith.addf %3, %6 : vector<16x128xf32>
    %c0_6 = arith.constant 0 : index
    %c0_7 = arith.constant 0 : index
    %8 = vector.load %arg6[%c0_6, %c0_7] : memref<16x128xf32, #tpu.memory_space<vmem>>, vector<16x128xf32>
    tpu.vector_store %arg6[%c0_6, %c0_7], %7 {strides = array<i32>} : memref<16x128xf32, #tpu.memory_space<vmem>>, vector<16x128xf32>,
    %c0_i32_8 = arith.constant 0 : i32
    %9 = arith.cmpi eq, %arg1, %c0_i32_8 : i32
    %10 = arith.extui %9 : i1 to i32
    %c0_i32_9 = arith.constant 0 : i32
    %11 = arith.cmpi ne, %10, %c0_i32_9 : i32
    scf.if %11 {
      %c0_10 = arith.constant 0 : index
      %c0_11 = arith.constant 0 : index
      %12 = vector.load %arg6[%c0_10, %c0_11] : memref<16x128xf32, #tpu.memory_space<vmem>>, vector<16x128xf32>
      %c0_12 = arith.constant 0 : index
      %c0_13 = arith.constant 0 : index
      %13 = vector.load %arg4[%c0_12, %c0_13] : memref<1x128xf32, #tpu.memory_space<vmem>>, vector<1x128xf32>
      %14 = vector.broadcast %13 : vector<1x128xf32> to vector<16x128xf32>
      %15 = arith.addf %12, %14 : vector<16x128xf32>
      %16 = arith.truncf %15 : vector<16x128xf32> to vector<16x128xbf16>
      %c0_14 = arith.constant 0 : index
      %c0_15 = arith.constant 0 : index
      %17 = vector.load %arg5[%c0_14, %c0_15] : memref<16x128xbf16, #tpu.memory_space<vmem>>, vector<16x128xbf16>
      tpu.vector_store %arg5[%c0_14, %c0_15], %16 {strides = array<i32>} : memref<16x128xbf16, #tpu.memory_space<vmem>>, vector<16x128xbf16>,
    } else {
    }
    return
  }
  func.func @transform_0(%arg0: i32, %arg1: i32) -> (i32, i32) {
    %c0_i32 = arith.constant 0 : i32
    return %arg0, %arg1 : i32, i32
  }
  func.func @transform_1(%arg0: i32, %arg1: i32) -> (i32, i32) {
    %c0_i32 = arith.constant 0 : i32
    %c0_i32_0 = arith.constant 0 : i32
    return %arg1, %c0_i32 : i32, i32
  }
  func.func @transform_2(%arg0: i32, %arg1: i32) -> (i32, i32) {
    %c0_i32 = arith.constant 0 : i32
    %c0_i32_0 = arith.constant 0 : i32
    %c0_i32_1 = arith.constant 0 : i32
    return %c0_i32, %c0_i32_0 : i32, i32
  }
  func.func @transform_3(%arg0: i32, %arg1: i32) -> (i32, i32) {
    %c0_i32 = arith.constant 0 : i32
    %c0_i32_0 = arith.constant 0 : i32
    return %arg0, %c0_i32 : i32, i32
  }
}

module attributes {stable_mosaic.version = 11 : i64} {
  func.func @_head_kernel(%arg0: i32, %arg1: memref<1x2x4x128xbf16, #tpu.memory_space<vmem>>, %arg2: memref<128x128xf32, #tpu.memory_space<vmem>>, %arg3: memref<1x128xf32, #tpu.memory_space<vmem>>, %arg4: memref<2x128xf32, #tpu.memory_space<vmem>>, %arg5: memref<2x128xf32, #tpu.memory_space<vmem>>) attributes {dimension_semantics = [#tpu.dimension_semantics<arbitrary>], iteration_bounds = array<i64: 2>, scalar_prefetch = 0 : i64, scratch_operands = 1 : i64, tpu.core_type = #tpu.core_type<tc>, window_params = [{transform_indices = @transform_0, window_bounds = array<i64: 1, 2, 4, 128>}, {pipeline_mode = #tpu.pipeline_mode<synchronous>, transform_indices = @transform_1, window_bounds = array<i64: 128, 128>}, {pipeline_mode = #tpu.pipeline_mode<synchronous>, transform_indices = @transform_2, window_bounds = array<i64: 1, 128>}, {pipeline_mode = #tpu.pipeline_mode<synchronous>, transform_indices = @transform_3, window_bounds = array<i64: 2, 128>}]} {
    %c0_i32 = arith.constant 0 : i32
    %0 = arith.cmpi eq, %arg0, %c0_i32 : i32
    %1 = arith.extui %0 : i1 to i32
    %c0_i32_0 = arith.constant 0 : i32
    %2 = arith.cmpi ne, %1, %c0_i32_0 : i32
    scf.if %2 {
      %cst_9 = arith.constant 0.000000e+00 : f32
      %13 = vector.broadcast %cst_9 : f32 to vector<2x128xf32>
      %c0_10 = arith.constant 0 : index
      %c0_11 = arith.constant 0 : index
      %14 = vector.load %arg5[%c0_10, %c0_11] : memref<2x128xf32, #tpu.memory_space<vmem>>, vector<2x128xf32>
      tpu.vector_store %arg5[%c0_10, %c0_11], %13 {strides = array<i32>} : memref<2x128xf32, #tpu.memory_space<vmem>>, vector<2x128xf32>,
    } else {
    }
    %c0 = arith.constant 0 : index
    %c0_1 = arith.constant 0 : index
    %3 = vector.load %arg5[%c0, %c0_1] : memref<2x128xf32, #tpu.memory_space<vmem>>, vector<2x128xf32>
    %c0_2 = arith.constant 0 : index
    %c0_3 = arith.constant 0 : index
    %c0_4 = arith.constant 0 : index
    %c0_5 = arith.constant 0 : index
    %4 = vector.load %arg1[%c0_2, %c0_3, %c0_4, %c0_5] : memref<1x2x4x128xbf16, #tpu.memory_space<vmem>>, vector<1x2x4x128xbf16>
    %5 = vector.shape_cast %4 : vector<1x2x4x128xbf16> to vector<2x4x128xbf16>
    %6 = arith.extf %5 : vector<2x4x128xbf16> to vector<2x4x128xf32>
    %cst = arith.constant dense<0.000000e+00> : vector<2x128xf32>
    %7 = vector.multi_reduction <add>, %6, %cst [1] : vector<2x4x128xf32> to vector<2x128xf32>
    %8 = arith.addf %3, %7 : vector<2x128xf32>
    %c0_6 = arith.constant 0 : index
    %c0_7 = arith.constant 0 : index
    %9 = vector.load %arg5[%c0_6, %c0_7] : memref<2x128xf32, #tpu.memory_space<vmem>>, vector<2x128xf32>
    tpu.vector_store %arg5[%c0_6, %c0_7], %8 {strides = array<i32>} : memref<2x128xf32, #tpu.memory_space<vmem>>, vector<2x128xf32>,
    %c1_i32 = arith.constant 1 : i32
    %10 = arith.cmpi eq, %arg0, %c1_i32 : i32
    %11 = arith.extui %10 : i1 to i32
    %c0_i32_8 = arith.constant 0 : i32
    %12 = arith.cmpi ne, %11, %c0_i32_8 : i32
    scf.if %12 {
      %c0_9 = arith.constant 0 : index
      %c0_10 = arith.constant 0 : index
      %13 = vector.load %arg5[%c0_9, %c0_10] : memref<2x128xf32, #tpu.memory_space<vmem>>, vector<2x128xf32>
      %cst_11 = arith.constant 1.250000e-01 : f32
      %14 = vector.broadcast %cst_11 : f32 to vector<2x128xf32>
      %15 = arith.mulf %13, %14 : vector<2x128xf32>
      %c0_12 = arith.constant 0 : index
      %c0_13 = arith.constant 0 : index
      %16 = vector.load %arg2[%c0_12, %c0_13] : memref<128x128xf32, #tpu.memory_space<vmem>>, vector<128x128xf32>
      %cst_14 = arith.constant dense<0.000000e+00> : vector<2x128xf32>
      %17 = tpu.matmul %15, %16, %cst_14 {dimension_numbers = #tpu.dot_dimension_numbers<[1], [0], [0], [1], [0, 0, 1, 1], [], []>} : vector<2x128xf32>, vector<128x128xf32>, vector<2x128xf32> -> vector<2x128xf32>
      %c0_15 = arith.constant 0 : index
      %c0_16 = arith.constant 0 : index
      %18 = vector.load %arg3[%c0_15, %c0_16] : memref<1x128xf32, #tpu.memory_space<vmem>>, vector<1x128xf32>
      %19 = vector.broadcast %18 : vector<1x128xf32> to vector<2x128xf32>
      %20 = arith.addf %17, %19 : vector<2x128xf32>
      %c0_17 = arith.constant 0 : index
      %c0_18 = arith.constant 0 : index
      %21 = vector.load %arg4[%c0_17, %c0_18] : memref<2x128xf32, #tpu.memory_space<vmem>>, vector<2x128xf32>
      tpu.vector_store %arg4[%c0_17, %c0_18], %20 {strides = array<i32>} : memref<2x128xf32, #tpu.memory_space<vmem>>, vector<2x128xf32>,
    } else {
    }
    return
  }
  func.func @transform_0(%arg0: i32) -> (i32, i32, i32, i32) {
    %c0_i32 = arith.constant 0 : i32
    %c0_i32_0 = arith.constant 0 : i32
    %c0_i32_1 = arith.constant 0 : i32
    %c0_i32_2 = arith.constant 0 : i32
    return %arg0, %c0_i32, %c0_i32_0, %c0_i32_1 : i32, i32, i32, i32
  }
  func.func @transform_1(%arg0: i32) -> (i32, i32) {
    %c0_i32 = arith.constant 0 : i32
    %c0_i32_0 = arith.constant 0 : i32
    %c0_i32_1 = arith.constant 0 : i32
    return %c0_i32, %c0_i32_0 : i32, i32
  }
  func.func @transform_2(%arg0: i32) -> (i32, i32) {
    %c0_i32 = arith.constant 0 : i32
    %c0_i32_0 = arith.constant 0 : i32
    %c0_i32_1 = arith.constant 0 : i32
    return %c0_i32, %c0_i32_0 : i32, i32
  }
  func.func @transform_3(%arg0: i32) -> (i32, i32) {
    %c0_i32 = arith.constant 0 : i32
    %c0_i32_0 = arith.constant 0 : i32
    %c0_i32_1 = arith.constant 0 : i32
    return %c0_i32, %c0_i32_0 : i32, i32
  }
}

</mosaic_0001>

<bundles_post_ra>
// kernel: spikeformer_forward.9
= control target key start
LH: loop header
LB: loop body
LE: loop exit
PB: predicated region body
PF: predicated region fallthrough
CT: control target
= control target key end

     0   :  { %s743_s6 = smov 0   ;;  %s745_s7 = smov 0   ;;  %s862_s0 = inlined_call_operand.vmem [shape: bf16[1,256,128], index: 0, kind: input, shape index: {}]   ;;  %s863_s1 = inlined_call_operand.vmem [shape: bf16[2,256,128], index: 1, kind: output, shape index: {}]  }
   0x1   :  { %s747_s8 = smov 0   ;;  %s749_s9 = smov 0  }
   0x2   :  { %s751_s10 = smov 0  }
   0x3 LB: > { %s20_s11 = sadd.s32 1, %s721_s8  ;;  %s23_s12 = sadd.s32 1, %s725_s9  ;;  %s729_s10 = sphi %s751_s10, %s11_s10   ;;  %s725_s9 = sphi %s749_s9, %s867_s9   ;;  %s721_s8 = sphi %s747_s8, %s866_s8   ;;  %s717_s7 = sphi %s745_s7, %s865_s7   ;;  %s713_s6 = sphi %s743_s6, %s864_s6  }
   0x4   : > { %p21_p0 = scmp.ge.s32.totalorder %s20_s11, 2  ;;  %p522_p1 = scmp.ge.s32.totalorder %s729_s10, 1 }
   0x5   : > { %p102_p2 = scmp.lt.s32.totalorder %s729_s10, 5 }
   0x6   : > { %s869_s11 = smov (%p21_p0, %s20_s11), 0  ;;  %s871_s12 = smov (!%p21_p0, %s23_s12), %s725_s9 }
   0x7   : > { %p103_p3 = pnand %p522_p1, %p102_p2  ;;  %p25_p4 = scmp.ge.s32.totalorder %s871_s12, 2 }
   0x8   : > { %s523_s13 = sshll.u32 (!%p103_p3), %s717_s7, 4  ;;  %p133_p5 = scmp.lt.s32.totalorder (!%p103_p3), %s713_s6, 1 }
   0x9   : > { %s873_s12 = smov (%p25_p4, %s871_s12), 0  ;;  %106 = sbr.rel (%p103_p3) target bundleno = 67 (0x43), region = 24 }
   0xa   : > { %p127_p6 = scmp.lt.s32.totalorder (!%p103_p3), %s523_s13, 31  ;;  %p528_p7 = scmp.ne.s32.totalorder (!%p103_p3), %s713_s6, 0 }
  0x10   : > { %s134_s14 = scalar_select %p133_p5, %s713_s6, 1 }
  0x11   : > { %s875_s13 = smov (!%p127_p6, %s523_s13), 31  ;;  %145 = sbr.rel (%p528_p7) target bundleno = 27 (0x1b), region = 28 }
  0x12   : > { %s526_s15 = sshll.u32 %s134_s14, 5  ;;  %s524_s16 = sshll.u32 %s875_s13, 2  ;;  %v731_v0 = vmov (!%p528_p7), 0.0  }
  0x13   : > { %s138_s17 = sadd.s32 %s526_s15, %s875_s13  ;;  %s776_s20 = scalar_lea.vmem %s862_s0, %s524_s16  ;;  %146 = vst [vmem:[#allocation2] sm:$0xff] (!%p528_p7), %v731_v0  ;;  %147 = vst [vmem:[#allocation2 + $0x8] sm:$0xff] (!%p528_p7), %v731_v0 }
  0x14   : > { %s527_s21 = sshll.u32 %s138_s17, 2  ;;  %148 = vst [vmem:[#allocation2 + $0x10] sm:$0xff] (!%p528_p7), %v731_v0  ;;  %149 = vst [vmem:[#allocation2 + $0x18] sm:$0xff] (!%p528_p7), %v731_v0 }
  0x15   : > { %s781_s24 = scalar_lea.vmem %s863_s1, %s527_s21  ;;  %150 = vst [vmem:[#allocation2 + $0x20] sm:$0xff] (!%p528_p7), %v731_v0  ;;  %151 = vst [vmem:[#allocation2 + $0x28] sm:$0xff] (!%p528_p7), %v731_v0 }
  0x16   : > { %152 = vst [vmem:[#allocation2 + $0x30] sm:$0xff] (!%p528_p7), %v731_v0  ;;  %153 = vst [vmem:[#allocation2 + $0x38] sm:$0xff] (!%p528_p7), %v731_v0 }
  0x17   : > { %154 = vst [vmem:[#allocation2 + $0x40] sm:$0xff] (!%p528_p7), %v731_v0  ;;  %155 = vst [vmem:[#allocation2 + $0x48] sm:$0xff] (!%p528_p7), %v731_v0 }
  0x18   : > { %156 = vst [vmem:[#allocation2 + $0x50] sm:$0xff] %v731_v0  ;;  %157 = vst [vmem:[#allocation2 + $0x58] sm:$0xff] %v731_v0 }
  0x19   : > { %158 = vst [vmem:[#allocation2 + $0x60] sm:$0xff] %v731_v0  ;;  %159 = vst [vmem:[#allocation2 + $0x68] sm:$0xff] %v731_v0 }
  0x1a   : > { %160 = vst [vmem:[#allocation2 + $0x70] sm:$0xff] %v731_v0  ;;  %161 = vst [vmem:[#allocation2 + $0x78] sm:$0xff] %v731_v0 }
  0x1b PF: > { %v580_v1 = vld [vmem:[%s776_s20] sm:$0xff]   ;;  %v635_v6 = vld [vmem:[%s776_s20 + $0x8] sm:$0xff]   ;;  %v636_v11 = vld [vmem:[%s776_s20 + $0x10] sm:$0xff]   ;;  %v732_v43 = vmov 0.0  }
  0x1c   : > { %v581_v4 = vunpack.c.l.bf16 %v580_v1  ;;  %v582_v5 = vunpack.c.h.bf16 %v580_v1  ;;  %v585_v9 = vunpack.c.l.bf16 %v635_v6  ;;  %v586_v10 = vunpack.c.h.bf16 %v635_v6  ;;  %v637_v18 = vld [vmem:[%s776_s20 + $0x18] sm:$0xff]   ;;  %v638_v52 = vld [vmem:[%s776_s20 + $0x20] sm:$0xff]   ;;  %v639_v57 = vld [vmem:[%s776_s20 + $0x28] sm:$0xff]  }
  0x1d   : > { %v194_v2 = vld [vmem:[#allocation2] sm:$0xff]  ;;  %v195_v3 = vld [vmem:[#allocation2 + $0x8] sm:$0xff]  ;;  %v589_v16 = vunpack.c.l.bf16 %v636_v11  ;;  %v590_v17 = vunpack.c.h.bf16 %v636_v11  ;;  %v593_v23 = vunpack.c.l.bf16 %v637_v18  ;;  %v594_v24 = vunpack.c.h.bf16 %v637_v18 }
  0x1e   : > { %v196_v7 = vld [vmem:[#allocation2 + $0x10] sm:$0xff]  ;;  %v197_v8 = vld [vmem:[#allocation2 + $0x18] sm:$0xff]  ;;  %v210_v14 = vsub.f32 %v581_v4, %v194_v2  ;;  %v211_v15 = vsub.f32 %v582_v5, %v195_v3 }
  0x1f   : > { %v198_v12 = vld [vmem:[#allocation2 + $0x20] sm:$0xff]  ;;  %v199_v13 = vld [vmem:[#allocation2 + $0x28] sm:$0xff]  ;;  %v212_v21 = vsub.f32 %v585_v9, %v196_v7  ;;  %v213_v22 = vsub.f32 %v586_v10, %v197_v8  ;;  %v602_v9 = vunpack.c.h.bf16 %v639_v57 }
  0x20   : > { %v200_v19 = vld [vmem:[#allocation2 + $0x30] sm:$0xff]  ;;  %v201_v20 = vld [vmem:[#allocation2 + $0x38] sm:$0xff]  ;;  %v226_v25 = vmul.f32 0.5, %v210_v14  ;;  %v227_v26 = vmul.f32 0.5, %v211_v15  ;;  %v214_v27 = vsub.f32 %v589_v16, %v198_v12  ;;  %v215_v28 = vsub.f32 %v590_v17, %v199_v13 }
  0x21   : > { %v228_v29 = vmul.f32 0.5, %v212_v21  ;;  %v229_v30 = vmul.f32 0.5, %v213_v22  ;;  %v216_v31 = vsub.f32 %v593_v23, %v200_v19  ;;  %v217_v32 = vsub.f32 %v594_v24, %v201_v20  ;;  %v202_v62 = vld [vmem:[#allocation2 + $0x40] sm:$0xff]  ;;  %v203_v63 = vld [vmem:[#allocation2 + $0x48] sm:$0xff] }
  0x22   : > { %v242_v33 = vadd.f32 %v226_v25, %v194_v2  ;;  %v243_v34 = vadd.f32 %v227_v26, %v195_v3  ;;  %v230_v35 = vmul.f32 0.5, %v214_v27  ;;  %v231_v36 = vmul.f32 0.5, %v215_v28  ;;  %v204_v4 = vld [vmem:[#allocation2 + $0x50] sm:$0xff]  ;;  %v205_v5 = vld [vmem:[#allocation2 + $0x58] sm:$0xff]  ;;  %v206_v21 = vld [vmem:[#allocation2 + $0x60] sm:$0xff] }
  0x23   : > { %v244_v37 = vadd.f32 %v228_v29, %v196_v7  ;;  %v245_v38 = vadd.f32 %v229_v30, %v197_v8  ;;  %v232_v39 = vmul.f32 0.5, %v216_v31  ;;  %v233_v40 = vmul.f32 0.5, %v217_v32  ;;  %v207_v22 = vld [vmem:[#allocation2 + $0x68] sm:$0xff]  ;;  %v641_v27 = vld [vmem:[%s776_s20 + $0x38] sm:$0xff]  }
  0x24   : > { %vm258_vm0 = vcmp.ge.f32.partialorder %v242_v33, 1.0  ;;  %vm259_vm1 = vcmp.ge.f32.partialorder %v243_v34, 1.0  ;;  %v246_v41 = vadd.f32 %v230_v35, %v198_v12  ;;  %v247_v42 = vadd.f32 %v231_v36, %v199_v13  ;;  %v640_v12 = vld [vmem:[%s776_s20 + $0x30] sm:$0xff]  }
  0x25   : > { %v788_v44 = vsel %vm258_vm0, 1.0, %v732_v43  ;;  %v791_v45 = vsel %vm259_vm1, 1.0, %v732_v43  ;;  %vm260_vm2 = vcmp.ge.f32.partialorder %v244_v37, 1.0  ;;  %vm261_vm3 = vcmp.ge.f32.partialorder %v245_v38, 1.0 }
  0x26   : > { %v306_v46 = vsub.f32 1.0, %v788_v44  ;;  %v307_v47 = vsub.f32 1.0, %v791_v45  ;;  %v796_v48 = vsel %vm260_vm2, 1.0, %v732_v43  ;;  %v799_v49 = vsel %vm261_vm3, 1.0, %v732_v43 }
  0x27   : > { %v308_v50 = vsub.f32 1.0, %v796_v48  ;;  %v309_v51 = vsub.f32 1.0, %v799_v49  ;;  %vm262_vm4 = vcmp.ge.f32.partialorder %v246_v41, 1.0  ;;  %vm263_vm5 = vcmp.ge.f32.partialorder %v247_v42, 1.0 }
  0x28   : > { %v322_v53 = vmul.f32 %v306_v46, %v242_v33  ;;  %v323_v54 = vmul.f32 %v307_v47, %v243_v34  ;;  %v805_v55 = vsel %vm262_vm4, 1.0, %v732_v43  ;;  %v808_v56 = vsel %vm263_vm5, 1.0, %v732_v43 }
  0x29   : > { %v324_v58 = vmul.f32 %v308_v50, %v244_v37  ;;  %v325_v59 = vmul.f32 %v309_v51, %v245_v38  ;;  %v310_v60 = vsub.f32 1.0, %v805_v55  ;;  %v311_v61 = vsub.f32 1.0, %v808_v56 }
  0x2a   : > { %338 = vst [vmem:[#allocation2] sm:$0xff] %v322_v53  ;;  %339 = vst [vmem:[#allocation2 + $0x8] sm:$0xff] %v323_v54  ;;  %v248_v0 = vadd.f32 %v232_v39, %v200_v19  ;;  %v249_v1 = vadd.f32 %v233_v40, %v201_v20  ;;  %v597_v2 = vunpack.c.l.bf16 %v638_v52  ;;  %v598_v3 = vunpack.c.h.bf16 %v638_v52  ;;  %v208_v40 = vld [vmem:[#allocation2 + $0x70] sm:$0xff] }
  0x2b   : > { %340 = vst [vmem:[#allocation2 + $0x10] sm:$0xff] %v324_v58  ;;  %341 = vst [vmem:[#allocation2 + $0x18] sm:$0xff] %v325_v59  ;;  %v326_v6 = vmul.f32 %v310_v60, %v246_v41  ;;  %v327_v7 = vmul.f32 %v311_v61, %v247_v42  ;;  %v601_v8 = vunpack.c.l.bf16 %v639_v57  ;;  %v221_v16 = vsub.f32 %v602_v9, %v205_v5  ;;  %v209_v41 = vld [vmem:[#allocation2 + $0x78] sm:$0xff] }
  0x2c   : > { %vm264_vm6 = vcmp.ge.f32.partialorder %v248_v0, 1.0  ;;  %vm265_vm7 = vcmp.ge.f32.partialorder %v249_v1, 1.0  ;;  %v218_v10 = vsub.f32 %v597_v2, %v202_v62  ;;  %v219_v11 = vsub.f32 %v598_v3, %v203_v63 }
  0x2d   : > { %342 = vst [vmem:[#allocation2 + $0x20] sm:$0xff] %v326_v6  ;;  %343 = vst [vmem:[#allocation2 + $0x28] sm:$0xff] %v327_v7  ;;  %v815_v13 = vsel %vm264_vm6, 1.0, %v732_v43  ;;  %v818_v14 = vsel %vm265_vm7, 1.0, %v732_v43  ;;  %v220_v15 = vsub.f32 %v601_v8, %v204_v4  ;;  %v237_v24 = vmul.f32 0.5, %v221_v16 }
  0x2e   : > { %v312_v17 = vsub.f32 1.0, %v815_v13  ;;  %v313_v18 = vsub.f32 1.0, %v818_v14  ;;  %v234_v19 = vmul.f32 0.5, %v218_v10  ;;  %v235_v20 = vmul.f32 0.5, %v219_v11 }
  0x2f   : > { %v236_v23 = vmul.f32 0.5, %v220_v15  ;;  %v605_v25 = vunpack.c.l.bf16 %v640_v12  ;;  %v606_v26 = vunpack.c.h.bf16 %v640_v12  ;;  %v253_v33 = vadd.f32 %v237_v24, %v205_v5 }
  0x30   : > { %v328_v28 = vmul.f32 %v312_v17, %v248_v0  ;;  %v329_v29 = vmul.f32 %v313_v18, %v249_v1  ;;  %v250_v30 = vadd.f32 %v234_v19, %v202_v62  ;;  %v251_v31 = vadd.f32 %v235_v20, %v203_v63 }
  0x31   : > { %v252_v32 = vadd.f32 %v236_v23, %v204_v4  ;;  %v222_v34 = vsub.f32 %v605_v25, %v206_v21  ;;  %v223_v35 = vsub.f32 %v606_v26, %v207_v22  ;;  %v609_v36 = vunpack.c.l.bf16 %v641_v27 }
  0x32   : > { %344 = vst [vmem:[#allocation2 + $0x30] sm:$0xff] %v328_v28  ;;  %345 = vst [vmem:[#allocation2 + $0x38] sm:$0xff] %v329_v29  ;;  %vm266_vm8 = vcmp.ge.f32.partialorder %v250_v30, 1.0  ;;  %vm267_vm9 = vcmp.ge.f32.partialorder %v251_v31, 1.0  ;;  %v610_v37 = vunpack.c.h.bf16 %v641_v27  ;;  %vm269_vm11 = vcmp.ge.f32.partialorder %v253_v33, 1.0 }
  0x33   : > { %v537_v38 = vsel %vm266_vm8, 1.0, %v732_v43  ;;  %v538_v39 = vsel %vm267_vm9, 1.0, %v732_v43  ;;  %vm268_vm10 = vcmp.ge.f32.partialorder %v252_v32, 1.0  ;;  %v540_v50 = vsel %vm269_vm11, 1.0, %v732_v43 }
  0x34   : > { %v314_v42 = vsub.f32 1.0, %v537_v38  ;;  %v315_v46 = vsub.f32 1.0, %v538_v39  ;;  %v539_v47 = vsel %vm268_vm10, 1.0, %v732_v43  ;;  %v317_v52 = vsub.f32 1.0, %v540_v50 }
  0x35   : > { %v316_v51 = vsub.f32 1.0, %v539_v47  ;;  %v238_v53 = vmul.f32 0.5, %v222_v34  ;;  %v239_v54 = vmul.f32 0.5, %v223_v35  ;;  %v224_v59 = vsub.f32 %v609_v36, %v208_v40 }
  0x36   : > { %v330_v57 = vmul.f32 %v314_v42, %v250_v30  ;;  %v331_v58 = vmul.f32 %v315_v46, %v251_v31  ;;  %v225_v60 = vsub.f32 %v610_v37, %v209_v41  ;;  %v333_v62 = vmul.f32 %v317_v52, %v253_v33 }
  0x37   : > { %v332_v61 = vmul.f32 %v316_v51, %v252_v32  ;;  %v254_v63 = vadd.f32 %v238_v53, %v206_v21  ;;  %v255_v0 = vadd.f32 %v239_v54, %v207_v22  ;;  %v240_v1 = vmul.f32 0.5, %v224_v59 }
  0x38   : > { %346 = vst [vmem:[#allocation2 + $0x40] sm:$0xff] %v330_v57  ;;  %347 = vst [vmem:[#allocation2 + $0x48] sm:$0xff] %v331_v58  ;;  %v241_v2 = vmul.f32 0.5, %v225_v60  ;;  %v612_v3 = vpack.c.bf16 %v791_v45, %v788_v44  ;;  %v615_v4 = vpack.c.bf16 %v799_v49, %v796_v48  ;;  %v618_v5 = vpack.c.bf16 %v808_v56, %v805_v55 }
  0x39   : > { %348 = vst [vmem:[#allocation2 + $0x50] sm:$0xff] %v332_v61  ;;  %349 = vst [vmem:[#allocation2 + $0x58] sm:$0xff] %v333_v62  ;;  %vm270_vm12 = vcmp.ge.f32.partialorder %v254_v63, 1.0  ;;  %vm271_vm13 = vcmp.ge.f32.partialorder %v255_v0, 1.0  ;;  %v621_v6 = vpack.c.bf16 %v818_v14, %v815_v13  ;;  %v256_v44 = vadd.f32 %v240_v1, %v208_v40 }
  0x3a   : > { %v541_v7 = vsel %vm270_vm12, 1.0, %v732_v43  ;;  %v542_v8 = vsel %vm271_vm13, 1.0, %v732_v43  ;;  %v257_v45 = vadd.f32 %v241_v2, %v209_v41  ;;  %613 = vst [vmem:[%s781_s24] sm:$0xff] %v612_v3   ;;  %642 = vst [vmem:[%s781_s24 + $0x8] sm:$0xff] %v615_v4   ;;  %v624_v9 = vpack.c.bf16 %v538_v39, %v537_v38 }
  0x3b   : > { %v318_v48 = vsub.f32 1.0, %v541_v7  ;;  %v319_v49 = vsub.f32 1.0, %v542_v8  ;;  %643 = vst [vmem:[%s781_s24 + $0x10] sm:$0xff] %v618_v5   ;;  %644 = vst [vmem:[%s781_s24 + $0x18] sm:$0xff] %v621_v6   ;;  %v627_v55 = vpack.c.bf16 %v540_v50, %v539_v47  ;;  %vm272_vm14 = vcmp.ge.f32.partialorder %v256_v44, 1.0 }
  0x3c   : > { %vm273_vm15 = vcmp.ge.f32.partialorder %v257_v45, 1.0  ;;  %v630_v56 = vpack.c.bf16 %v542_v8, %v541_v7  ;;  %v543_v12 = vsel %vm272_vm14, 1.0, %v732_v43  ;;  %645 = vst [vmem:[%s781_s24 + $0x20] sm:$0xff] %v624_v9  }
  0x3d   : > { %v334_v10 = vmul.f32 %v318_v48, %v254_v63  ;;  %v335_v11 = vmul.f32 %v319_v49, %v255_v0  ;;  %v544_v13 = vsel %vm273_vm15, 1.0, %v732_v43  ;;  %646 = vst [vmem:[%s781_s24 + $0x28] sm:$0xff] %v627_v55   ;;  %v320_v14 = vsub.f32 1.0, %v543_v12 }
  0x3e   : > { %v321_v15 = vsub.f32 1.0, %v544_v13  ;;  %647 = vst [vmem:[%s781_s24 + $0x30] sm:$0xff] %v630_v56   ;;  %v633_v16 = vpack.c.bf16 %v544_v13, %v543_v12 }
  0x3f   : > { %350 = vst [vmem:[#allocation2 + $0x60] sm:$0xff] %v334_v10  ;;  %351 = vst [vmem:[#allocation2 + $0x68] sm:$0xff] %v335_v11  ;;  %v336_v17 = vmul.f32 %v320_v14, %v256_v44 }
  0x40   : > { %v337_v18 = vmul.f32 %v321_v15, %v257_v45  ;;  %648 = vst [vmem:[%s781_s24 + $0x38] sm:$0xff] %v633_v16  }
  0x41   : > { %352 = vst [vmem:[#allocation2 + $0x70] sm:$0xff] %v336_v17 }
  0x42   : > { %353 = vst [vmem:[#allocation2 + $0x78] sm:$0xff] %v337_v18 }
  0x43 PF: > { %s11_s10 = sadd.s32 1, %s729_s10   ;;  %s864_s6 = smov %s721_s8 }
  0x44   : > { %p8_p8 = scmp.ge.s32.totalorder %s11_s10, 6   ;;  %s865_s7 = smov %s725_s9 }
  0x45   : > { %s866_s8 = smov %s869_s11  ;;  %s867_s9 = smov %s873_s12 }
  0x46   :  { %10 = sbr.rel (!%p8_p8) target bundleno = 3 (0x3), region = 58 }

// kernel: spikeformer_forward.8
= control target key start
LH: loop header
LB: loop body
LE: loop exit
PB: predicated region body
PF: predicated region fallthrough
CT: control target
= control target key end

     0   :  { %s1308_s12 = smov 0   ;;  %s1310_s13 = smov 0   ;;  %s1557_s0 = inlined_call_operand.vmem [shape: bf16[512,128], index: 0, kind: input, shape index: {}]   ;;  %s1558_s1 = inlined_call_operand.vmem [shape: bf16[128,64], index: 1, kind: input, shape index: {}]   ;;  %s1559_s2 = inlined_call_operand.vmem [shape: f32[1,64], index: 2, kind: input, shape index: {}]   ;;  %s1560_s3 = inlined_call_operand.vmem [shape: bf16[512,64], index: 3, kind: output, shape index: {}]  }
   0x1   :  { %s1312_s14 = smov 0  }
   0x2 LB: > { %s25_s15 = sadd.s32 1, %s1281_s13  ;;  %p1030_p0 = scmp.ge.s32.totalorder %s1285_s14, 1  ;;  %s1285_s14 = sphi %s1312_s14, %s13_s14   ;;  %s1281_s13 = sphi %s1310_s13, %s1562_s13   ;;  %s1277_s12 = sphi %s1308_s12, %s1561_s12  }
   0x3   : > { %p27_p1 = scmp.ge.s32.totalorder %s25_s15, 2  ;;  %p166_p2 = scmp.lt.s32.totalorder %s1285_s14, 3 }
   0x5   : > { %s1564_s15 = smov (%p27_p1, %s25_s15), 0  ;;  %p167_p3 = pnand %p1030_p0, %p166_p2 }
   0x6   : > { %v1239_v0 = vld [vmem:[%s1558_s1] sm:$0xff] (!%p167_p3)   ;;  %s1031_s18 = sshll.u32 (!%p167_p3), %s1277_s12, 5  ;;  %v1240_v1 = vld [vmem:[%s1558_s1 + $0x8] sm:$0xff] (!%p167_p3)   ;;  %vm224_vm0 = vcmask (!%p167_p3), 523264   ;;  %v1241_v2 = vld [vmem:[%s1558_s1 + $0x10] sm:$0xff] (!%p167_p3)   ;;  %v1287_v3 = vmov (!%p167_p3), 0.0  }
   0x7   : > { %170 = sbr.rel (%p167_p3) target bundleno = 297 (0x129), region = 32  ;;  %p199_p4 = scmp.lt.s32.totalorder (!%p167_p3), %s1031_s18, 63  ;;  %1150 = vmatprep.subr.bf16.mxu0 (!%p167_p3), %v1239_v0  ;;  %1198 = vmatprep.subr.bf16.mxu1 (!%p167_p3), %v1239_v0  ;;  %227 = vst.msk [vmem:[#allocation2 + $0x10] sm:$0xff] (!%p167_p3), %vm224_vm0, %v1287_v3  ;;  %225 = vst.msk [vmem:[#allocation2] sm:$0xff] (!%p167_p3), %vm224_vm0, %v1287_v3  ;;  %v1242_v4 = vld [vmem:[%s1558_s1 + $0x18] sm:$0xff] (!%p167_p3)   ;;  %v1243_v7 = vld [vmem:[%s1558_s1 + $0x20] sm:$0xff] (!%p167_p3)  }
   0x8   : > { %1151 = vmatpush3.bf16.msra.mxu0 (!%p167_p3), %v1239_v0  ;;  %1206 = vmatpush3.bf16.msra.mxu1 (!%p167_p3), %v1239_v0  ;;  %226 = vst.msk [vmem:[#allocation2 + $0x8] sm:$0xff] (!%p167_p3), %vm224_vm0, %v1287_v3  ;;  %228 = vst.msk [vmem:[#allocation2 + $0x18] sm:$0xff] (!%p167_p3), %vm224_vm0, %v1287_v3  ;;  %v1244_v8 = vld [vmem:[%s1558_s1 + $0x28] sm:$0xff] (!%p167_p3)   ;;  %v1245_v9 = vld [vmem:[%s1558_s1 + $0x30] sm:$0xff] (!%p167_p3)   ;;  %vm909_vm1 = vcmask (!%p167_p3), 519168  }
   0x9   : > { %1152 = vmatprep.subr.bf16.mxu0 (!%p167_p3), %v1240_v1  ;;  %1199 = vmatprep.subr.bf16.mxu1 (!%p167_p3), %v1240_v1  ;;  %229 = vst.msk [vmem:[#allocation2 + $0x20] sm:$0xff] (!%p167_p3), %vm224_vm0, %v1287_v3  ;;  %230 = vst.msk [vmem:[#allocation2 + $0x28] sm:$0xff] (!%p167_p3), %vm224_vm0, %v1287_v3  ;;  %v1246_v10 = vld [vmem:[%s1558_s1 + $0x38] sm:$0xff] (!%p167_p3)   ;;  %v1419_v53 = vld [vmem:[%s1559_s2] ss:$0 sm:$0xff] (!%p167_p3) }
   0xa   : > { %231 = vst.msk [vmem:[#allocation2 + $0x30] sm:$0xff] (!%p167_p3), %vm224_vm0, %v1287_v3  ;;  %232 = vst.msk [vmem:[#allocation2 + $0x38] sm:$0xff] (!%p167_p3), %vm224_vm0, %v1287_v3 }
   0xb   : > { %233 = vst.msk [vmem:[#allocation2 + $0x40] sm:$0xff] (!%p167_p3), %vm224_vm0, %v1287_v3  ;;  %234 = vst.msk [vmem:[#allocation2 + $0x48] sm:$0xff] (!%p167_p3), %vm224_vm0, %v1287_v3 }
   0xc   : > { %235 = vst.msk [vmem:[#allocation2 + $0x50] sm:$0xff] (!%p167_p3), %vm224_vm0, %v1287_v3  ;;  %236 = vst.msk [vmem:[#allocation2 + $0x58] sm:$0xff] (!%p167_p3), %vm224_vm0, %v1287_v3  ;;  %1153 = vmatpush3.bf16.msra.mxu0 (!%p167_p3), %v1240_v1  ;;  %1207 = vmatpush3.bf16.msra.mxu1 (!%p167_p3), %v1240_v1 }
   0xd   : > { %237 = vst.msk [vmem:[#allocation2 + $0x60] sm:$0xff] (!%p167_p3), %vm224_vm0, %v1287_v3  ;;  %238 = vst.msk [vmem:[#allocation2 + $0x68] sm:$0xff] (!%p167_p3), %vm224_vm0, %v1287_v3  ;;  %1154 = vmatprep.subr.bf16.mxu0 (!%p167_p3), %v1241_v2  ;;  %1200 = vmatprep.subr.bf16.mxu1 (!%p167_p3), %v1241_v2 }
   0xe   : > { %s1566_s18 = smov (!%p199_p4, %s1031_s18), 63  ;;  %239 = vst.msk [vmem:[#allocation2 + $0x70] sm:$0xff] %vm224_vm0, %v1287_v3  ;;  %240 = vst.msk [vmem:[#allocation2 + $0x78] sm:$0xff] %vm224_vm0, %v1287_v3  ;;  %v259_v25 = vld [vmem:[#allocation2 + $0x10] sm:$0xff]  ;;  %v257_v27 = vld [vmem:[#allocation2] sm:$0xff] }
   0xf   : > { %s1032_s23 = sshll.u32 %s1566_s18, 2  ;;  %241 = vst.msk [vmem:[#allocation2 + $0x80] sm:$0xff] %vm224_vm0, %v1287_v3  ;;  %242 = vst.msk [vmem:[#allocation2 + $0x88] sm:$0xff] %vm224_vm0, %v1287_v3  ;;  %v260_v31 = vld [vmem:[#allocation2 + $0x18] sm:$0xff]  ;;  %v258_v37 = vld [vmem:[#allocation2 + $0x8] sm:$0xff] }
  0x10   : > { %243 = vst.msk [vmem:[#allocation2 + $0x90] sm:$0xff] %vm224_vm0, %v1287_v3  ;;  %244 = vst.msk [vmem:[#allocation2 + $0x98] sm:$0xff] %vm224_vm0, %v1287_v3  ;;  %s1375_s26 = scalar_lea.vmem %s1557_s0, %s1032_s23  ;;  %1155 = vmatpush3.bf16.msra.mxu0 %v1241_v2  ;;  %1208 = vmatpush3.bf16.msra.mxu1 %v1241_v2  ;;  %v261_v51 = vld [vmem:[#allocation2 + $0x20] sm:$0xff]  ;;  %v262_v62 = vld [vmem:[#allocation2 + $0x28] sm:$0xff]  ;;  %s1430_s17 = scalar_lea.vmem %s1560_s3, %s1032_s23 }
  0x11   : > { %245 = vst.msk [vmem:[#allocation2 + $0xa0] sm:$0xff] %vm224_vm0, %v1287_v3  ;;  %246 = vst.msk [vmem:[#allocation2 + $0xa8] sm:$0xff] %vm224_vm0, %v1287_v3  ;;  %v1247_v5 = vld [vmem:[%s1375_s26] sm:$0xff]   ;;  %1156 = vmatprep.subr.bf16.mxu0 %v1242_v4  ;;  %1201 = vmatprep.subr.bf16.mxu1 %v1242_v4  ;;  %v1249_v11 = vld [vmem:[%s1375_s26 + $0x8] sm:$0xff]  }
  0x12   : > { %247 = vst.msk [vmem:[#allocation2 + $0xb0] sm:$0xff] %vm224_vm0, %v1287_v3  ;;  %248 = vst.msk [vmem:[#allocation2 + $0xb8] sm:$0xff] %vm224_vm0, %v1287_v3  ;;  %v1248_v6 = vld [vmem:[%s1375_s26 + $0x40] sm:$0xff]   ;;  %1166 = vmatprep.mubr.bf16.mxu0 %v1247_v5  ;;  %v1250_v12 = vld [vmem:[%s1375_s26 + $0x48] sm:$0xff]  }
  0x13   : > { %249 = vst.msk [vmem:[#allocation2 + $0xc0] sm:$0xff] %vm224_vm0, %v1287_v3  ;;  %250 = vst.msk [vmem:[#allocation2 + $0xc8] sm:$0xff] %vm224_vm0, %v1287_v3  ;;  %1182 = vmatprep.mubr.bf16.mxu1 %v1248_v6  ;;  %v1251_v13 = vld [vmem:[%s1375_s26 + $0x10] sm:$0xff]   ;;  %v1253_v15 = vld [vmem:[%s1375_s26 + $0x18] sm:$0xff]  }
  0x14   : > { %251 = vst.msk [vmem:[#allocation2 + $0xd0] sm:$0xff] %vm224_vm0, %v1287_v3  ;;  %252 = vst.msk [vmem:[#allocation2 + $0xd8] sm:$0xff] %vm224_vm0, %v1287_v3  ;;  %1157 = vmatpush3.bf16.msra.mxu0 %v1242_v4  ;;  %1209 = vmatpush3.bf16.msra.mxu1 %v1242_v4  ;;  %v1252_v14 = vld [vmem:[%s1375_s26 + $0x50] sm:$0xff]   ;;  %v1254_v16 = vld [vmem:[%s1375_s26 + $0x58] sm:$0xff]  }
  0x15   : > { %253 = vst.msk [vmem:[#allocation2 + $0xe0] sm:$0xff] %vm224_vm0, %v1287_v3  ;;  %254 = vst.msk [vmem:[#allocation2 + $0xe8] sm:$0xff] %vm224_vm0, %v1287_v3  ;;  %1158 = vmatprep.subr.bf16.mxu0 %v1243_v7  ;;  %1202 = vmatprep.subr.bf16.mxu1 %v1243_v7  ;;  %v1255_v17 = vld [vmem:[%s1375_s26 + $0x20] sm:$0xff]   ;;  %v1257_v19 = vld [vmem:[%s1375_s26 + $0x28] sm:$0xff]  }
  0x16   : > { %255 = vst.msk [vmem:[#allocation2 + $0xf0] sm:$0xff] %vm224_vm0, %v1287_v3  ;;  %256 = vst.msk [vmem:[#allocation2 + $0xf8] sm:$0xff] %vm224_vm0, %v1287_v3  ;;  %v1256_v18 = vld [vmem:[%s1375_s26 + $0x60] sm:$0xff]   ;;  %v1258_v20 = vld [vmem:[%s1375_s26 + $0x68] sm:$0xff]  }
  0x17   : > { %v1259_v21 = vld [vmem:[%s1375_s26 + $0x30] sm:$0xff]   ;;  %v1261_v23 = vld [vmem:[%s1375_s26 + $0x38] sm:$0xff]   ;;  %v273_v28 = vld [vmem:[#allocation2 + $0x80] sm:$0xff] }
  0x18   : > { %1159 = vmatpush3.bf16.msra.mxu0 %v1243_v7  ;;  %1210 = vmatpush3.bf16.msra.mxu1 %v1243_v7  ;;  %v1260_v22 = vld [vmem:[%s1375_s26 + $0x70] sm:$0xff]   ;;  %v1262_v24 = vld [vmem:[%s1375_s26 + $0x78] sm:$0xff]   ;;  %v274_v38 = vld [vmem:[#allocation2 + $0x88] sm:$0xff] }
  0x19   : > { %1160 = vmatprep.subr.bf16.mxu0 %v1244_v8  ;;  %1203 = vmatprep.subr.bf16.mxu1 %v1244_v8  ;;  %v275_v26 = vld [vmem:[#allocation2 + $0x90] sm:$0xff]  ;;  %v276_v32 = vld [vmem:[#allocation2 + $0x98] sm:$0xff]  ;;  %v277_v52 = vld [vmem:[#allocation2 + $0xa0] sm:$0xff] }
  0x1a   : > { %v263_v49 = vld [vmem:[#allocation2 + $0x30] sm:$0xff]  ;;  %v264_v56 = vld [vmem:[#allocation2 + $0x38] sm:$0xff]  ;;  %v278_v63 = vld [vmem:[#allocation2 + $0xa8] sm:$0xff] }
  0x1b   : > { %v279_v50 = vld [vmem:[#allocation2 + $0xb0] sm:$0xff]  ;;  %v280_v57 = vld [vmem:[#allocation2 + $0xb8] sm:$0xff] }
  0x1c   : > { %1161 = vmatpush3.bf16.msra.mxu0 %v1244_v8  ;;  %1211 = vmatpush3.bf16.msra.mxu1 %v1244_v8 }
  0x1d   : > { %1162 = vmatprep.subr.bf16.mxu0 %v1245_v9  ;;  %1204 = vmatprep.subr.bf16.mxu1 %v1245_v9 }
  0x20   : > { %1163 = vmatpush3.bf16.msra.mxu0 %v1245_v9  ;;  %1212 = vmatpush3.bf16.msra.mxu1 %v1245_v9 }
  0x21   : > { %1164 = vmatprep.subr.bf16.mxu0 %v1246_v10  ;;  %1205 = vmatprep.subr.bf16.mxu1 %v1246_v10 }
  0x24   : > { %1165 = vmatpush3.bf16.msra.mxu0 %v1246_v10  ;;  %1213 = vmatpush3.bf16.msra.mxu1 %v1246_v10 }
  0x27   : > { %1167 = vmatmul.mubr.bf16.vlgmr.msra.gmra.mrb[0].mxu0 %v1249_v11  ;;  %1183 = vmatmul.mubr.bf16.vlgmr.msra.gmra.mrb[0].mxu1 %v1250_v12 }
  0x28   : > { %1170 = vmatprep.mubr.bf16.mxu0 %v1251_v13  ;;  %1186 = vmatprep.mubr.bf16.mxu1 %v1252_v14 }
  0x2f   : > { %1171 = vmatmul.mubr.bf16.gmra.mrb[4].mxu0 %v1253_v15  ;;  %1187 = vmatmul.mubr.bf16.gmra.mrb[4].mxu1 %v1254_v16 }
  0x30   : > { %1174 = vmatprep.mubr.bf16.mxu0 %v1255_v17  ;;  %1190 = vmatprep.mubr.bf16.mxu1 %v1256_v18 }
  0x37   : > { %1175 = vmatmul.mubr.bf16.gmra.mrb[8].mxu0 %v1257_v19  ;;  %1191 = vmatmul.mubr.bf16.gmra.mrb[8].mxu1 %v1258_v20 }
  0x38   : > { %1178 = vmatprep.mubr.bf16.mxu0 %v1259_v21  ;;  %1194 = vmatprep.mubr.bf16.mxu1 %v1260_v22 }
  0x3f   : > { %1179 = vmatmul.mubr.bf16.gmra.mrb[12].mxu0 %v1261_v23  ;;  %1195 = vmatmul.mubr.bf16.gmra.mrb[12].mxu1 %v1262_v24 }
  0xfa   : > { %v1168_v29 = vpop.f32.mrb[0].mxu0  ;;  %v1184_v30 = vpop.f32.mrb[0].mxu1 }
  0xfb   : > { %v644_v33 = vadd.f32 %v1168_v29, %v259_v25  ;;  %v660_v34 = vadd.f32 %v1184_v30, %v275_v26  ;;  %v515_v35 = vpop.f32.mrb[1].mxu0  ;;  %v579_v36 = vpop.f32.mrb[1].mxu1  ;;  %v267_v30 = vld [vmem:[#allocation2 + $0x50] sm:$0xff] }
  0xfc   : > { %v642_v39 = vadd.f32 %v515_v35, %v257_v27  ;;  %v658_v40 = vadd.f32 %v579_v36, %v273_v28  ;;  %v1169_v41 = vpop.f32.mrb[2].mxu0  ;;  %v1185_v42 = vpop.f32.mrb[2].mxu1  ;;  %v281_v35 = vld [vmem:[#allocation2 + $0xc0] sm:$0xff] }
  0xfd   : > { %677 = vst.msk [vmem:[#allocation2 + $0x10] sm:$0xff] %vm224_vm0, %v644_v33  ;;  %693 = vst.msk [vmem:[#allocation2 + $0x90] sm:$0xff] %vm224_vm0, %v660_v34  ;;  %v645_v43 = vadd.f32 %v1169_v41, %v260_v31  ;;  %v661_v44 = vadd.f32 %v1185_v42, %v276_v32  ;;  %v518_v45 = vpop.f32.mrb[3].mxu0  ;;  %v582_v46 = vpop.f32.mrb[3].mxu1  ;;  %v283_v31 = vld [vmem:[#allocation2 + $0xd0] sm:$0xff]  ;;  %v265_v34 = vld [vmem:[#allocation2 + $0x40] sm:$0xff] }
  0xfe   : > { %675 = vst.msk [vmem:[#allocation2] sm:$0xff] %vm224_vm0, %v642_v39  ;;  %691 = vst.msk [vmem:[#allocation2 + $0x80] sm:$0xff] %vm224_vm0, %v658_v40  ;;  %v643_v47 = vadd.f32 %v518_v45, %v258_v37  ;;  %v659_v48 = vadd.f32 %v582_v46, %v274_v38  ;;  %v268_v40 = vld [vmem:[#allocation2 + $0x58] sm:$0xff]  ;;  %v266_v46 = vld [vmem:[#allocation2 + $0x48] sm:$0xff] }
  0xff   : > { %678 = vst.msk [vmem:[#allocation2 + $0x18] sm:$0xff] %vm224_vm0, %v645_v43  ;;  %694 = vst.msk [vmem:[#allocation2 + $0x98] sm:$0xff] %vm224_vm0, %v661_v44  ;;  %v284_v41 = vld [vmem:[#allocation2 + $0xd8] sm:$0xff] }
 0x100   : > { %676 = vst.msk [vmem:[#allocation2 + $0x8] sm:$0xff] %vm224_vm0, %v643_v47  ;;  %692 = vst.msk [vmem:[#allocation2 + $0x88] sm:$0xff] %vm224_vm0, %v659_v48  ;;  %v282_v47 = vld [vmem:[#allocation2 + $0xc8] sm:$0xff] }
 0x102   : > { %v1172_v54 = vpop.f32.mrb[4].mxu0  ;;  %v1188_v55 = vpop.f32.mrb[4].mxu1 }
 0x103   : > { %v648_v58 = vadd.f32 %v1172_v54, %v263_v49  ;;  %v664_v59 = vadd.f32 %v1188_v55, %v279_v50  ;;  %v531_v60 = vpop.f32.mrb[5].mxu0  ;;  %v595_v61 = vpop.f32.mrb[5].mxu1 }
 0x104   : > { %v712_v0 = vld [vmem:[#allocation2 + $0x10] sm:$0xff]  ;;  %v646_v2 = vadd.f32 %v531_v60, %v261_v51  ;;  %v662_v3 = vadd.f32 %v595_v61, %v277_v52  ;;  %v1173_v4 = vpop.f32.mrb[6].mxu0  ;;  %v1189_v5 = vpop.f32.mrb[6].mxu1 }
 0x105   : > { %v728_v1 = vld [vmem:[#allocation2 + $0x90] sm:$0xff]  ;;  %v751_v6 = vadd.f32 %v1419_v53, %v712_v0  ;;  %v710_v8 = vld [vmem:[#allocation2] sm:$0xff]  ;;  %681 = vst.msk [vmem:[#allocation2 + $0x30] sm:$0xff] %vm224_vm0, %v648_v58  ;;  %697 = vst.msk [vmem:[#allocation2 + $0xb0] sm:$0xff] %vm224_vm0, %v664_v59  ;;  %v649_v10 = vadd.f32 %v1173_v4, %v264_v56  ;;  %v665_v11 = vadd.f32 %v1189_v5, %v280_v57  ;;  %v534_v12 = vpop.f32.mrb[7].mxu0  ;;  %v598_v13 = vpop.f32.mrb[7].mxu1 }
 0x106   : > { %v767_v7 = vadd.f32 %v1419_v53, %v728_v1  ;;  %v726_v9 = vld [vmem:[#allocation2 + $0x80] sm:$0xff]  ;;  %v749_v14 = vadd.f32 %v1419_v53, %v710_v8  ;;  %v713_v16 = vld [vmem:[#allocation2 + $0x18] sm:$0xff]  ;;  %679 = vst.msk [vmem:[#allocation2 + $0x20] sm:$0xff] %vm224_vm0, %v646_v2  ;;  %695 = vst.msk [vmem:[#allocation2 + $0xa0] sm:$0xff] %vm224_vm0, %v662_v3  ;;  %v647_v18 = vadd.f32 %v534_v12, %v262_v62 }
 0x107   : > { %v765_v15 = vadd.f32 %v1419_v53, %v726_v9  ;;  %v729_v17 = vld [vmem:[#allocation2 + $0x98] sm:$0xff]  ;;  %v663_v19 = vadd.f32 %v598_v13, %v278_v63  ;;  %v1096_v20 = vpack.c.bf16 %v751_v6, %v751_v6  ;;  %v752_v22 = vadd.f32 %v1419_v53, %v713_v16  ;;  %v711_v24 = vld [vmem:[#allocation2 + $0x8] sm:$0xff]  ;;  %682 = vst.msk [vmem:[#allocation2 + $0x38] sm:$0xff] %vm224_vm0, %v649_v10  ;;  %v287_v16 = vld [vmem:[#allocation2 + $0xf0] sm:$0xff] }
 0x108   : > { %v1112_v21 = vpack.c.bf16 %v767_v7, %v767_v7  ;;  %v768_v23 = vadd.f32 %v1419_v53, %v729_v17  ;;  %v727_v25 = vld [vmem:[#allocation2 + $0x88] sm:$0xff]  ;;  %698 = vst.msk [vmem:[#allocation2 + $0xb8] sm:$0xff] %vm224_vm0, %v665_v11  ;;  %v1094_v26 = vpack.c.bf16 %v749_v14, %v749_v14  ;;  %v750_v28 = vadd.f32 %v1419_v53, %v711_v24 }
 0x109   : > { %v1110_v27 = vpack.c.bf16 %v765_v15, %v765_v15  ;;  %v766_v29 = vadd.f32 %v1419_v53, %v727_v25  ;;  %680 = vst.msk [vmem:[#allocation2 + $0x28] sm:$0xff] %vm224_vm0, %v647_v18  ;;  %696 = vst.msk [vmem:[#allocation2 + $0xa8] sm:$0xff] %vm224_vm0, %v663_v19  ;;  %v1097_v32 = vpack.c.bf16 %v752_v22, %v752_v22  ;;  %v271_v15 = vld [vmem:[#allocation2 + $0x70] sm:$0xff]  ;;  %v269_v19 = vld [vmem:[#allocation2 + $0x60] sm:$0xff] }
 0x10a   : > { %912 = vst.msk [vmem:[%s1430_s17 + $0x8] sm:$0xf] %vm909_vm1, %v1096_v20  ;;  %928 = vst.msk [vmem:[%s1430_s17 + $0x48] sm:$0xf] %vm909_vm1, %v1112_v21  ;;  %v1113_v33 = vpack.c.bf16 %v768_v23, %v768_v23  ;;  %v1095_v36 = vpack.c.bf16 %v750_v28, %v750_v28  ;;  %v1176_v38 = vpop.f32.mrb[8].mxu0  ;;  %v1192_v39 = vpop.f32.mrb[8].mxu1 }
 0x10b   : > { %910 = vst.msk [vmem:[%s1430_s17] sm:$0xf] %vm909_vm1, %v1094_v26  ;;  %926 = vst.msk [vmem:[%s1430_s17 + $0x40] sm:$0xf] %vm909_vm1, %v1110_v27  ;;  %v1111_v37 = vpack.c.bf16 %v766_v29, %v766_v29  ;;  %v652_v42 = vadd.f32 %v1176_v38, %v267_v30  ;;  %v668_v43 = vadd.f32 %v1192_v39, %v283_v31  ;;  %v547_v44 = vpop.f32.mrb[9].mxu0  ;;  %v611_v45 = vpop.f32.mrb[9].mxu1 }
 0x10c   : > { %913 = vst.msk [vmem:[%s1430_s17 + $0xc] sm:$0xf] %vm909_vm1, %v1097_v32  ;;  %929 = vst.msk [vmem:[%s1430_s17 + $0x4c] sm:$0xf] %vm909_vm1, %v1113_v33  ;;  %v716_v48 = vld [vmem:[#allocation2 + $0x30] sm:$0xff]  ;;  %v650_v50 = vadd.f32 %v547_v44, %v265_v34  ;;  %v666_v51 = vadd.f32 %v611_v45, %v281_v35  ;;  %v1177_v52 = vpop.f32.mrb[10].mxu0 }
 0x10d   : > { %911 = vst.msk [vmem:[%s1430_s17 + $0x4] sm:$0xf] %vm909_vm1, %v1095_v36  ;;  %927 = vst.msk [vmem:[%s1430_s17 + $0x44] sm:$0xf] %vm909_vm1, %v1111_v37  ;;  %v732_v49 = vld [vmem:[#allocation2 + $0xb0] sm:$0xff]  ;;  %v1193_v54 = vpop.f32.mrb[10].mxu1  ;;  %v755_v55 = vadd.f32 %v1419_v53, %v716_v48  ;;  %v653_v59 = vadd.f32 %v1177_v52, %v268_v40 }
 0x10e   : > { %v771_v56 = vadd.f32 %v1419_v53, %v732_v49  ;;  %v714_v57 = vld [vmem:[#allocation2 + $0x20] sm:$0xff]  ;;  %685 = vst.msk [vmem:[#allocation2 + $0x50] sm:$0xff] %vm224_vm0, %v652_v42  ;;  %701 = vst.msk [vmem:[#allocation2 + $0xd0] sm:$0xff] %vm224_vm0, %v668_v43  ;;  %v669_v60 = vadd.f32 %v1193_v54, %v284_v41  ;;  %v550_v61 = vpop.f32.mrb[11].mxu0  ;;  %v614_v62 = vpop.f32.mrb[11].mxu1  ;;  %v717_v1 = vld [vmem:[#allocation2 + $0x38] sm:$0xff] }
 0x10f   : > { %v730_v58 = vld [vmem:[#allocation2 + $0xa0] sm:$0xff]  ;;  %v753_v63 = vadd.f32 %v1419_v53, %v714_v57  ;;  %v733_v2 = vld [vmem:[#allocation2 + $0xb8] sm:$0xff]  ;;  %683 = vst.msk [vmem:[#allocation2 + $0x40] sm:$0xff] %vm224_vm0, %v650_v50  ;;  %699 = vst.msk [vmem:[#allocation2 + $0xc0] sm:$0xff] %vm224_vm0, %v666_v51  ;;  %v651_v3 = vadd.f32 %v550_v61, %v266_v46  ;;  %v667_v4 = vadd.f32 %v614_v62, %v282_v47 }
 0x110   : > { %v769_v0 = vadd.f32 %v1419_v53, %v730_v58  ;;  %v1100_v5 = vpack.c.bf16 %v755_v55, %v755_v55  ;;  %v1116_v6 = vpack.c.bf16 %v771_v56, %v771_v56  ;;  %v756_v7 = vadd.f32 %v1419_v53, %v717_v1  ;;  %v715_v9 = vld [vmem:[#allocation2 + $0x28] sm:$0xff]  ;;  %686 = vst.msk [vmem:[#allocation2 + $0x58] sm:$0xff] %vm224_vm0, %v653_v59  ;;  %v285_v20 = vld [vmem:[#allocation2 + $0xe0] sm:$0xff]  ;;  %v272_v25 = vld [vmem:[#allocation2 + $0x78] sm:$0xff] }
 0x111   : > { %v772_v8 = vadd.f32 %v1419_v53, %v733_v2  ;;  %v731_v10 = vld [vmem:[#allocation2 + $0xa8] sm:$0xff]  ;;  %702 = vst.msk [vmem:[#allocation2 + $0xd8] sm:$0xff] %vm224_vm0, %v669_v60  ;;  %v1098_v11 = vpack.c.bf16 %v753_v63, %v753_v63  ;;  %v754_v13 = vadd.f32 %v1419_v53, %v715_v9  ;;  %684 = vst.msk [vmem:[#allocation2 + $0x48] sm:$0xff] %vm224_vm0, %v651_v3  ;;  %v288_v26 = vld [vmem:[#allocation2 + $0xf8] sm:$0xff] }
 0x112   : > { %v1114_v12 = vpack.c.bf16 %v769_v0, %v769_v0  ;;  %v770_v14 = vadd.f32 %v1419_v53, %v731_v10  ;;  %700 = vst.msk [vmem:[#allocation2 + $0xc8] sm:$0xff] %vm224_vm0, %v667_v4  ;;  %v1101_v17 = vpack.c.bf16 %v756_v7, %v756_v7  ;;  %v1180_v23 = vpop.f32.mrb[12].mxu0  ;;  %v1196_v24 = vpop.f32.mrb[12].mxu1  ;;  %v270_v31 = vld [vmem:[#allocation2 + $0x68] sm:$0xff] }
 0x113   : > { %916 = vst.msk [vmem:[%s1430_s17 + $0x18] sm:$0xf] %vm909_vm1, %v1100_v5  ;;  %932 = vst.msk [vmem:[%s1430_s17 + $0x58] sm:$0xf] %vm909_vm1, %v1116_v6  ;;  %v1117_v18 = vpack.c.bf16 %v772_v8, %v772_v8  ;;  %v1099_v21 = vpack.c.bf16 %v754_v13, %v754_v13  ;;  %v656_v27 = vadd.f32 %v1180_v23, %v271_v15  ;;  %v563_v29 = vpop.f32.mrb[13].mxu0  ;;  %v627_v30 = vpop.f32.mrb[13].mxu1 }
 0x114   : > { %914 = vst.msk [vmem:[%s1430_s17 + $0x10] sm:$0xf] %vm909_vm1, %v1098_v11  ;;  %930 = vst.msk [vmem:[%s1430_s17 + $0x50] sm:$0xf] %vm909_vm1, %v1114_v12  ;;  %v1115_v22 = vpack.c.bf16 %v770_v14, %v770_v14  ;;  %v672_v28 = vadd.f32 %v1196_v24, %v287_v16  ;;  %v286_v32 = vld [vmem:[#allocation2 + $0xe8] sm:$0xff]  ;;  %v654_v35 = vadd.f32 %v563_v29, %v269_v19  ;;  %v1181_v37 = vpop.f32.mrb[14].mxu0 }
 0x115   : > { %917 = vst.msk [vmem:[%s1430_s17 + $0x1c] sm:$0xf] %vm909_vm1, %v1101_v17  ;;  %933 = vst.msk [vmem:[%s1430_s17 + $0x5c] sm:$0xf] %vm909_vm1, %v1117_v18  ;;  %v720_v33 = vld [vmem:[#allocation2 + $0x50] sm:$0xff]  ;;  %v670_v36 = vadd.f32 %v627_v30, %v285_v20  ;;  %v1197_v38 = vpop.f32.mrb[14].mxu1  ;;  %v657_v43 = vadd.f32 %v1181_v37, %v272_v25 }
 0x116   : > { %915 = vst.msk [vmem:[%s1430_s17 + $0x14] sm:$0xf] %vm909_vm1, %v1099_v21  ;;  %931 = vst.msk [vmem:[%s1430_s17 + $0x54] sm:$0xf] %vm909_vm1, %v1115_v22  ;;  %v736_v34 = vld [vmem:[#allocation2 + $0xd0] sm:$0xff]  ;;  %v759_v39 = vadd.f32 %v1419_v53, %v720_v33  ;;  %v718_v41 = vld [vmem:[#allocation2 + $0x40] sm:$0xff]  ;;  %v673_v44 = vadd.f32 %v1197_v38, %v288_v26 }
 0x117   : > { %v775_v40 = vadd.f32 %v1419_v53, %v736_v34  ;;  %v734_v42 = vld [vmem:[#allocation2 + $0xc0] sm:$0xff]  ;;  %689 = vst.msk [vmem:[#allocation2 + $0x70] sm:$0xff] %vm224_vm0, %v656_v27  ;;  %705 = vst.msk [vmem:[#allocation2 + $0xf0] sm:$0xff] %vm224_vm0, %v672_v28  ;;  %v566_v45 = vpop.f32.mrb[15].mxu0  ;;  %v630_v46 = vpop.f32.mrb[15].mxu1  ;;  %v757_v47 = vadd.f32 %v1419_v53, %v718_v41  ;;  %v721_v49 = vld [vmem:[#allocation2 + $0x58] sm:$0xff] }
 0x118   : > { %v773_v48 = vadd.f32 %v1419_v53, %v734_v42  ;;  %v737_v50 = vld [vmem:[#allocation2 + $0xd8] sm:$0xff]  ;;  %687 = vst.msk [vmem:[#allocation2 + $0x60] sm:$0xff] %vm224_vm0, %v654_v35  ;;  %703 = vst.msk [vmem:[#allocation2 + $0xe0] sm:$0xff] %vm224_vm0, %v670_v36  ;;  %v655_v51 = vadd.f32 %v566_v45, %v270_v31  ;;  %v671_v52 = vadd.f32 %v630_v46, %v286_v32  ;;  %v719_v58 = vld [vmem:[#allocation2 + $0x48] sm:$0xff] }
 0x119   : > { %v1104_v54 = vpack.c.bf16 %v759_v39, %v759_v39  ;;  %v1120_v55 = vpack.c.bf16 %v775_v40, %v775_v40  ;;  %v760_v56 = vadd.f32 %v1419_v53, %v721_v49  ;;  %v776_v57 = vadd.f32 %v1419_v53, %v737_v50  ;;  %v735_v59 = vld [vmem:[#allocation2 + $0xc8] sm:$0xff]  ;;  %690 = vst.msk [vmem:[#allocation2 + $0x78] sm:$0xff] %vm224_vm0, %v657_v43 }
 0x11a   : > { %706 = vst.msk [vmem:[#allocation2 + $0xf8] sm:$0xff] %vm224_vm0, %v673_v44  ;;  %v1102_v60 = vpack.c.bf16 %v757_v47, %v757_v47  ;;  %v1118_v61 = vpack.c.bf16 %v773_v48, %v773_v48  ;;  %v758_v62 = vadd.f32 %v1419_v53, %v719_v58  ;;  %v774_v63 = vadd.f32 %v1419_v53, %v735_v59 }
 0x11b   : > { %688 = vst.msk [vmem:[#allocation2 + $0x68] sm:$0xff] %vm224_vm0, %v655_v51  ;;  %704 = vst.msk [vmem:[#allocation2 + $0xe8] sm:$0xff] %vm224_vm0, %v671_v52  ;;  %v1105_v0 = vpack.c.bf16 %v760_v56, %v760_v56  ;;  %v1121_v1 = vpack.c.bf16 %v776_v57, %v776_v57 }
 0x11c   : > { %920 = vst.msk [vmem:[%s1430_s17 + $0x28] sm:$0xf] %vm909_vm1, %v1104_v54  ;;  %936 = vst.msk [vmem:[%s1430_s17 + $0x68] sm:$0xf] %vm909_vm1, %v1120_v55  ;;  %v1103_v2 = vpack.c.bf16 %v758_v62, %v758_v62  ;;  %v1119_v3 = vpack.c.bf16 %v774_v63, %v774_v63 }
 0x11d   : > { %918 = vst.msk [vmem:[%s1430_s17 + $0x20] sm:$0xf] %vm909_vm1, %v1102_v60  ;;  %934 = vst.msk [vmem:[%s1430_s17 + $0x60] sm:$0xf] %vm909_vm1, %v1118_v61 }
 0x11e   : > { %921 = vst.msk [vmem:[%s1430_s17 + $0x2c] sm:$0xf] %vm909_vm1, %v1105_v0  ;;  %937 = vst.msk [vmem:[%s1430_s17 + $0x6c] sm:$0xf] %vm909_vm1, %v1121_v1  ;;  %v724_v4 = vld [vmem:[#allocation2 + $0x70] sm:$0xff] }
 0x11f   : > { %919 = vst.msk [vmem:[%s1430_s17 + $0x24] sm:$0xf] %vm909_vm1, %v1103_v2  ;;  %935 = vst.msk [vmem:[%s1430_s17 + $0x64] sm:$0xf] %vm909_vm1, %v1119_v3  ;;  %v740_v5 = vld [vmem:[#allocation2 + $0xf0] sm:$0xff]  ;;  %v763_v6 = vadd.f32 %v1419_v53, %v724_v4  ;;  %v722_v8 = vld [vmem:[#allocation2 + $0x60] sm:$0xff] }
 0x120   : > { %v779_v7 = vadd.f32 %v1419_v53, %v740_v5  ;;  %v738_v9 = vld [vmem:[#allocation2 + $0xe0] sm:$0xff]  ;;  %v761_v10 = vadd.f32 %v1419_v53, %v722_v8  ;;  %v725_v12 = vld [vmem:[#allocation2 + $0x78] sm:$0xff] }
 0x121   : > { %v777_v11 = vadd.f32 %v1419_v53, %v738_v9  ;;  %v741_v13 = vld [vmem:[#allocation2 + $0xf8] sm:$0xff]  ;;  %v1108_v14 = vpack.c.bf16 %v763_v6, %v763_v6  ;;  %v764_v16 = vadd.f32 %v1419_v53, %v725_v12 }
 0x122   : > { %v1124_v15 = vpack.c.bf16 %v779_v7, %v779_v7  ;;  %v780_v17 = vadd.f32 %v1419_v53, %v741_v13  ;;  %v723_v18 = vld [vmem:[#allocation2 + $0x68] sm:$0xff]  ;;  %v1106_v20 = vpack.c.bf16 %v761_v10, %v761_v10 }
 0x123   : > { %v739_v19 = vld [vmem:[#allocation2 + $0xe8] sm:$0xff]  ;;  %v1122_v21 = vpack.c.bf16 %v777_v11, %v777_v11  ;;  %v762_v22 = vadd.f32 %v1419_v53, %v723_v18  ;;  %924 = vst.msk [vmem:[%s1430_s17 + $0x38] sm:$0xf] %vm909_vm1, %v1108_v14  ;;  %v1109_v24 = vpack.c.bf16 %v764_v16, %v764_v16 }
 0x124   : > { %v778_v23 = vadd.f32 %v1419_v53, %v739_v19  ;;  %940 = vst.msk [vmem:[%s1430_s17 + $0x78] sm:$0xf] %vm909_vm1, %v1124_v15  ;;  %v1125_v25 = vpack.c.bf16 %v780_v17, %v780_v17  ;;  %922 = vst.msk [vmem:[%s1430_s17 + $0x30] sm:$0xf] %vm909_vm1, %v1106_v20 }
 0x125   : > { %938 = vst.msk [vmem:[%s1430_s17 + $0x70] sm:$0xf] %vm909_vm1, %v1122_v21  ;;  %v1107_v26 = vpack.c.bf16 %v762_v22, %v762_v22  ;;  %925 = vst.msk [vmem:[%s1430_s17 + $0x3c] sm:$0xf] %vm909_vm1, %v1109_v24 }
 0x126   : > { %v1123_v27 = vpack.c.bf16 %v778_v23, %v778_v23  ;;  %941 = vst.msk [vmem:[%s1430_s17 + $0x7c] sm:$0xf] %vm909_vm1, %v1125_v25 }
 0x127   : > { %923 = vst.msk [vmem:[%s1430_s17 + $0x34] sm:$0xf] %vm909_vm1, %v1107_v26 }
 0x128   : > { %939 = vst.msk [vmem:[%s1430_s17 + $0x74] sm:$0xf] %vm909_vm1, %v1123_v27 }
 0x129 PF: > { %s13_s14 = sadd.s32 1, %s1285_s14   ;;  %s1561_s12 = smov %s1281_s13 }
 0x12a   : > { %p10_p5 = scmp.ge.s32.totalorder %s13_s14, 4   ;;  %s1562_s13 = smov %s1564_s15 }
 0x12c   :  { %12 = sbr.rel (!%p10_p5) target bundleno = 2 (0x2), region = 73 }

// kernel: spikeformer_forward.10
= control target key start
LH: loop header
LB: loop body
LE: loop exit
PB: predicated region body
PF: predicated region fallthrough
CT: control target
= control target key end

     0   :  { %s631_s6 = smov 0   ;;  %s975_s0 = inlined_call_operand.vmem [shape: bf16[4,18,9,128], index: 0, kind: input, shape index: {}]   ;;  %s976_s1 = inlined_call_operand.vmem [shape: bf16[4,8,8,64], index: 1, kind: output, shape index: {}]  }
   0x1 LB: > { %s591_s7 = sadd.s32 4294967295, %s618_s6   ;;  %p595_p0 = scmp.ge.s32.totalorder %s618_s6, 1  ;;  %s618_s6 = sphi %s631_s6, %s11_s6  }
   0x2   : > { %p87_p1 = scmp.lt.s32.totalorder %s618_s6, 5 }
   0x4   : > { %p88_p2 = pnand %p595_p0, %p87_p1 }
   0x6   : > { %91 = sbr.rel (%p88_p2) target bundleno = 174 (0xae), region = 24 }
   0xd   : > { %p107_p3 = scmp.lt.s32.totalorder %s591_s7, 3  ;;  %s620_s12 = smov 64   ;;  %vm236_vm0 = vsmask.f32 3328  ;;  %vm237_vm1 = vsmask.f32 7440 }
   0xe   : > { %vm856_vm2 = vmor %vm236_vm0, %vm237_vm1  ;;  %vm527_vm3 = vcmask 519168  }
   0xf   : > { %s992_s7 = smov (!%p107_p3, %s591_s7), 3 }
  0x10   : > { %s602_s8 = smul.u32 144, %s992_s7  ;;  %s601_s13 = sshll.u32 %s992_s7, 5 }
  0x11   : > { %s902_s16 = scalar_lea.vmem %s976_s1, %s601_s13 }
  0x12   : > { %s645_s11 = scalar_lea.vmem %s975_s0, %s602_s8 }
  0x13   : > { %v648_v0 = vld [vmem:[%s645_s11 + $0x10] sm:$0xf]  ;;  %v651_v1 = vld [vmem:[%s645_s11] sm:$0xf]  ;;  %v658_v2 = vld [vmem:[%s645_s11 + $0x18] sm:$0xf] }
  0x14   : > { %172 = vrot.lane.b32.xlu1 %v648_v0, %s620_s12  ;;  %168 = vrot.lane.b32.xlu0 %v651_v1, %s620_s12  ;;  %v661_v3 = vld [vmem:[%s645_s11 + $0x8] sm:$0xf]  ;;  %v671_v5 = vld [vmem:[%s645_s11 + $0x20] sm:$0xf]  ;;  %v268_v17 = vshrl.u32 %v648_v0, 16  ;;  %v271_v18 = vshll.u32 %v648_v0, 16 }
  0x15   : > { %v668_v4 = vld [vmem:[%s645_s11 + $0x28] sm:$0xf]  ;;  %v678_v6 = vld [vmem:[%s645_s11 + $0x38] sm:$0xf]  ;;  %v681_v7 = vld [vmem:[%s645_s11 + $0x30] sm:$0xf] }
  0x16   : > { %v688_v8 = vld [vmem:[%s645_s11 + $0x48] sm:$0xf]  ;;  %v691_v9 = vld [vmem:[%s645_s11 + $0x40] sm:$0xf]  ;;  %v698_v10 = vld [vmem:[%s645_s11 + $0x58] sm:$0xf] }
  0x17   : > { %v701_v11 = vld [vmem:[%s645_s11 + $0x50] sm:$0xf]  ;;  %v708_v12 = vld [vmem:[%s645_s11 + $0x68] sm:$0xf]  ;;  %v711_v13 = vld [vmem:[%s645_s11 + $0x60] sm:$0xf] }
  0x18   : > { %174 = vrot.lane.b32.xlu1 %v658_v2, %s620_s12  ;;  %170 = vrot.lane.b32.xlu0 %v661_v3, %s620_s12  ;;  %981 = vst [vmem:[#allocation2_spill] sm:$0xff] %v708_v12  ;;  %982 = vst [vmem:[#allocation3_spill] sm:$0xff] %v711_v13  ;;  %v718_v14 = vld [vmem:[%s645_s11 + $0x78] sm:$0xf]  ;;  %v721_v15 = vld [vmem:[%s645_s11 + $0x70] sm:$0xf] }
  0x19   : > { %983 = vst [vmem:[#allocation4_spill] sm:$0xff] %v718_v14  ;;  %984 = vst [vmem:[#allocation5_spill] sm:$0xff] %v721_v15  ;;  %v728_v16 = vld [vmem:[%s645_s11 + $0x80] sm:$0xf]  ;;  %v240_v19 = vshrl.u32 %v651_v1, 16  ;;  %v243_v20 = vshll.u32 %v651_v1, 16 }
  0x1a   : > { %v282_v21 = vshrl.u32 %v658_v2, 16  ;;  %v285_v22 = vshll.u32 %v658_v2, 16  ;;  %v254_v23 = vshrl.u32 %v661_v3, 16  ;;  %v257_v24 = vshll.u32 %v661_v3, 16 }
  0x1b   : > { %v740_v25 = vrot.slane %v268_v17, 4  ;;  %v742_v26 = vrot.slane %v271_v18, 5  ;;  %v744_v27 = vrot.slane %v240_v19, 4  ;;  %v310_v28 = vshrl.u32 %v668_v4, 16  ;;  %v122_v18 = vld [vmem:[%s645_s11 + $0x14] sm:$0x1] }
  0x1c   : > { %178 = vrot.lane.b32.xlu1 %v668_v4, %s620_s12  ;;  %176 = vrot.lane.b32.xlu0 %v671_v5, %s620_s12  ;;  %v747_v29 = vrot.slane %v243_v20, 5  ;;  %v749_v30 = vrot.slane %v282_v21, 4  ;;  %v313_v31 = vshll.u32 %v668_v4, 16  ;;  %v296_v32 = vshrl.u32 %v671_v5, 16 }
  0x1d   : > { %v753_v33 = vrot.slane %v285_v22, 5  ;;  %v755_v34 = vrot.slane %v254_v23, 4  ;;  %v299_v35 = vshll.u32 %v671_v5, 16  ;;  %v338_v36 = vshrl.u32 %v678_v6, 16  ;;  %v118_v23 = vld [vmem:[%s645_s11 + $0x4] sm:$0x1] }
  0x1e   : > { %v759_v37 = vrot.slane %v257_v24, 5  ;;  %v341_v38 = vshll.u32 %v678_v6, 16  ;;  %v324_v39 = vshrl.u32 %v681_v7, 16  ;;  %v327_v40 = vshll.u32 %v681_v7, 16 }
  0x1f   : > { %v764_v41 = vrot.slane %v310_v28, 4  ;;  %v366_v42 = vshrl.u32 %v688_v8, 16  ;;  %v369_v43 = vshll.u32 %v688_v8, 16  ;;  %v352_v44 = vshrl.u32 %v691_v9, 16 }
  0x20   : > { %182 = vrot.lane.b32.xlu1 %v678_v6, %s620_s12  ;;  %180 = vrot.lane.b32.xlu0 %v681_v7, %s620_s12  ;;  %v769_v45 = vrot.slane %v313_v31, 5  ;;  %v771_v46 = vrot.slane %v296_v32, 4  ;;  %v355_v47 = vshll.u32 %v691_v9, 16  ;;  %v394_v48 = vshrl.u32 %v698_v10, 16 }
  0x21   : > { %v775_v49 = vrot.slane %v299_v35, 5  ;;  %v777_v50 = vrot.slane %v338_v36, 4  ;;  %v397_v51 = vshll.u32 %v698_v10, 16  ;;  %v380_v52 = vshrl.u32 %v701_v11, 16  ;;  %v124_v35 = vld [vmem:[%s645_s11 + $0x1c] sm:$0x1] }
  0x22   : > { %v781_v53 = vrot.slane %v341_v38, 5  ;;  %v783_v54 = vrot.slane %v324_v39, 4  ;;  %v785_v55 = vrot.slane %v327_v40, 5  ;;  %v383_v56 = vshll.u32 %v701_v11, 16  ;;  %v120_v40 = vld [vmem:[%s645_s11 + $0xc] sm:$0x1] }
  0x23   : > { %v788_v57 = vrot.slane %v366_v42, 4  ;;  %v790_v58 = vrot.slane %v369_v43, 5  ;;  %v792_v59 = vrot.slane %v352_v44, 4  ;;  %v422_v60 = vshrl.u32 %v708_v12, 16  ;;  %v128_v42 = vld [vmem:[%s645_s11 + $0x2c] sm:$0x1] }
  0x24   : > { %186 = vrot.lane.b32.xlu1 %v688_v8, %s620_s12  ;;  %184 = vrot.lane.b32.xlu0 %v691_v9, %s620_s12  ;;  %v795_v61 = vrot.slane %v355_v47, 5  ;;  %v797_v62 = vrot.slane %v394_v48, 4  ;;  %v425_v63 = vshll.u32 %v708_v12, 16  ;;  %v408_v17 = vshrl.u32 %v711_v13, 16 }
  0x25   : > { %v802_v19 = vrot.slane %v397_v51, 5  ;;  %v804_v20 = vrot.slane %v380_v52, 4  ;;  %v411_v21 = vshll.u32 %v711_v13, 16  ;;  %v450_v22 = vshrl.u32 %v718_v14, 16 }
  0x26   : > { %v809_v24 = vrot.slane %v383_v56, 5  ;;  %v453_v28 = vshll.u32 %v718_v14, 16  ;;  %v436_v31 = vshrl.u32 %v721_v15, 16  ;;  %v439_v32 = vshll.u32 %v721_v15, 16 }
  0x27   : > { %v815_v36 = vrot.slane %v422_v60, 4  ;;  %v277_v38 = vshll.u32 %v122_v18, 16  ;;  %v274_v39 = vor.u32 %v742_v26, %v740_v25  ;;  %v821_v43 = vrot.slane %v425_v63, 5  ;;  %v126_v25 = vld [vmem:[%s645_s11 + $0x24] sm:$0x1] }
  0x28   : > { %190 = vrot.lane.b32.xlu1 %v698_v10, %s620_s12  ;;  %188 = vrot.lane.b32.xlu0 %v701_v11, %s620_s12  ;;  %v823_v44 = vrot.slane %v408_v17, 4  ;;  %v249_v47 = vshll.u32 %v118_v23, 16  ;;  %v246_v48 = vor.u32 %v747_v29, %v744_v27  ;;  %v827_v51 = vrot.slane %v411_v21, 5  ;;  %v132_v23 = vld [vmem:[%s645_s11 + $0x3c] sm:$0x1] }
  0x29   : > { %v829_v52 = vrot.slane %v450_v22, 4  ;;  %v288_v56 = vor.u32 %v753_v33, %v749_v30  ;;  %v291_v60 = vshll.u32 %v124_v35, 16  ;;  %v260_v26 = vor.u32 %v759_v37, %v755_v34 }
  0x2a   : > { %v263_v63 = vshll.u32 %v120_v40, 16  ;;  %v316_v17 = vor.u32 %v769_v45, %v764_v41  ;;  %v319_v18 = vshll.u32 %v128_v42, 16  ;;  %v839_v27 = vrot.slane %v453_v28, 5  ;;  %v130_v45 = vld [vmem:[%s645_s11 + $0x34] sm:$0x1] }
  0x2b   : > { %v464_v29 = vshrl.u32 %v728_v16, 16  ;;  %v279_v21 = vrot.slane %v277_v38, 5  ;;  %v275_v22 = vrot.slane %v274_v39, 4  ;;  %v247_v30 = vrot.slane %v246_v48, 4 }
  0x2c   : > { %194 = vrot.lane.b32.xlu1 %v708_v12, %s620_s12  ;;  %192 = vrot.lane.b32.xlu0 %v711_v13, %s620_s12  ;;  %v302_v33 = vor.u32 %v775_v49, %v771_v46  ;;  %v305_v35 = vshll.u32 %v126_v25, 16  ;;  %v289_v34 = vrot.slane %v288_v56, 4  ;;  %v293_v37 = vrot.slane %v291_v60, 5 }
  0x2d   : > { %v344_v40 = vor.u32 %v781_v53, %v777_v50  ;;  %v347_v41 = vshll.u32 %v132_v23, 16  ;;  %v265_v13 = vrot.slane %v263_v63, 5  ;;  %v317_v12 = vrot.slane %v316_v17, 4  ;;  %v136_v63 = vld [vmem:[%s645_s11 + $0x4c] sm:$0x1] }
  0x2e   : > { %v321_v38 = vrot.slane %v319_v18, 5  ;;  %v847_v39 = vrot.slane %v436_v31, 4  ;;  %v851_v46 = vrot.slane %v464_v29, 4  ;;  %v467_v49 = vshll.u32 %v728_v16, 16 }
  0x2f   : > { %v303_v53 = vrot.slane %v302_v33, 4  ;;  %v307_v48 = vrot.slane %v305_v35, 5  ;;  %v330_v56 = vor.u32 %v785_v55, %v783_v54  ;;  %v333_v31 = vshll.u32 %v130_v45, 16  ;;  %v140_v33 = vld [vmem:[%s645_s11 + $0x5c] sm:$0x1] }
  0x30   : > { %198 = vrot.lane.b32.xlu1 %v718_v14, %s620_s12  ;;  %196 = vrot.lane.b32.xlu0 %v721_v15, %s620_s12  ;;  %v251_v15 = vrot.slane %v249_v47, 5  ;;  %v261_v14 = vrot.slane %v260_v26, 4  ;;  %v849_v47 = vrot.slane %v439_v32, 5  ;;  %v280_v32 = vsel %vm856_vm2, %v275_v22, %v279_v21 }
  0x31   : > { %v865_v25 = vrot.slane %v344_v40, 4  ;;  %v867_v26 = vrot.slane %v347_v41, 5  ;;  %v294_v18 = vsel %vm856_vm2, %v289_v34, %v293_v37  ;;  %v308_v35 = vsel %vm856_vm2, %v303_v53, %v307_v48 }
  0x32   : > { %v252_v17 = vsel %vm856_vm2, %v247_v30, %v251_v15  ;;  %v266_v55 = vsel %vm856_vm2, %v261_v14, %v265_v13  ;;  %v372_v15 = vor.u32 %v790_v58, %v788_v57  ;;  %v134_v30 = vld [vmem:[%s645_s11 + $0x44] sm:$0x1]  ;;  %v331_v13 = vrot.slane %v330_v56, 4 }
  0x33   : > { %v335_v14 = vrot.slane %v333_v31, 5  ;;  %v375_v34 = vshll.u32 %v136_v63, 16  ;;  %v358_v58 = vor.u32 %v795_v61, %v792_v59  ;;  %v361_v41 = vshll.u32 %v134_v30, 16 }
  0x34   : > { %200 = vrot.lane.b32.xlu0 %v728_v16, %s620_s12  ;;  %v400_v45 = vor.u32 %v802_v19, %v797_v62  ;;  %v373_v61 = vrot.slane %v372_v15, 4  ;;  %v386_v62 = vor.u32 %v809_v24, %v804_v20 }
  0x35   : > { %v336_v59 = vsel %vm856_vm2, %v331_v13, %v335_v14  ;;  %v359_v63 = vrot.slane %v358_v58, 4 }
  0x86   : > { %v173_v42 = vpop.permute.xlu1 %172  ;;  %v169_v28 = vpop.permute.xlu0 %168 }
  0x87   : > { %v219_v60 = vmax.bf16 %v169_v28, %v651_v1  ;;  %v322_v1 = vsel %vm856_vm2, %v317_v12, %v321_v38  ;;  %v221_v29 = vmax.bf16 %v173_v42, %v648_v0  ;;  %v350_v0 = vsel %vm856_vm2, %v865_v25, %v867_v26 }
  0x88   : > { %v403_v42 = vshll.u32 %v140_v33, 16  ;;  %v377_v26 = vrot.slane %v375_v34, 5 }
  0x89   : > { %v494_v37 = vmax.bf16 %v252_v17, %v219_v60  ;;  %v496_v28 = vmax.bf16 %v280_v32, %v221_v29  ;;  %v363_v17 = vrot.slane %v361_v41, 5  ;;  %v387_v29 = vrot.slane %v386_v62, 4 }
  0x8a   : > { %v175_v54 = vpop.permute.xlu1 %174  ;;  %v171_v23 = vpop.permute.xlu0 %170 }
  0x8b   : > { %v222_v21 = vmax.bf16 %v175_v54, %v658_v2  ;;  %v220_v22 = vmax.bf16 %v171_v23, %v661_v3  ;;  %v138_v2 = vld [vmem:[%s645_s11 + $0x54] sm:$0x1]  ;;  %v142_v23 = vld [vmem:[%s645_s11 + $0x64] sm:$0x1] }
  0x8c   : > { %v389_v19 = vshll.u32 %v138_v2, 16 }
  0x8d   : > { %v497_v12 = vmax.bf16 %v294_v18, %v222_v21  ;;  %v495_v40 = vmax.bf16 %v266_v55, %v220_v22  ;;  %v401_v18 = vrot.slane %v400_v45, 4  ;;  %v405_v55 = vrot.slane %v403_v42, 5 }
  0x8e   : > { %v179_v3 = vpop.permute.xlu1 %178  ;;  %v177_v57 = vpop.permute.xlu0 %176  ;;  %v428_v21 = vor.u32 %v821_v43, %v815_v36  ;;  %v414_v36 = vor.u32 %v827_v51, %v823_v44  ;;  %v417_v43 = vshll.u32 %v142_v23, 16 }
  0x8f   : > { %v511_v38 = vmax.bf16 %v495_v40, %v494_v37  ;;  %v224_v53 = vmax.bf16 %v179_v3, %v668_v4  ;;  %v223_v48 = vmax.bf16 %v177_v57, %v671_v5  ;;  %v512_v56 = vmax.bf16 %v497_v12, %v496_v28  ;;  %v144_v5 = vld [vmem:[%s645_s11 + $0x6c] sm:$0x1] }
  0x90   : > { %v431_v22 = vshll.u32 %v144_v5, 16  ;;  %v406_v40 = vsel %vm856_vm2, %v401_v18, %v405_v55  ;;  %v429_v2 = vrot.slane %v428_v21, 4  ;;  %v456_v57 = vor.u32 %v839_v27, %v829_v52 }
  0x91   : > { %v519_v31 = vmax.bf16 %v511_v38, %v496_v28  ;;  %v499_v4 = vmax.bf16 %v322_v1, %v224_v53  ;;  %v498_v32 = vmax.bf16 %v308_v35, %v223_v48  ;;  %v916_v1 = vrot.slane %v467_v49, 5  ;;  %v148_v35 = vld [vmem:[%s645_s11 + $0x7c] sm:$0x1] }
  0x92   : > { %v183_v60 = vpop.permute.xlu1 %182  ;;  %v181_v25 = vpop.permute.xlu0 %180  ;;  %v364_v49 = vsel %vm856_vm2, %v359_v63, %v363_v17  ;;  %v433_v3 = vrot.slane %v431_v22, 5  ;;  %v459_v58 = vshll.u32 %v148_v35, 16  ;;  %v415_v42 = vrot.slane %v414_v36, 4  ;;  %v988_v17 = vld [vmem:[#allocation3_spill] sm:$0xff] }
  0x93   : > { %528 = vst.msk [vmem:[%s902_s16] sm:$0xf] %vm527_vm3, %v519_v31  ;;  %v520_v54 = vmax.bf16 %v512_v56, %v498_v32  ;;  %v226_v20 = vmax.bf16 %v183_v60, %v678_v6  ;;  %v225_v24 = vmax.bf16 %v181_v25, %v681_v7  ;;  %v513_v15 = vmax.bf16 %v499_v4, %v498_v32 }
  0x94   : > { %v391_v6 = vrot.slane %v389_v19, 5  ;;  %v378_v7 = vsel %vm856_vm2, %v373_v61, %v377_v26  ;;  %v419_v28 = vrot.slane %v417_v43, 5  ;;  %v442_v38 = vor.u32 %v849_v47, %v847_v39  ;;  %v987_v26 = vld [vmem:[#allocation2_spill] sm:$0xff] }
  0x95   : > { %529 = vst.msk [vmem:[%s902_s16 + $0x4] sm:$0xf] %vm527_vm3, %v520_v54  ;;  %v501_v30 = vmax.bf16 %v350_v0, %v226_v20  ;;  %v500_v33 = vmax.bf16 %v336_v59, %v225_v24  ;;  %v146_v0 = vld [vmem:[%s645_s11 + $0x74] sm:$0x1]  ;;  %v150_v59 = vld [vmem:[%s645_s11 + $0x84] sm:$0x1]  ;;  %v434_v61 = vsel %vm856_vm2, %v429_v2, %v433_v3  ;;  %v470_v39 = vor.u32 %v916_v1, %v851_v46 }
  0x96   : > { %v187_v13 = vpop.permute.xlu1 %186  ;;  %v185_v14 = vpop.permute.xlu0 %184  ;;  %v445_v53 = vshll.u32 %v146_v0, 16  ;;  %v457_v62 = vrot.slane %v456_v57, 4  ;;  %v461_v19 = vrot.slane %v459_v58, 5  ;;  %v443_v32 = vrot.slane %v442_v38, 4 }
  0x97   : > { %v521_v34 = vmax.bf16 %v513_v15, %v500_v33  ;;  %v228_v37 = vmax.bf16 %v187_v13, %v688_v8  ;;  %v227_v12 = vmax.bf16 %v185_v14, %v691_v9  ;;  %v514_v41 = vmax.bf16 %v501_v30, %v500_v33  ;;  %v989_v15 = vld [vmem:[#allocation4_spill] sm:$0xff]  ;;  %v990_v33 = vld [vmem:[#allocation5_spill] sm:$0xff] }
  0x98   : > { %v392_v8 = vsel %vm856_vm2, %v387_v29, %v391_v6  ;;  %v447_v5 = vrot.slane %v445_v53, 5  ;;  %v473_v60 = vshll.u32 %v150_v59, 16  ;;  %v462_v46 = vsel %vm856_vm2, %v457_v62, %v461_v19 }
  0x99   : > { %530 = vst.msk [vmem:[%s902_s16 + $0x8] sm:$0xf] %vm527_vm3, %v521_v34  ;;  %v503_v44 = vmax.bf16 %v378_v7, %v228_v37  ;;  %v502_v51 = vmax.bf16 %v364_v49, %v227_v12  ;;  %v471_v29 = vrot.slane %v470_v39, 4 }
  0x9a   : > { %v191_v9 = vpop.permute.xlu1 %190  ;;  %v189_v45 = vpop.permute.xlu0 %188  ;;  %v448_v23 = vsel %vm856_vm2, %v443_v32, %v447_v5  ;;  %v475_v21 = vrot.slane %v473_v60, 5 }
  0x9b   : > { %v522_v52 = vmax.bf16 %v514_v41, %v502_v51  ;;  %v230_v27 = vmax.bf16 %v191_v9, %v698_v10  ;;  %v229_v48 = vmax.bf16 %v189_v45, %v701_v11  ;;  %v515_v56 = vmax.bf16 %v503_v44, %v502_v51 }
  0x9c   : > { %v420_v10 = vsel %vm856_vm2, %v415_v42, %v419_v28  ;;  %v476_v49 = vsel %vm856_vm2, %v471_v29, %v475_v21 }
  0x9d   : > { %531 = vst.msk [vmem:[%s902_s16 + $0xc] sm:$0xf] %vm527_vm3, %v522_v52  ;;  %v505_v31 = vmax.bf16 %v406_v40, %v230_v27  ;;  %v504_v4 = vmax.bf16 %v392_v8, %v229_v48 }
  0x9e   : > { %v195_v47 = vpop.permute.xlu1 %194  ;;  %v193_v11 = vpop.permute.xlu0 %192 }
  0x9f   : > { %v523_v25 = vmax.bf16 %v515_v56, %v504_v4  ;;  %v232_v63 = vmax.bf16 %v195_v47, %v987_v26  ;;  %v231_v18 = vmax.bf16 %v193_v11, %v988_v17  ;;  %v516_v54 = vmax.bf16 %v505_v31, %v504_v4 }
  0xa1   : > { %532 = vst.msk [vmem:[%s902_s16 + $0x10] sm:$0xf] %vm527_vm3, %v523_v25  ;;  %v507_v20 = vmax.bf16 %v434_v61, %v232_v63  ;;  %v506_v24 = vmax.bf16 %v420_v10, %v231_v18 }
  0xa2   : > { %v199_v55 = vpop.permute.xlu1 %198  ;;  %v197_v1 = vpop.permute.xlu0 %196 }
  0xa3   : > { %v524_v22 = vmax.bf16 %v516_v54, %v506_v24  ;;  %v234_v30 = vmax.bf16 %v199_v55, %v989_v15  ;;  %v233_v6 = vmax.bf16 %v197_v1, %v990_v33  ;;  %v517_v35 = vmax.bf16 %v507_v20, %v506_v24 }
  0xa5   : > { %533 = vst.msk [vmem:[%s902_s16 + $0x14] sm:$0xf] %vm527_vm3, %v524_v22  ;;  %v509_v7 = vmax.bf16 %v462_v46, %v234_v30  ;;  %v508_v13 = vmax.bf16 %v448_v23, %v233_v6 }
  0xa6   : > { %v201_v14 = vpop.permute.xlu0 %200 }
  0xa7   : > { %v525_v36 = vmax.bf16 %v517_v35, %v508_v13  ;;  %v235_v43 = vmax.bf16 %v201_v14, %v728_v16  ;;  %v518_v34 = vmax.bf16 %v509_v7, %v508_v13 }
  0xa9   : > { %534 = vst.msk [vmem:[%s902_s16 + $0x18] sm:$0xf] %vm527_vm3, %v525_v36  ;;  %v510_v37 = vmax.bf16 %v476_v49, %v235_v43 }
  0xab   : > { %v526_v12 = vmax.bf16 %v518_v34, %v510_v37 }
  0xad   : > { %535 = vst.msk [vmem:[%s902_s16 + $0x1c] sm:$0xf] %vm527_vm3, %v526_v12 }
  0xae PF: > { %s11_s6 = sadd.s32 1, %s618_s6  }
  0xaf   : > { %p8_p4 = scmp.ge.s32.totalorder %s11_s6, 6  }
  0xb1   :  { %10 = sbr.rel (!%p8_p4) target bundleno = 1 (0x1), region = 54 }

// kernel: spikeformer_forward.12
= control target key start
LH: loop header
LB: loop body
LE: loop exit
PB: predicated region body
PF: predicated region fallthrough
CT: control target
= control target key end

     0   :  { %s426_s6 = smov 0   ;;  %s428_s7 = smov 0   ;;  %s481_s0 = inlined_call_operand.vmem [shape: bf16[2,48,128], index: 0, kind: input, shape index: {}]   ;;  %s482_s1 = inlined_call_operand.vmem [shape: bf16[2,48,128], index: 1, kind: output, shape index: {}]  }
   0x1   :  { %s430_s8 = smov 0   ;;  %s432_s9 = smov 0  }
   0x2   :  { %s434_s10 = smov 0  }
   0x3 LB: > { %s20_s11 = sadd.s32 1, %s404_s8  ;;  %s23_s12 = sadd.s32 1, %s408_s9  ;;  %s412_s10 = sphi %s434_s10, %s11_s10   ;;  %s408_s9 = sphi %s432_s9, %s486_s9   ;;  %s404_s8 = sphi %s430_s8, %s485_s8   ;;  %s400_s7 = sphi %s428_s7, %s484_s7   ;;  %s396_s6 = sphi %s426_s6, %s483_s6  }
   0x4   : > { %p21_p0 = scmp.ge.s32.totalorder %s20_s11, 2  ;;  %p309_p1 = scmp.ge.s32.totalorder %s412_s10, 1 }
   0x5   : > { %p108_p2 = scmp.lt.s32.totalorder %s412_s10, 5 }
   0x6   : > { %s488_s11 = smov (%p21_p0, %s20_s11), 0  ;;  %s490_s12 = smov (!%p21_p0, %s23_s12), %s408_s9 }
   0x7   : > { %p109_p3 = pnand %p309_p1, %p108_p2  ;;  %p25_p4 = scmp.ge.s32.totalorder %s490_s12, 2 }
   0x8   : > { %s136_s13 = smul.u32 (!%p109_p3), 3, %s400_s7  ;;  %p137_p5 = scmp.lt.s32.totalorder (!%p109_p3), %s396_s6, 1 }
   0x9   : > { %s492_s12 = smov (%p25_p4, %s490_s12), 0  ;;  %112 = sbr.rel (%p109_p3) target bundleno = 41 (0x29), region = 24 }
   0xa   : > { %p139_p6 = scmp.lt.s32.totalorder (!%p109_p3), %s136_s13, 5  ;;  %p312_p7 = scmp.ne.s32.totalorder (!%p109_p3), %s396_s6, 0 }
  0x10   : > { %s138_s14 = scalar_select %p137_p5, %s396_s6, 1 }
  0x11   : > { %s494_s13 = smov (!%p139_p6, %s136_s13), 5  ;;  %159 = sbr.rel (%p312_p7) target bundleno = 24 (0x18), region = 28 }
  0x12   : > { %s331_s15 = smul.u32 6, %s138_s14  ;;  %v414_v0 = vmov (!%p312_p7), 0.0  }
  0x13   : > { %160 = vst [vmem:[#allocation2] sm:$0xff] (!%p312_p7), %v414_v0  ;;  %161 = vst [vmem:[#allocation2 + $0x8] sm:$0xff] (!%p312_p7), %v414_v0 }
  0x14   : > { %s142_s16 = sadd.s32 %s331_s15, %s494_s13  ;;  %162 = vst [vmem:[#allocation2 + $0x10] sm:$0xff] (!%p312_p7), %v414_v0 }
  0x15   : > { %s310_s17 = sshll.u32 %s142_s16, 2 }
  0x16   : > { %s144_s20 = scalar_lea.vmem %s481_s0, %s310_s17  ;;  %s462_s23 = scalar_lea.vmem %s482_s1, %s310_s17 }
  0x18 PF: > { %v325_v1 = vld [vmem:[%s144_s20] sm:$0xff]   ;;  %v165_v6 = vld [vmem:[%s144_s20 + $0x8] sm:$0xf]  ;;  %v415_v18 = vmov 0.0  }
  0x19   : > { %v326_v4 = vunpack.c.l.bf16 %v325_v1  ;;  %v327_v5 = vunpack.c.h.bf16 %v325_v1  ;;  %v168_v8 = vunpack.c.l.bf16 %v165_v6 }
  0x1a   : > { %v169_v2 = vld [vmem:[#allocation2] sm:$0xff]  ;;  %v170_v3 = vld [vmem:[#allocation2 + $0x8] sm:$0xff] }
  0x1b   : > { %v171_v7 = vld [vmem:[#allocation2 + $0x10] sm:$0xff]  ;;  %v172_v9 = vsub.f32 %v326_v4, %v169_v2  ;;  %v173_v10 = vsub.f32 %v327_v5, %v170_v3 }
  0x1c   : > { %v174_v11 = vsub.f32 %v168_v8, %v171_v7 }
  0x1d   : > { %v175_v12 = vmul.f32 0.5, %v172_v9  ;;  %v176_v13 = vmul.f32 0.5, %v173_v10 }
  0x1e   : > { %v177_v14 = vmul.f32 0.5, %v174_v11 }
  0x1f   : > { %v178_v15 = vadd.f32 %v175_v12, %v169_v2  ;;  %v179_v16 = vadd.f32 %v176_v13, %v170_v3 }
  0x20   : > { %v180_v17 = vadd.f32 %v177_v14, %v171_v7 }
  0x21   : > { %vm181_vm0 = vcmp.ge.f32.partialorder %v178_v15, 1.0  ;;  %vm182_vm1 = vcmp.ge.f32.partialorder %v179_v16, 1.0 }
  0x22   : > { %v313_v19 = vsel %vm181_vm0, 1.0, %v415_v18  ;;  %v314_v20 = vsel %vm182_vm1, 1.0, %v415_v18  ;;  %vm183_vm2 = vcmp.ge.f32.partialorder %v180_v17, 1.0 }
  0x23   : > { %v190_v21 = vsub.f32 1.0, %v313_v19  ;;  %v191_v22 = vsub.f32 1.0, %v314_v20  ;;  %v315_v23 = vsel %vm183_vm2, 1.0, %v415_v18  ;;  %v329_v24 = vpack.c.bf16 %v314_v20, %v313_v19 }
  0x24   : > { %v192_v25 = vsub.f32 1.0, %v315_v23  ;;  %v323_v26 = vpack.c.bf16 %v315_v23, %v315_v23 }
  0x25   : > { %v193_v27 = vmul.f32 %v190_v21, %v178_v15  ;;  %v194_v28 = vmul.f32 %v191_v22, %v179_v16  ;;  %330 = vst [vmem:[%s462_s23] sm:$0xff] %v329_v24  }
  0x26   : > { %v195_v29 = vmul.f32 %v192_v25, %v180_v17  ;;  %214 = vst [vmem:[%s462_s23 + $0x8] sm:$0xf] %v323_v26 }
  0x27   : > { %196 = vst [vmem:[#allocation2] sm:$0xff] %v193_v27  ;;  %197 = vst [vmem:[#allocation2 + $0x8] sm:$0xff] %v194_v28 }
  0x28   : > { %198 = vst [vmem:[#allocation2 + $0x10] sm:$0xff] %v195_v29 }
  0x29 PF: > { %s11_s10 = sadd.s32 1, %s412_s10   ;;  %s483_s6 = smov %s404_s8 }
  0x2a   : > { %p8_p8 = scmp.ge.s32.totalorder %s11_s10, 6   ;;  %s484_s7 = smov %s408_s9 }
  0x2b   : > { %s485_s8 = smov %s488_s11  ;;  %s486_s9 = smov %s492_s12 }
  0x2c   :  { %10 = sbr.rel (!%p8_p8) target bundleno = 3 (0x3), region = 58 }

// kernel: spikeformer_forward.11
= control target key start
LH: loop header
LB: loop body
LE: loop exit
PB: predicated region body
PF: predicated region fallthrough
CT: control target
= control target key end

     0   :  { %vm20_vm0 = vcmask 523264   ;;  %vm1007_vm1 = vcmask 1043456   ;;  %vm1008_vm2 = vcmask 523268   ;;  %s1745_s1 = inlined_call_operand.vmem [shape: bf16[640,192], index: 1, kind: input, shape index: {}]   ;;  %s1746_s0 = inlined_call_operand.vmem [shape: bf16[64,640], index: 0, kind: input, shape index: {}]   ;;  %s1747_s2 = inlined_call_operand.vmem [shape: f32[1,192], index: 2, kind: input, shape index: {}]   ;;  %s1748_s3 = inlined_call_operand.vmem [shape: bf16[64,192], index: 3, kind: output, shape index: {}]  }
   0x1   :  { %v1188_v0 = vld [vmem:[%s1745_s1 + $0x4] ss:$8 sps:$4 sm:$0xff]   ;;  %v1192_v2 = vld [vmem:[%s1745_s1] ss:$8 sps:$4 sm:$0xff]   ;;  %v1194_v4 = vld [vmem:[%s1745_s1 + $0x14] ss:$8 sps:$4 sm:$0xff]  }
   0x2   :  { %v1190_v1 = vld [vmem:[%s1745_s1 + $0x104] ss:$8 sps:$4 sm:$0xff]   ;;  %660 = vmatprep.subr.bf16.mxu1 %v1188_v0  ;;  %v1193_v3 = vld [vmem:[%s1745_s1 + $0x100] ss:$8 sps:$4 sm:$0xff]   ;;  %v1196_v5 = vld [vmem:[%s1745_s1 + $0x114] ss:$8 sps:$4 sm:$0xff]  }
   0x3   :  { %733 = vmatprep.subr.bf16.mxu0 %v1190_v1  ;;  %661 = vmatpush1.bf16.msra.mxu1 %v1192_v2  ;;  %v1198_v6 = vld [vmem:[%s1745_s1 + $0x10] ss:$8 sps:$4 sm:$0xff]   ;;  %v1200_v8 = vld [vmem:[%s1745_s1 + $0x24] ss:$8 sps:$4 sm:$0xff]   ;;  %v1204_v10 = vld [vmem:[%s1745_s1 + $0x20] ss:$8 sps:$4 sm:$0xff]  }
   0x4   :  { %734 = vmatpush1.bf16.msra.mxu0 %v1193_v3  ;;  %662 = vmatprep.subr.bf16.mxu1 %v1194_v4  ;;  %v1199_v7 = vld [vmem:[%s1745_s1 + $0x110] ss:$8 sps:$4 sm:$0xff]   ;;  %v1202_v9 = vld [vmem:[%s1745_s1 + $0x124] ss:$8 sps:$4 sm:$0xff]   ;;  %v1205_v11 = vld [vmem:[%s1745_s1 + $0x120] ss:$8 sps:$4 sm:$0xff]  }
   0x5   :  { %735 = vmatprep.subr.bf16.mxu0 %v1196_v5  ;;  %v1206_v12 = vld [vmem:[%s1745_s1 + $0x34] ss:$8 sps:$4 sm:$0xff]   ;;  %v1210_v14 = vld [vmem:[%s1745_s1 + $0x30] ss:$8 sps:$4 sm:$0xff]   ;;  %v1212_v16 = vld [vmem:[%s1745_s1 + $0x44] ss:$8 sps:$4 sm:$0xff]  }
   0x6   :  { %v1208_v13 = vld [vmem:[%s1745_s1 + $0x134] ss:$8 sps:$4 sm:$0xff]   ;;  %v1211_v15 = vld [vmem:[%s1745_s1 + $0x130] ss:$8 sps:$4 sm:$0xff]   ;;  %v1214_v17 = vld [vmem:[%s1745_s1 + $0x144] ss:$8 sps:$4 sm:$0xff]  }
   0x7   :  { %663 = vmatpush1.bf16.msra.mxu1 %v1198_v6  ;;  %v1216_v18 = vld [vmem:[%s1745_s1 + $0x40] ss:$8 sps:$4 sm:$0xff]   ;;  %v1218_v20 = vld [vmem:[%s1745_s1 + $0x54] ss:$8 sps:$4 sm:$0xff]   ;;  %v1222_v22 = vld [vmem:[%s1745_s1 + $0x50] ss:$8 sps:$4 sm:$0xff]  }
   0x8   :  { %736 = vmatpush1.bf16.msra.mxu0 %v1199_v7  ;;  %664 = vmatprep.subr.bf16.mxu1 %v1200_v8  ;;  %v1217_v19 = vld [vmem:[%s1745_s1 + $0x140] ss:$8 sps:$4 sm:$0xff]   ;;  %v1220_v21 = vld [vmem:[%s1745_s1 + $0x154] ss:$8 sps:$4 sm:$0xff]   ;;  %v1223_v23 = vld [vmem:[%s1745_s1 + $0x150] ss:$8 sps:$4 sm:$0xff]  }
   0x9   :  { %737 = vmatprep.subr.bf16.mxu0 %v1202_v9  ;;  %v1224_v24 = vld [vmem:[%s1745_s1 + $0x64] ss:$8 sps:$4 sm:$0xff]   ;;  %v1228_v26 = vld [vmem:[%s1745_s1 + $0x60] ss:$8 sps:$4 sm:$0xff]   ;;  %v1230_v28 = vld [vmem:[%s1745_s1 + $0x74] ss:$8 sps:$4 sm:$0xff]  }
   0xa   :  { %v1226_v25 = vld [vmem:[%s1745_s1 + $0x164] ss:$8 sps:$4 sm:$0xff]   ;;  %v1229_v27 = vld [vmem:[%s1745_s1 + $0x160] ss:$8 sps:$4 sm:$0xff]   ;;  %v1232_v29 = vld [vmem:[%s1745_s1 + $0x174] ss:$8 sps:$4 sm:$0xff]  }
   0xb   :  { %665 = vmatpush1.bf16.msra.mxu1 %v1204_v10  ;;  %v1234_v30 = vld [vmem:[%s1745_s1 + $0x70] ss:$8 sps:$4 sm:$0xff]   ;;  %v1236_v32 = vld [vmem:[%s1745_s1 + $0x84] ss:$8 sps:$4 sm:$0xff]   ;;  %v1240_v34 = vld [vmem:[%s1745_s1 + $0x80] ss:$8 sps:$4 sm:$0xff]  }
   0xc   :  { %738 = vmatpush1.bf16.msra.mxu0 %v1205_v11  ;;  %666 = vmatprep.subr.bf16.mxu1 %v1206_v12  ;;  %v1235_v31 = vld [vmem:[%s1745_s1 + $0x170] ss:$8 sps:$4 sm:$0xff]   ;;  %v1238_v33 = vld [vmem:[%s1745_s1 + $0x184] ss:$8 sps:$4 sm:$0xff]   ;;  %v1241_v35 = vld [vmem:[%s1745_s1 + $0x180] ss:$8 sps:$4 sm:$0xff]  }
   0xd   :  { %739 = vmatprep.subr.bf16.mxu0 %v1208_v13  ;;  %v1242_v36 = vld [vmem:[%s1745_s1 + $0x94] ss:$8 sps:$4 sm:$0xff]   ;;  %v1246_v38 = vld [vmem:[%s1745_s1 + $0x90] ss:$8 sps:$4 sm:$0xff]   ;;  %v1248_v40 = vld [vmem:[%s1745_s1 + $0xa4] ss:$8 sps:$4 sm:$0xff]  }
   0xe   :  { %v1244_v37 = vld [vmem:[%s1745_s1 + $0x194] ss:$8 sps:$4 sm:$0xff]   ;;  %v1247_v39 = vld [vmem:[%s1745_s1 + $0x190] ss:$8 sps:$4 sm:$0xff]   ;;  %v1250_v41 = vld [vmem:[%s1745_s1 + $0x1a4] ss:$8 sps:$4 sm:$0xff]  }
   0xf   :  { %667 = vmatpush1.bf16.msra.mxu1 %v1210_v14  ;;  %v1252_v42 = vld [vmem:[%s1745_s1 + $0xa0] ss:$8 sps:$4 sm:$0xff]   ;;  %v1254_v44 = vld [vmem:[%s1745_s1 + $0xb4] ss:$8 sps:$4 sm:$0xff]   ;;  %v1258_v46 = vld [vmem:[%s1745_s1 + $0xb0] ss:$8 sps:$4 sm:$0xff]  }
  0x10   :  { %740 = vmatpush1.bf16.msra.mxu0 %v1211_v15  ;;  %668 = vmatprep.subr.bf16.mxu1 %v1212_v16  ;;  %v1253_v43 = vld [vmem:[%s1745_s1 + $0x1a0] ss:$8 sps:$4 sm:$0xff]   ;;  %v1256_v45 = vld [vmem:[%s1745_s1 + $0x1b4] ss:$8 sps:$4 sm:$0xff]   ;;  %v1259_v47 = vld [vmem:[%s1745_s1 + $0x1b0] ss:$8 sps:$4 sm:$0xff]  }
  0x11   :  { %741 = vmatprep.subr.bf16.mxu0 %v1214_v17  ;;  %v1260_v48 = vld [vmem:[%s1745_s1 + $0xc4] ss:$8 sps:$4 sm:$0xff]   ;;  %v1264_v52 = vld [vmem:[%s1745_s1 + $0xc0] ss:$8 sps:$4 sm:$0xff]   ;;  %v1266_v54 = vld [vmem:[%s1745_s1 + $0xd4] ss:$8 sps:$4 sm:$0xff]  }
  0x12   :  { %v1286_v49 = vld [vmem:[%s1746_s0 + $0x4] ss:$20 sps:$4 sm:$0xff]   ;;  %v1289_v51 = vld [vmem:[%s1746_s0 + $0xc] ss:$20 sps:$4 sm:$0xff]   ;;  %v1268_v55 = vld [vmem:[%s1745_s1 + $0x1d4] ss:$8 sps:$4 sm:$0xff]  }
  0x13   :  { %669 = vmatpush1.bf16.msra.mxu1 %v1216_v18  ;;  %v1262_v50 = vld [vmem:[%s1745_s1 + $0x1c4] ss:$8 sps:$4 sm:$0xff]   ;;  %692 = vmatprep.mubr.bf16.mxu1 %v1286_v49  ;;  %v1265_v53 = vld [vmem:[%s1745_s1 + $0x1c0] ss:$8 sps:$4 sm:$0xff]   ;;  %v1270_v56 = vld [vmem:[%s1745_s1 + $0xd0] ss:$8 sps:$4 sm:$0xff]  }
  0x14   :  { %742 = vmatpush1.bf16.msra.mxu0 %v1217_v19  ;;  %670 = vmatprep.subr.bf16.mxu1 %v1218_v20  ;;  %v1271_v57 = vld [vmem:[%s1745_s1 + $0x1d0] ss:$8 sps:$4 sm:$0xff]   ;;  %v1272_v58 = vld [vmem:[%s1745_s1 + $0xe4] ss:$8 sps:$4 sm:$0xff]   ;;  %v1276_v60 = vld [vmem:[%s1745_s1 + $0xe0] ss:$8 sps:$4 sm:$0xff]  }
  0x15   :  { %743 = vmatprep.subr.bf16.mxu0 %v1220_v21  ;;  %765 = vmatprep.mubr.bf16.mxu0 %v1289_v51  ;;  %v1274_v59 = vld [vmem:[%s1745_s1 + $0x1e4] ss:$8 sps:$4 sm:$0xff]   ;;  %v1277_v61 = vld [vmem:[%s1745_s1 + $0x1e0] ss:$8 sps:$4 sm:$0xff]   ;;  %v1278_v62 = vld [vmem:[%s1745_s1 + $0xf4] ss:$8 sps:$4 sm:$0xff]  }
  0x16   :  { %v1280_v63 = vld [vmem:[%s1745_s1 + $0x1f4] ss:$8 sps:$4 sm:$0xff]   ;;  %v1282_v0 = vld [vmem:[%s1745_s1 + $0xf0] ss:$8 sps:$4 sm:$0xff]   ;;  %v1292_v2 = vld [vmem:[%s1745_s1 + $0x204] ss:$8 sps:$4 sm:$0xff]  }
  0x17   :  { %671 = vmatpush1.bf16.msra.mxu1 %v1222_v22  ;;  %v1283_v1 = vld [vmem:[%s1745_s1 + $0x1f0] ss:$8 sps:$4 sm:$0xff]   ;;  %v1284_v3 = vld [vmem:[%s1746_s0] ss:$20 sps:$4 sm:$0xff]   ;;  %v1287_v4 = vld [vmem:[%s1746_s0 + $0x8] ss:$20 sps:$4 sm:$0xff]  }
  0x18   :  { %744 = vmatpush1.bf16.msra.mxu0 %v1223_v23  ;;  %672 = vmatprep.subr.bf16.mxu1 %v1224_v24  ;;  %v1290_v5 = vld [vmem:[%s1745_s1 + $0x200] ss:$8 sps:$4 sm:$0xff]   ;;  %v1295_v6 = vld [vmem:[%s1745_s1 + $0x214] ss:$8 sps:$4 sm:$0xff]   ;;  %v1293_v9 = vld [vmem:[%s1745_s1 + $0x210] ss:$8 sps:$4 sm:$0xff]  }
  0x19   :  { %745 = vmatprep.subr.bf16.mxu0 %v1226_v25  ;;  %v1296_v7 = vld [vmem:[%s1746_s0 + $0x2c] ss:$20 sps:$4 sm:$0xff]   ;;  %v1298_v8 = vld [vmem:[%s1746_s0 + $0x34] ss:$20 sps:$4 sm:$0xff]   ;;  %v1301_v12 = vld [vmem:[%s1746_s0 + $0x30] ss:$20 sps:$4 sm:$0xff]  }
  0x1a   :  { %v1304_v10 = vld [vmem:[%s1745_s1 + $0x224] ss:$8 sps:$4 sm:$0xff]   ;;  %v1300_v11 = vld [vmem:[%s1746_s0 + $0x28] ss:$20 sps:$4 sm:$0xff]   ;;  %v1305_v17 = vld [vmem:[%s1745_s1 + $0x230] ss:$8 sps:$4 sm:$0xff]  }
  0x1b   :  { %673 = vmatpush1.bf16.msra.mxu1 %v1228_v26  ;;  %v1302_v13 = vld [vmem:[%s1745_s1 + $0x220] ss:$8 sps:$4 sm:$0xff]   ;;  %v1307_v14 = vld [vmem:[%s1745_s1 + $0x234] ss:$8 sps:$4 sm:$0xff]   ;;  %v1316_v18 = vld [vmem:[%s1745_s1 + $0x244] ss:$8 sps:$4 sm:$0xff]  }
  0x1c   :  { %746 = vmatpush1.bf16.msra.mxu0 %v1229_v27  ;;  %674 = vmatprep.subr.bf16.mxu1 %v1230_v28  ;;  %v1308_v15 = vld [vmem:[%s1746_s0 + $0x54] ss:$20 sps:$4 sm:$0xff]   ;;  %v1310_v16 = vld [vmem:[%s1746_s0 + $0x5c] ss:$20 sps:$4 sm:$0xff]   ;;  %v1313_v20 = vld [vmem:[%s1746_s0 + $0x58] ss:$20 sps:$4 sm:$0xff]  }
  0x1d   :  { %747 = vmatprep.subr.bf16.mxu0 %v1232_v29  ;;  %v1312_v19 = vld [vmem:[%s1746_s0 + $0x50] ss:$20 sps:$4 sm:$0xff]   ;;  %v1314_v21 = vld [vmem:[%s1745_s1 + $0x240] ss:$8 sps:$4 sm:$0xff]   ;;  %v1319_v22 = vld [vmem:[%s1745_s1 + $0x254] ss:$8 sps:$4 sm:$0xff]  }
  0x1e   :  { %v1320_v23 = vld [vmem:[%s1746_s0 + $0x7c] ss:$20 sps:$4 sm:$0xff]   ;;  %v1322_v24 = vld [vmem:[%s1746_s0 + $0x84] ss:$20 sps:$4 sm:$0xff]   ;;  %v1325_v28 = vld [vmem:[%s1746_s0 + $0x80] ss:$20 sps:$4 sm:$0xff]  }
  0x1f   :  { %675 = vmatpush1.bf16.msra.mxu1 %v1234_v30  ;;  %v1317_v25 = vld [vmem:[%s1745_s1 + $0x250] ss:$8 sps:$4 sm:$0xff]   ;;  %v1328_v26 = vld [vmem:[%s1745_s1 + $0x264] ss:$8 sps:$4 sm:$0xff]   ;;  %v1326_v29 = vld [vmem:[%s1745_s1 + $0x260] ss:$8 sps:$4 sm:$0xff]  }
  0x20   :  { %748 = vmatpush1.bf16.msra.mxu0 %v1235_v31  ;;  %676 = vmatprep.subr.bf16.mxu1 %v1236_v32  ;;  %v1324_v27 = vld [vmem:[%s1746_s0 + $0x78] ss:$20 sps:$4 sm:$0xff]   ;;  %v1331_v30 = vld [vmem:[%s1745_s1 + $0x274] ss:$8 sps:$4 sm:$0xff]   ;;  %v1336_v32 = vmov 0   ;;  %vm1693_vm3 = vmor %vm1008_vm2, %vm1007_vm1 }
  0x21   :  { %749 = vmatprep.subr.bf16.mxu0 %v1238_v33  ;;  %v1329_v31 = vld [vmem:[%s1745_s1 + $0x270] ss:$8 sps:$4 sm:$0xff]  }
  0x22   :  { %v1332_v33 = vld [vmem:[%s1746_s0 + $0x10] ss:$20 sps:$4 sm:$0xff]  }
  0x23   :  { %677 = vmatpush1.bf16.msra.mxu1 %v1240_v34  ;;  %v1333_v34 = vld [vmem:[%s1746_s0 + $0x60] ss:$20 sps:$4 sm:$0xff]  }
  0x24   :  { %750 = vmatpush1.bf16.msra.mxu0 %v1241_v35  ;;  %678 = vmatprep.subr.bf16.mxu1 %v1242_v36  ;;  %v1334_v35 = vld [vmem:[%s1746_s0 + $0x38] ss:$20 sps:$4 sm:$0xff]   ;;  %v1335_v36 = vld [vmem:[%s1746_s0 + $0x88] ss:$20 sps:$4 sm:$0xff]  }
  0x25   :  { %751 = vmatprep.subr.bf16.mxu0 %v1244_v37  ;;  %v1337_v37 = vmov 0.0  }
  0x26   :  { %21 = vst.msk [vmem:[#allocation2 + $0x8] sm:$0xff] %vm20_vm0, %v1337_v37  ;;  %23 = vst.msk [vmem:[#allocation2 + $0x18] sm:$0xff] %vm20_vm0, %v1337_v37 }
  0x27   :  { %679 = vmatpush1.bf16.msra.mxu1 %v1246_v38  ;;  %25 = vst.msk [vmem:[#allocation2 + $0x28] sm:$0xff] %vm20_vm0, %v1337_v37  ;;  %27 = vst.msk [vmem:[#allocation2 + $0x38] sm:$0xff] %vm20_vm0, %v1337_v37 }
  0x28   :  { %752 = vmatpush1.bf16.msra.mxu0 %v1247_v39  ;;  %680 = vmatprep.subr.bf16.mxu1 %v1248_v40  ;;  %29 = vst.msk [vmem:[#allocation2 + $0x48] sm:$0xff] %vm20_vm0, %v1337_v37  ;;  %31 = vst.msk [vmem:[#allocation2 + $0x58] sm:$0xff] %vm20_vm0, %v1337_v37 }
  0x29   :  { %753 = vmatprep.subr.bf16.mxu0 %v1250_v41  ;;  %33 = vst.msk [vmem:[#allocation2 + $0x68] sm:$0xff] %vm20_vm0, %v1337_v37  ;;  %35 = vst.msk [vmem:[#allocation2 + $0x78] sm:$0xff] %vm20_vm0, %v1337_v37 }
  0x2b   :  { %681 = vmatpush1.bf16.msra.mxu1 %v1252_v42 }
  0x2c   :  { %754 = vmatpush1.bf16.msra.mxu0 %v1253_v43  ;;  %682 = vmatprep.subr.bf16.mxu1 %v1254_v44 }
  0x2d   :  { %755 = vmatprep.subr.bf16.mxu0 %v1256_v45 }
  0x2f   :  { %683 = vmatpush1.bf16.msra.mxu1 %v1258_v46 }
  0x30   :  { %756 = vmatpush1.bf16.msra.mxu0 %v1259_v47  ;;  %684 = vmatprep.subr.bf16.mxu1 %v1260_v48 }
  0x31   :  { %757 = vmatprep.subr.bf16.mxu0 %v1262_v50 }
  0x33   :  { %685 = vmatpush1.bf16.msra.mxu1 %v1264_v52 }
  0x34   :  { %758 = vmatpush1.bf16.msra.mxu0 %v1265_v53  ;;  %686 = vmatprep.subr.bf16.mxu1 %v1266_v54 }
  0x35   :  { %759 = vmatprep.subr.bf16.mxu0 %v1268_v55 }
  0x37   :  { %687 = vmatpush1.bf16.msra.mxu1 %v1270_v56 }
  0x38   :  { %760 = vmatpush1.bf16.msra.mxu0 %v1271_v57  ;;  %688 = vmatprep.subr.bf16.mxu1 %v1272_v58 }
  0x39   :  { %761 = vmatprep.subr.bf16.mxu0 %v1274_v59 }
  0x3b   :  { %689 = vmatpush1.bf16.msra.mxu1 %v1276_v60 }
  0x3c   :  { %762 = vmatpush1.bf16.msra.mxu0 %v1277_v61  ;;  %690 = vmatprep.subr.bf16.mxu1 %v1278_v62 }
  0x3d   :  { %763 = vmatprep.subr.bf16.mxu0 %v1280_v63 }
  0x3f   :  { %691 = vmatpush1.bf16.msra.mxu1 %v1282_v0 }
  0x40   :  { %764 = vmatpush1.bf16.msra.mxu0 %v1283_v1  ;;  %1138 = vmatprep.subr.bf16.mxu1 %v1292_v2 }
  0x41   :  { %806 = vmatprep.subr.bf16.mxu0 %v1292_v2 }
  0x42   :  { %693 = vmatmul.mubr.bf16.vlgmr.msra.gmra.mrb[0].mxu1 %v1284_v3 }
  0x43   :  { %766 = vmatmul.mubr.bf16.vlgmr.msra.gmra.mrb[0].mxu0 %v1287_v4  ;;  %1146 = vmatpush1.bf16.msra.mxu1 %v1290_v5 }
  0x44   :  { %807 = vmatpush1.bf16.msra.mxu0 %v1290_v5  ;;  %1139 = vmatprep.subr.bf16.mxu1 %v1295_v6 }
  0x45   :  { %808 = vmatprep.subr.bf16.mxu0 %v1295_v6  ;;  %702 = vmatprep.mubr.bf16.mxu1 %v1296_v7  ;;  %v933_v6 = vlaneseq }
  0x46   :  { %775 = vmatprep.mubr.bf16.mxu0 %v1298_v8 }
  0x47   :  { %1147 = vmatpush1.bf16.msra.mxu1 %v1293_v9 }
  0x48   :  { %809 = vmatpush1.bf16.msra.mxu0 %v1293_v9  ;;  %1140 = vmatprep.subr.bf16.mxu1 %v1304_v10 }
  0x49   :  { %810 = vmatprep.subr.bf16.mxu0 %v1304_v10  ;;  %v934_v10 = vshrl.u32 %v933_v6, 7 }
  0x4a   :  { %703 = vmatmul.mubr.bf16.gmra.mrb[4].mxu1 %v1300_v11 }
  0x4b   :  { %776 = vmatmul.mubr.bf16.gmra.mrb[4].mxu0 %v1301_v12  ;;  %1148 = vmatpush1.bf16.msra.mxu1 %v1302_v13  ;;  %v37_v12 = vld [vmem:[#allocation2 + $0x8] sm:$0xff] }
  0x4c   :  { %811 = vmatpush1.bf16.msra.mxu0 %v1302_v13  ;;  %1141 = vmatprep.subr.bf16.mxu1 %v1307_v14 }
  0x4d   :  { %812 = vmatprep.subr.bf16.mxu0 %v1307_v14  ;;  %712 = vmatprep.mubr.bf16.mxu1 %v1308_v15  ;;  %v45_v14 = vld [vmem:[#allocation2 + $0x48] sm:$0xff] }
  0x4e   :  { %785 = vmatprep.mubr.bf16.mxu0 %v1310_v16 }
  0x4f   :  { %1149 = vmatpush1.bf16.msra.mxu1 %v1305_v17 }
  0x50   :  { %813 = vmatpush1.bf16.msra.mxu0 %v1305_v17  ;;  %1142 = vmatprep.subr.bf16.mxu1 %v1316_v18 }
  0x51   :  { %814 = vmatprep.subr.bf16.mxu0 %v1316_v18 }
  0x52   :  { %713 = vmatmul.mubr.bf16.gmra.mrb[8].mxu1 %v1312_v19 }
  0x53   :  { %786 = vmatmul.mubr.bf16.gmra.mrb[8].mxu0 %v1313_v20  ;;  %1150 = vmatpush1.bf16.msra.mxu1 %v1314_v21 }
  0x54   :  { %815 = vmatpush1.bf16.msra.mxu0 %v1314_v21  ;;  %1143 = vmatprep.subr.bf16.mxu1 %v1319_v22 }
  0x55   :  { %816 = vmatprep.subr.bf16.mxu0 %v1319_v22  ;;  %722 = vmatprep.mubr.bf16.mxu1 %v1320_v23  ;;  %v39_v22 = vld [vmem:[#allocation2 + $0x18] sm:$0xff] }
  0x56   :  { %795 = vmatprep.mubr.bf16.mxu0 %v1322_v24  ;;  %v47_v24 = vld [vmem:[#allocation2 + $0x58] sm:$0xff] }
  0x57   :  { %1151 = vmatpush1.bf16.msra.mxu1 %v1317_v25 }
  0x58   :  { %817 = vmatpush1.bf16.msra.mxu0 %v1317_v25  ;;  %1144 = vmatprep.subr.bf16.mxu1 %v1328_v26 }
  0x59   :  { %818 = vmatprep.subr.bf16.mxu0 %v1328_v26 }
  0x5a   :  { %723 = vmatmul.mubr.bf16.gmra.mrb[12].mxu1 %v1324_v27 }
  0x5b   :  { %796 = vmatmul.mubr.bf16.gmra.mrb[12].mxu0 %v1325_v28  ;;  %1152 = vmatpush1.bf16.msra.mxu1 %v1326_v29 }
  0x5c   :  { %819 = vmatpush1.bf16.msra.mxu0 %v1326_v29  ;;  %1145 = vmatprep.subr.bf16.mxu1 %v1331_v30 }
  0x5d   :  { %820 = vmatprep.subr.bf16.mxu0 %v1331_v30  ;;  %838 = vmatprep.mubr.bf16.mxu0 %v1336_v32  ;;  %v935_v30 = vsub.s32 0, %v934_v10 }
  0x5e   :  { %858 = vmatprep.mubr.bf16.mxu1 %v1336_v32 }
  0x5f   :  { %1153 = vmatpush1.bf16.msra.mxu1 %v1329_v31 }
  0x60   :  { %821 = vmatpush1.bf16.msra.mxu0 %v1329_v31  ;;  %v939_v31 = vsub.s32 1, %v934_v10 }
  0x62   :  { %859 = vmatmul.mubr.bf16.vlgmr.msra.gmra.mrb[16].mxu1 %v1333_v34 }
  0x63   :  { %839 = vmatmul.mubr.bf16.vlgmr.msra.gmra.mrb[0].mxu0 %v1332_v33  ;;  %868 = vmatprep.mubr.bf16.mxu1 %v1336_v32 }
  0x64   :  { %848 = vmatprep.mubr.bf16.mxu0 %v1336_v32  ;;  %v931_v32 = vld [vmem:[%s1747_s2] sm:$0x3] }
  0x65   :  { %v936_v37 = vrot.slane %v931_v32, %v935_v30 }
  0x6a   :  { %869 = vmatmul.mubr.bf16.gmra.mrb[20].mxu1 %v1335_v36 }
  0x6b   :  { %849 = vmatmul.mubr.bf16.gmra.mrb[4].mxu0 %v1334_v35 }
 0x115   :  { %v694_v38 = vpop.f32.mrb[0].mxu1 }
 0x116   :  { %v696_v39 = vpop.f32.mrb[1].mxu1 }
 0x117   :  { %v698_v40 = vpop.f32.mrb[2].mxu1 }
 0x118   :  { %v700_v41 = vpop.f32.mrb[3].mxu1 }
 0x11d   :  { %v1666_v42 = vpop.f32.mrb[4].mxu1 }
 0x11e   :  { %v1668_v43 = vpop.f32.mrb[5].mxu1 }
 0x11f   :  { %v1670_v44 = vpop.f32.mrb[6].mxu1 }
 0x120   :  { %v1672_v45 = vpop.f32.mrb[7].mxu1 }
 0x125   :  { %v714_v46 = vpop.f32.mrb[8].mxu1 }
 0x126   :  { %v787_v47 = vpop.f32.mrb[8].mxu0  ;;  %v716_v49 = vpop.f32.mrb[9].mxu1 }
 0x127   :  { %v788_v48 = vadd.f32 %v787_v47, %v714_v46  ;;  %v789_v50 = vpop.f32.mrb[9].mxu0  ;;  %v718_v52 = vpop.f32.mrb[10].mxu1  ;;  %v49_v47 = vld [vmem:[#allocation2 + $0x68] sm:$0xff] }
 0x128   :  { %v790_v51 = vadd.f32 %v789_v50, %v716_v49  ;;  %v791_v53 = vpop.f32.mrb[10].mxu0  ;;  %v720_v55 = vpop.f32.mrb[11].mxu1 }
 0x129   :  { %v792_v54 = vadd.f32 %v791_v53, %v718_v52  ;;  %v793_v56 = vpop.f32.mrb[11].mxu0 }
 0x12a   :  { %v794_v57 = vadd.f32 %v793_v56, %v720_v55  ;;  %v43_v55 = vld [vmem:[#allocation2 + $0x38] sm:$0xff] }
 0x12d   :  { %v724_v58 = vpop.f32.mrb[12].mxu1 }
 0x12e   :  { %v797_v59 = vpop.f32.mrb[12].mxu0  ;;  %v726_v61 = vpop.f32.mrb[13].mxu1 }
 0x12f   :  { %v798_v60 = vadd.f32 %v797_v59, %v724_v58  ;;  %v799_v62 = vpop.f32.mrb[13].mxu0  ;;  %v728_v0 = vpop.f32.mrb[14].mxu1 }
 0x130   :  { %v800_v63 = vadd.f32 %v799_v62, %v726_v61  ;;  %v801_v1 = vpop.f32.mrb[14].mxu0  ;;  %v730_v3 = vpop.f32.mrb[15].mxu1 }
 0x131   :  { %v802_v2 = vadd.f32 %v801_v1, %v728_v0  ;;  %v803_v4 = vpop.f32.mrb[15].mxu0 }
 0x132   :  { %v804_v5 = vadd.f32 %v803_v4, %v730_v3 }
 0x135   :  { %v860_v8 = vpop.f32.mrb[16].mxu1 }
 0x136   :  { %v840_v7 = vpop.f32.mrb[0].mxu0  ;;  %v861_v11 = vadd.f32 %v860_v8, %v788_v48  ;;  %v862_v15 = vpop.f32.mrb[17].mxu1 }
 0x137   :  { %v1154_v9 = vadd.f32 %v840_v7, %v694_v38  ;;  %v842_v13 = vpop.f32.mrb[1].mxu0  ;;  %v863_v17 = vadd.f32 %v862_v15, %v790_v51  ;;  %v864_v19 = vpop.f32.mrb[18].mxu1  ;;  %v1681_v38 = vrot.slane %v931_v32, %v939_v31 }
 0x138   :  { %v1155_v16 = vadd.f32 %v842_v13, %v696_v39  ;;  %v844_v18 = vpop.f32.mrb[2].mxu0  ;;  %v865_v21 = vadd.f32 %v864_v19, %v792_v54  ;;  %v866_v25 = vpop.f32.mrb[19].mxu1  ;;  %v951_v0 = vadd.f32 %v936_v37, %v861_v11 }
 0x139   :  { %v1156_v20 = vadd.f32 %v844_v18, %v698_v40  ;;  %v846_v23 = vpop.f32.mrb[3].mxu0  ;;  %v888_v27 = vadd.f32 %v863_v17, %v45_v14  ;;  %v867_v29 = vadd.f32 %v866_v25, %v794_v57  ;;  %v51_v57 = vld [vmem:[#allocation2 + $0x78] sm:$0xff]  ;;  %v943_v62 = vadd.f32 %v1154_v9, %v936_v37 }
 0x13a   :  { %v880_v26 = vadd.f32 %v1155_v16, %v37_v12  ;;  %v1157_v28 = vadd.f32 %v846_v23, %v700_v41  ;;  %v41_v41 = vld [vmem:[#allocation2 + $0x28] sm:$0xff] }
 0x13b   :  { %905 = vst.msk [vmem:[#allocation2 + $0x48] sm:$0xff] %vm20_vm0, %v888_v27  ;;  %v890_v34 = vadd.f32 %v867_v29, %v47_v24 }
 0x13c   :  { %897 = vst.msk [vmem:[#allocation2 + $0x8] sm:$0xff] %vm20_vm0, %v880_v26  ;;  %v882_v33 = vadd.f32 %v1157_v28, %v39_v22 }
 0x13d   :  { %907 = vst.msk [vmem:[#allocation2 + $0x58] sm:$0xff] %vm20_vm0, %v890_v34  ;;  %v870_v36 = vpop.f32.mrb[20].mxu1 }
 0x13e   :  { %899 = vst.msk [vmem:[#allocation2 + $0x18] sm:$0xff] %vm20_vm0, %v882_v33  ;;  %v850_v35 = vpop.f32.mrb[4].mxu0  ;;  %v871_v40 = vadd.f32 %v870_v36, %v798_v60  ;;  %v872_v48 = vpop.f32.mrb[21].mxu1 }
 0x13f   :  { %v1158_v39 = vadd.f32 %v850_v35, %v1666_v42  ;;  %v852_v46 = vpop.f32.mrb[5].mxu0  ;;  %v873_v50 = vadd.f32 %v872_v48, %v800_v63  ;;  %v874_v52 = vpop.f32.mrb[22].mxu1 }
 0x140   :  { %v1159_v49 = vadd.f32 %v852_v46, %v1668_v43  ;;  %v854_v51 = vpop.f32.mrb[6].mxu0  ;;  %v875_v54 = vadd.f32 %v874_v52, %v802_v2  ;;  %v876_v58 = vpop.f32.mrb[23].mxu1  ;;  %v955_v17 = vadd.f32 %v936_v37, %v871_v40 }
 0x141   :  { %v1160_v53 = vadd.f32 %v854_v51, %v1670_v44  ;;  %v856_v56 = vpop.f32.mrb[7].mxu0  ;;  %v892_v59 = vadd.f32 %v873_v50, %v49_v47  ;;  %v877_v61 = vadd.f32 %v876_v58, %v804_v5  ;;  %v953_v5 = vadd.f32 %v936_v37, %v865_v21 }
 0x142   :  { %v884_v42 = vadd.f32 %v1159_v49, %v41_v41  ;;  %v1161_v60 = vadd.f32 %v856_v56, %v1672_v45  ;;  %v924_v3 = vld [vmem:[#allocation2 + $0x48] sm:$0xff]  ;;  %v945_v45 = vadd.f32 %v1156_v20, %v936_v37  ;;  %v947_v16 = vadd.f32 %v1158_v39, %v936_v37 }
 0x143   :  { %v916_v1 = vld [vmem:[#allocation2 + $0x8] sm:$0xff]  ;;  %v952_v63 = vadd.f32 %v1681_v38, %v924_v3  ;;  %909 = vst.msk [vmem:[#allocation2 + $0x68] sm:$0xff] %vm20_vm0, %v892_v59  ;;  %v894_v2 = vadd.f32 %v877_v61, %v51_v57  ;;  %v949_v20 = vadd.f32 %v1160_v53, %v936_v37  ;;  %v957_v21 = vadd.f32 %v936_v37, %v875_v54 }
 0x144   :  { %v944_v43 = vadd.f32 %v1681_v38, %v916_v1  ;;  %901 = vst.msk [vmem:[#allocation2 + $0x28] sm:$0xff] %vm20_vm0, %v884_v42  ;;  %v886_v44 = vadd.f32 %v1161_v60, %v43_v55  ;;  %v926_v7 = vld [vmem:[#allocation2 + $0x58] sm:$0xff] }
 0x145   :  { %v918_v6 = vld [vmem:[#allocation2 + $0x18] sm:$0xff]  ;;  %v1134_v9 = vpack.c.bf16 %v952_v63, %v951_v0  ;;  %v954_v11 = vadd.f32 %v1681_v38, %v926_v7  ;;  %911 = vst.msk [vmem:[#allocation2 + $0x78] sm:$0xff] %vm20_vm0, %v894_v2 }
 0x146   :  { %v1130_v8 = vpack.c.bf16 %v944_v43, %v943_v62  ;;  %v946_v10 = vadd.f32 %v1681_v38, %v918_v6  ;;  %903 = vst.msk [vmem:[#allocation2 + $0x38] sm:$0xff] %vm20_vm0, %v886_v44 }
 0x147   :  { %1014 = vst.msk [vmem:[%s1748_s3 + $0x20] sm:$0xff] %vm1693_vm3, %v1134_v9  ;;  %v1135_v13 = vpack.c.bf16 %v954_v11, %v953_v5 }
 0x148   :  { %1010 = vst.msk [vmem:[%s1748_s3] sm:$0xff] %vm1693_vm3, %v1130_v8  ;;  %v1131_v12 = vpack.c.bf16 %v946_v10, %v945_v45 }
 0x149   :  { %1015 = vst.msk [vmem:[%s1748_s3 + $0x28] sm:$0xff] %vm1693_vm3, %v1135_v13 }
 0x14a   :  { %1011 = vst.msk [vmem:[%s1748_s3 + $0x8] sm:$0xff] %vm1693_vm3, %v1131_v12  ;;  %v928_v15 = vld [vmem:[#allocation2 + $0x68] sm:$0xff] }
 0x14b   :  { %v920_v14 = vld [vmem:[#allocation2 + $0x28] sm:$0xff]  ;;  %v956_v19 = vadd.f32 %v1681_v38, %v928_v15 }
 0x14c   :  { %v948_v18 = vadd.f32 %v1681_v38, %v920_v14  ;;  %v930_v23 = vld [vmem:[#allocation2 + $0x78] sm:$0xff] }
 0x14d   :  { %v922_v22 = vld [vmem:[#allocation2 + $0x38] sm:$0xff]  ;;  %v1136_v25 = vpack.c.bf16 %v956_v19, %v955_v17  ;;  %v958_v27 = vadd.f32 %v1681_v38, %v930_v23 }
 0x14e   :  { %v1132_v24 = vpack.c.bf16 %v948_v18, %v947_v16  ;;  %v950_v26 = vadd.f32 %v1681_v38, %v922_v22 }
 0x14f   :  { %1016 = vst.msk [vmem:[%s1748_s3 + $0x30] sm:$0xff] %vm1693_vm3, %v1136_v25  ;;  %v1137_v29 = vpack.c.bf16 %v958_v27, %v957_v21 }
 0x150   :  { %1012 = vst.msk [vmem:[%s1748_s3 + $0x10] sm:$0xff] %vm1693_vm3, %v1132_v24  ;;  %v1133_v28 = vpack.c.bf16 %v950_v26, %v949_v20 }
 0x151   :  { %1017 = vst.msk [vmem:[%s1748_s3 + $0x38] sm:$0xff] %vm1693_vm3, %v1137_v29 }
 0x152   :  { %1013 = vst.msk [vmem:[%s1748_s3 + $0x18] sm:$0xff] %vm1693_vm3, %v1133_v28 }

// kernel: spikeformer_forward.14
= control target key start
LH: loop header
LB: loop body
LE: loop exit
PB: predicated region body
PF: predicated region fallthrough
CT: control target
= control target key end

     0   :  { %s309_s6 = smov 0   ;;  %s311_s7 = smov 0   ;;  %s342_s0 = inlined_call_operand.vmem [shape: bf16[2,8,128], index: 0, kind: input, shape index: {}]   ;;  %s343_s1 = inlined_call_operand.vmem [shape: bf16[2,8,128], index: 1, kind: output, shape index: {}]  }
   0x1   :  { %s313_s8 = smov 0  }
   0x2 LB: > { %s20_s9 = sadd.s32 1, %s291_s7  ;;  %p240_p0 = scmp.ge.s32.totalorder %s295_s8, 1  ;;  %s295_s8 = sphi %s313_s8, %s11_s8   ;;  %s291_s7 = sphi %s311_s7, %s345_s7   ;;  %s287_s6 = sphi %s309_s6, %s344_s6  }
   0x3   : > { %p21_p1 = scmp.ge.s32.totalorder %s20_s9, 2  ;;  %p105_p2 = scmp.lt.s32.totalorder %s295_s8, 3 }
   0x5   : > { %s347_s9 = smov (%p21_p1, %s20_s9), 0  ;;  %p106_p3 = pnand %p240_p0, %p105_p2 }
   0x6   : > { %p129_p4 = scmp.lt.s32.totalorder (!%p106_p3), %s287_s6, 1  ;;  %p243_p5 = scmp.ne.s32.totalorder (!%p106_p3), %s287_s6, 0 }
   0x7   : > { %109 = sbr.rel (%p106_p3) target bundleno = 38 (0x26), region = 24 }
   0xe   : > { %s130_s10 = scalar_select %p129_p4, %s287_s6, 1 }
   0xf   : > { %146 = sbr.rel (%p243_p5) target bundleno = 22 (0x16), region = 28  ;;  %v297_v0 = vmov (!%p243_p5), 0.0  }
  0x10   : > { %s241_s11 = sshll.u32 %s130_s10, 2  ;;  %147 = vst [vmem:[#allocation2] sm:$0xff] (!%p243_p5), %v297_v0 }
  0x11   : > { %s135_s14 = scalar_lea.vmem %s342_s0, %s241_s11  ;;  %s142_s17 = scalar_lea.vmem %s343_s1, %s241_s11 }
  0x16 PF: > { %v148_v1 = vld [vmem:[%s135_s14] sm:$0xf]  ;;  %v298_v7 = vmov 0.0  }
  0x17   : > { %v150_v2 = vld [vmem:[#allocation2] sm:$0xff]  ;;  %v149_v3 = vunpack.c.l.bf16 %v148_v1 }
  0x19   : > { %v151_v4 = vsub.f32 %v149_v3, %v150_v2 }
  0x1b   : > { %v152_v5 = vmul.f32 0.5, %v151_v4 }
  0x1d   : > { %v153_v6 = vadd.f32 %v152_v5, %v150_v2 }
  0x1f   : > { %vm154_vm0 = vcmp.ge.f32.partialorder %v153_v6, 1.0 }
  0x20   : > { %v244_v8 = vsel %vm154_vm0, 1.0, %v298_v7 }
  0x21   : > { %v157_v9 = vsub.f32 1.0, %v244_v8  ;;  %v160_v10 = vpack.c.bf16 %v244_v8, %v244_v8 }
  0x23   : > { %v158_v11 = vmul.f32 %v157_v9, %v153_v6  ;;  %161 = vst [vmem:[%s142_s17] sm:$0xf] %v160_v10 }
  0x25   : > { %159 = vst [vmem:[#allocation2] sm:$0xff] %v158_v11 }
  0x26 PF: > { %s11_s8 = sadd.s32 1, %s295_s8   ;;  %s344_s6 = smov %s291_s7 }
  0x27   : > { %p8_p6 = scmp.ge.s32.totalorder %s11_s8, 4   ;;  %s345_s7 = smov %s347_s9 }
  0x29   :  { %10 = sbr.rel (!%p8_p6) target bundleno = 2 (0x2), region = 58 }

// kernel: spikeformer_forward.15
= control target key start
LH: loop header
LB: loop body
LE: loop exit
PB: predicated region body
PF: predicated region fallthrough
CT: control target
= control target key end

     0   :  { %8 = vsyncpa [#allocation4], 0  ;;  %s507_s12 = smov 0   ;;  %s601_s0 = inlined_call_operand.vmem [shape: bf16[2,2,4,128], index: 0, kind: input, shape index: {}]   ;;  %s602_s1 = inlined_call_operand.vmem [shape: f32[128,128], index: 1, kind: input, shape index: {}]   ;;  %s603_s2 = inlined_call_operand.vmem [shape: f32[1,128], index: 2, kind: input, shape index: {}]   ;;  %s604_s3 = inlined_call_operand.hbm [shape: f32[2,128], index: 3, kind: output, shape index: {}]  }
   0x1 LB: > { %s513_s13 = sadd.s32 4294967295, %s480_s12   ;;  %p338_p0 = scmp.ge.s32.totalorder %s480_s12, 1  ;;  %s480_s12 = sphi %s507_s12, %s14_s12  }
   0x2   : > { %p133_p1 = scmp.lt.s32.totalorder %s480_s12, 3 }
   0x4   : > { %p134_p2 = pnand %p338_p0, %p133_p1 }
   0x5   : > { %p152_p3 = scmp.lt.s32.totalorder (!%p134_p2), %s513_s13, 1  ;;  %p341_p4 = scmp.ne.s32.totalorder (!%p134_p2), %s513_s13, 0 }
   0x6   : > { %137 = sbr.rel (%p134_p2) target bundleno = 297 (0x129), region = 32 }
   0xd   : > { %s153_s14 = scalar_select %p152_p3, %s513_s13, 1 }
   0xe   : > { %160 = sbr.rel (%p341_p4) target bundleno = 21 (0x15), region = 36  ;;  %v482_v0 = vmov (!%p341_p4), 0.0  }
   0xf   : > { %s348_s15 = sshll.u32 %s153_s14, 2  ;;  %161 = vst [vmem:[#allocation2] sm:$0x3] (!%p341_p4), %v482_v0 }
  0x10   : > { %s156_s18 = scalar_lea.vmem %s601_s0, %s348_s15 }
  0x15 PF: > { %v163_v1 = vld [vmem:[%s156_s18] sm:$0x3]  ;;  %v164_v2 = vld [vmem:[%s156_s18 + $0x2] sm:$0x3]  ;;  %vm167_vm0 = vcmask 1043456   ;;  %vm184_vm1 = vcmask 1041409  }
  0x16   : > { %v165_v3 = vunpack.c.l.bf16 %v163_v1  ;;  %v166_v4 = vunpack.c.l.bf16 %v164_v2  ;;  %v162_v17 = vld [vmem:[#allocation2] sm:$0x3]  ;;  %p342_p5 = scmp.ne.s32.totalorder %s513_s13, 1 }
  0x17   : > { %v195_v22 = vld [vmem:[%s602_s1] sm:$0xff] (!%p342_p5)  ;;  %v196_v23 = vld [vmem:[%s602_s1 + $0x8] sm:$0xff] (!%p342_p5)  ;;  %v197_v24 = vld [vmem:[%s602_s1 + $0x10] sm:$0xff] (!%p342_p5)  ;;  %v483_v25 = vmov (!%p342_p5), 0.0|0.0   ;;  %vm484_vm2 = vmmov (!%p342_p5), 0   ;;  %v485_v28 = vmov (!%p342_p5), 0.0  }
  0x18   : > { %v168_v5 = vsel %vm167_vm0, %v165_v3, 0.0  ;;  %v175_v6 = vsel %vm167_vm0, %v166_v4, 0.0  ;;  %401 = vmatprep.subr.bf16.mxu0 (!%p342_p5), %v483_v25  ;;  %v402_v26 = vpack.c.bf16 (!%p342_p5), %v196_v23, %v195_v22  ;;  %v198_v27 = vld [vmem:[%s602_s1 + $0x18] sm:$0xff] (!%p342_p5)  ;;  %398 = vmatprep.mubr.msk.f32.mxu0 (!%p342_p5), %vm484_vm2, %v485_v28  ;;  %v199_v30 = vld [vmem:[%s602_s1 + $0x20] sm:$0xff] (!%p342_p5)  ;;  %v200_v31 = vld [vmem:[%s602_s1 + $0x28] sm:$0xff] (!%p342_p5) }
  0x19   : > { %v169_v7 = vrot.slane %v168_v5, 4  ;;  %v176_v8 = vrot.slane %v175_v6, 4  ;;  %v405_v29 = vpack.c.bf16 (!%p342_p5), %v198_v27, %v197_v24  ;;  %v408_v32 = vpack.c.bf16 (!%p342_p5), %v200_v31, %v199_v30  ;;  %v201_v33 = vld [vmem:[%s602_s1 + $0x30] sm:$0xff] (!%p342_p5)  ;;  %v202_v34 = vld [vmem:[%s602_s1 + $0x38] sm:$0xff] (!%p342_p5)  ;;  %v203_v36 = vld [vmem:[%s602_s1 + $0x40] sm:$0xff] (!%p342_p5) }
  0x1a   : > { %403 = vmatpush3.bf16.msra.mxu0 (!%p342_p5), %v402_v26  ;;  %v411_v35 = vpack.c.bf16 (!%p342_p5), %v202_v34, %v201_v33  ;;  %v204_v37 = vld [vmem:[%s602_s1 + $0x48] sm:$0xff] (!%p342_p5)  ;;  %v205_v39 = vld [vmem:[%s602_s1 + $0x50] sm:$0xff] (!%p342_p5)  ;;  %v206_v40 = vld [vmem:[%s602_s1 + $0x58] sm:$0xff] (!%p342_p5) }
  0x1b   : > { %v170_v9 = vadd.f32 %v169_v7, %v168_v5  ;;  %v177_v10 = vadd.f32 %v176_v8, %v175_v6  ;;  %404 = vmatprep.subr.bf16.mxu0 (!%p342_p5), %v483_v25  ;;  %v414_v38 = vpack.c.bf16 (!%p342_p5), %v204_v37, %v203_v36  ;;  %v417_v41 = vpack.c.bf16 (!%p342_p5), %v206_v40, %v205_v39  ;;  %v207_v42 = vld [vmem:[%s602_s1 + $0x60] sm:$0xff] (!%p342_p5)  ;;  %v208_v43 = vld [vmem:[%s602_s1 + $0x68] sm:$0xff] (!%p342_p5)  ;;  %v209_v45 = vld [vmem:[%s602_s1 + $0x70] sm:$0xff] (!%p342_p5) }
  0x1c   : > { %v420_v44 = vpack.c.bf16 (!%p342_p5), %v208_v43, %v207_v42  ;;  %v210_v46 = vld [vmem:[%s602_s1 + $0x78] sm:$0xff] (!%p342_p5)  ;;  %v343_v50 = vld [vmem:[%s603_s2] ss:$0 sm:$0xff] (!%p342_p5) }
  0x1d   : > { %v171_v11 = vrot.slane %v170_v9, 2  ;;  %v178_v12 = vrot.slane %v177_v10, 2  ;;  %v423_v47 = vpack.c.bf16 (!%p342_p5), %v210_v46, %v209_v45 }
  0x1e   : > { %406 = vmatpush3.bf16.msra.mxu0 (!%p342_p5), %v405_v29 }
  0x1f   : > { %v172_v13 = vadd.f32 %v171_v11, %v170_v9  ;;  %v179_v14 = vadd.f32 %v178_v12, %v177_v10  ;;  %407 = vmatprep.subr.bf16.mxu0 (!%p342_p5), %v483_v25 }
  0x21   : > { %v173_v15 = vrot.slane %v172_v13, 1  ;;  %v180_v16 = vrot.slane %v179_v14, 1 }
  0x22   : > { %192 = sbr.rel (%p342_p5) target bundleno = 272 (0x110), region = 40  ;;  %409 = vmatpush3.bf16.msra.mxu0 (!%p342_p5), %v408_v32 }
  0x23   : > { %v174_v18 = vadd.f32 %v173_v15, %v172_v13  ;;  %v181_v19 = vadd.f32 %v180_v16, %v179_v14  ;;  %410 = vmatprep.subr.bf16.mxu0 (!%p342_p5), %v483_v25 }
  0x25   : > { %v185_v20 = vsel %vm184_vm1, %v181_v19, %v174_v18 }
  0x26   : > { %v187_v21 = vadd.f32 %v185_v20, %v162_v17  ;;  %412 = vmatpush3.bf16.msra.mxu0 (!%p342_p5), %v411_v35 }
  0x27   : > { %413 = vmatprep.subr.bf16.mxu0 (!%p342_p5), %v483_v25 }
  0x28   : > { %188 = vst [vmem:[#allocation2] sm:$0x3] %v187_v21 }
  0x2a   : > { %415 = vmatpush3.bf16.msra.mxu0 %v414_v38 }
  0x2b   : > { %416 = vmatprep.subr.bf16.mxu0 %v483_v25 }
  0x2e   : > { %418 = vmatpush3.bf16.msra.mxu0 %v417_v41 }
  0x2f   : > { %419 = vmatprep.subr.bf16.mxu0 %v483_v25  ;;  %v193_v48 = vld [vmem:[#allocation2] sm:$0x3] }
  0x30   : > { %v194_v49 = vmul.f32 0.125, %v193_v48 }
  0x32   : > { %421 = vmatpush3.bf16.msra.mxu0 %v420_v44 }
  0x33   : > { %422 = vmatprep.subr.bf16.mxu0 %v483_v25 }
  0x36   : > { %424 = vmatpush3.bf16.msra.mxu0 %v423_v47 }
  0x39   : > { %399 = vmatmul.mubr.f32.vlgmr.msra.gmra.mrb[0].mxu0 %v194_v49 }
 0x10c   : > { %v284_v51 = vpop.f32.mrb[0].mxu0 }
 0x10d   : > { %v285_v52 = vadd.f32 %v343_v50, %v284_v51  ;;  %v400_v53 = vpop.f32.mrb[1].mxu0 }
 0x10f   : > { %288 = vst [vmem:[#allocation3] sm:$0x3] %v285_v52 }
 0x110 PF: > { %p429_p6 = scmp.eq.s32.totalorder %s513_s13, 1  ;;  %s486_s28 = smov [#allocation3]  }
 0x111   : > { %s296_s29 = sshll.u32 %s486_s28, 4  ;;  %s297_s29 = int_to_ptr.vmem [resolvable:$true] %s296_s29 }
 0x112   : > { %s444_s30 = scalar_lea.vmem %s297_s29, 32  ;;  %p451_p10 = scmp.lt.s32.totalorder %s297_s29, %s297_s29 }
 0x113   : > { %p445_p7 = scmp.ne.s32.totalorder %s297_s29, %s444_s30  ;;  %p452_p11 = scmp.lt.s32.totalorder %s444_s30, %s444_s30 }
 0x115   : > { %p446_p8 = pnand %p445_p7, %p429_p6  ;;  %p453_p12 = por %p452_p11, %p451_p10 }
 0x117   : > { %p447_p9 = pneg %p446_p8 }
 0x119   : > { %p454_p13 = pnand %p453_p12, %p447_p9 }
 0x11b   : > { %457 = shalt.err (!%p454_p13)
}
 0x11c   : > { %s458_s6 = scalar_lea.hbm %s604_s3, 32 }
 0x11d   : > { %p459_p0 = scmp.ne.s32.totalorder %s604_s3, %s458_s6  ;;  %p464_p3 = scmp.lt.u32.totalorder %s458_s6, %s604_s3 }
 0x11f   : > { %p460_p1 = pnand %p459_p0, %p429_p6 }
 0x121   : > { %p461_p2 = pneg %p460_p1 }
 0x123   : > { %p466_p4 = pnand %p464_p3, %p461_p2 }
 0x125   : > { %469 = shalt.err (!%p466_p4)
}
 0x126   : > { %426 = dma.vmem_to_hbm [thread:$0]  (%p429_p6), %s297_s29, 32, %s604_s3, [#allocation4]  }
 0x127   : > { %475 = dma.done.wait (%p429_p6), [#allocation4], 32  }
 0x128   : > { %477 = vsyncadd (%p429_p6), [#allocation4], 4294967264 }
 0x129 PF: > { %s14_s12 = sadd.s32 1, %s480_s12  }
 0x12a   : > { %p11_p5 = scmp.ge.s32.totalorder %s14_s12, 4  }
 0x12c   :  { %13 = sbr.rel (!%p11_p5) target bundleno = 1 (0x1), region = 67 }
 0x133   :  { %309 = vsyncpa [#allocation4], 1 }
 0x134   :  { %311 = vsyncpa [#allocation4 + $0x1], 1 }

// kernel: spikeformer_forward.13
= control target key start
LH: loop header
LB: loop body
LE: loop exit
PB: predicated region body
PF: predicated region fallthrough
CT: control target
= control target key end

     0   :  { %s2149_s1 = inlined_call_operand.vmem [shape: bf16[1792,128], index: 1, kind: input, shape index: {}]   ;;  %s2150_s0 = inlined_call_operand.vmem [shape: bf16[16,1792], index: 0, kind: input, shape index: {}]   ;;  %s2151_s2 = inlined_call_operand.vmem [shape: f32[1,128], index: 2, kind: input, shape index: {}]   ;;  %s2152_s3 = inlined_call_operand.vmem [shape: bf16[16,128], index: 3, kind: output, shape index: {}]  }
   0x1   :  { %v1612_v0 = vld [vmem:[%s2149_s1 + $0x40] sm:$0xff]   ;;  %v1616_v4 = vld [vmem:[%s2149_s1 + $0x48] sm:$0xff]   ;;  %v1620_v8 = vld [vmem:[%s2149_s1 + $0x50] sm:$0xff]  }
   0x2   :  { %v1613_v1 = vld [vmem:[%s2149_s1 + $0xc0] sm:$0xff]   ;;  %1458 = vmatprep.subr.bf16.mxu0 %v1612_v0  ;;  %v1617_v5 = vld [vmem:[%s2149_s1 + $0xc8] sm:$0xff]   ;;  %v1621_v9 = vld [vmem:[%s2149_s1 + $0xd0] sm:$0xff]  }
   0x3   :  { %v1614_v2 = vld [vmem:[%s2149_s1] sm:$0xff]   ;;  %1480 = vmatprep.subr.bf16.mxu1 %v1613_v1  ;;  %v1618_v6 = vld [vmem:[%s2149_s1 + $0x8] sm:$0xff]   ;;  %v1622_v10 = vld [vmem:[%s2149_s1 + $0x10] sm:$0xff]  }
   0x4   :  { %v1615_v3 = vld [vmem:[%s2149_s1 + $0x80] sm:$0xff]   ;;  %1459 = vmatpush3.bf16.msra.mxu0 %v1614_v2  ;;  %v1619_v7 = vld [vmem:[%s2149_s1 + $0x88] sm:$0xff]   ;;  %v1623_v11 = vld [vmem:[%s2149_s1 + $0x90] sm:$0xff]  }
   0x5   :  { %1481 = vmatpush3.bf16.msra.mxu1 %v1615_v3  ;;  %1460 = vmatprep.subr.bf16.mxu0 %v1616_v4  ;;  %v1624_v12 = vld [vmem:[%s2149_s1 + $0x58] sm:$0xff]   ;;  %v1628_v16 = vld [vmem:[%s2149_s1 + $0x60] sm:$0xff]   ;;  %v1632_v20 = vld [vmem:[%s2149_s1 + $0x68] sm:$0xff]  }
   0x6   :  { %1482 = vmatprep.subr.bf16.mxu1 %v1617_v5  ;;  %v1625_v13 = vld [vmem:[%s2149_s1 + $0xd8] sm:$0xff]   ;;  %v1629_v17 = vld [vmem:[%s2149_s1 + $0xe0] sm:$0xff]   ;;  %v1633_v21 = vld [vmem:[%s2149_s1 + $0xe8] sm:$0xff]  }
   0x7   :  { %v1626_v14 = vld [vmem:[%s2149_s1 + $0x18] sm:$0xff]   ;;  %v1630_v18 = vld [vmem:[%s2149_s1 + $0x20] sm:$0xff]   ;;  %v1634_v22 = vld [vmem:[%s2149_s1 + $0x28] sm:$0xff]  }
   0x8   :  { %1461 = vmatpush3.bf16.msra.mxu0 %v1618_v6  ;;  %v1627_v15 = vld [vmem:[%s2149_s1 + $0x98] sm:$0xff]   ;;  %v1631_v19 = vld [vmem:[%s2149_s1 + $0xa0] sm:$0xff]   ;;  %v1635_v23 = vld [vmem:[%s2149_s1 + $0xa8] sm:$0xff]  }
   0x9   :  { %1483 = vmatpush3.bf16.msra.mxu1 %v1619_v7  ;;  %1462 = vmatprep.subr.bf16.mxu0 %v1620_v8  ;;  %v1636_v24 = vld [vmem:[%s2149_s1 + $0x70] sm:$0xff]   ;;  %v1640_v28 = vld [vmem:[%s2149_s1 + $0x78] sm:$0xff]   ;;  %v1647_v34 = vld [vmem:[%s2150_s0 + $0x8] ss:$56 sps:$4 sm:$0xff]  }
   0xa   :  { %1484 = vmatprep.subr.bf16.mxu1 %v1621_v9  ;;  %v1637_v25 = vld [vmem:[%s2149_s1 + $0xf0] sm:$0xff]   ;;  %v1641_v29 = vld [vmem:[%s2149_s1 + $0xf8] sm:$0xff]   ;;  %v1649_v35 = vld [vmem:[%s2150_s0 + $0xc] ss:$56 sps:$4 sm:$0xff]  }
   0xb   :  { %v1638_v26 = vld [vmem:[%s2149_s1 + $0x30] sm:$0xff]   ;;  %v1642_v30 = vld [vmem:[%s2149_s1 + $0x38] sm:$0xff]   ;;  %v1650_v36 = vld [vmem:[%s2149_s1 + $0x140] sm:$0xff]   ;;  %1076 = vmatprep.mubr.bf16.mxu1 %v1649_v35 }
   0xc   :  { %1463 = vmatpush3.bf16.msra.mxu0 %v1622_v10  ;;  %v1639_v27 = vld [vmem:[%s2149_s1 + $0xb0] sm:$0xff]   ;;  %v1643_v31 = vld [vmem:[%s2149_s1 + $0xb8] sm:$0xff]   ;;  %v1651_v37 = vld [vmem:[%s2149_s1 + $0x100] sm:$0xff]  }
   0xd   :  { %1485 = vmatpush3.bf16.msra.mxu1 %v1623_v11  ;;  %1464 = vmatprep.subr.bf16.mxu0 %v1624_v12  ;;  %v1644_v32 = vld [vmem:[%s2150_s0] ss:$56 sps:$4 sm:$0xff]   ;;  %v1646_v33 = vld [vmem:[%s2150_s0 + $0x4] ss:$56 sps:$4 sm:$0xff]   ;;  %v1654_v40 = vld [vmem:[%s2149_s1 + $0x148] sm:$0xff]  }
   0xe   :  { %1486 = vmatprep.subr.bf16.mxu1 %v1625_v13  ;;  %1035 = vmatprep.mubr.bf16.mxu0 %v1646_v33  ;;  %v1652_v38 = vld [vmem:[%s2149_s1 + $0x1c0] sm:$0xff]   ;;  %v1655_v41 = vld [vmem:[%s2149_s1 + $0x108] sm:$0xff]   ;;  %v1658_v44 = vld [vmem:[%s2149_s1 + $0x150] sm:$0xff]  }
   0xf   :  { %v1653_v39 = vld [vmem:[%s2149_s1 + $0x180] sm:$0xff]   ;;  %v1656_v42 = vld [vmem:[%s2149_s1 + $0x1c8] sm:$0xff]   ;;  %v1659_v45 = vld [vmem:[%s2149_s1 + $0x110] sm:$0xff]  }
  0x10   :  { %1465 = vmatpush3.bf16.msra.mxu0 %v1626_v14  ;;  %v1657_v43 = vld [vmem:[%s2149_s1 + $0x188] sm:$0xff]   ;;  %v1660_v46 = vld [vmem:[%s2149_s1 + $0x1d0] sm:$0xff]   ;;  %v1662_v48 = vld [vmem:[%s2149_s1 + $0x158] sm:$0xff]  }
  0x11   :  { %1487 = vmatpush3.bf16.msra.mxu1 %v1627_v15  ;;  %1466 = vmatprep.subr.bf16.mxu0 %v1628_v16  ;;  %v1661_v47 = vld [vmem:[%s2149_s1 + $0x190] sm:$0xff]   ;;  %v1663_v49 = vld [vmem:[%s2149_s1 + $0x118] sm:$0xff]   ;;  %v1666_v52 = vld [vmem:[%s2149_s1 + $0x160] sm:$0xff]  }
  0x12   :  { %1488 = vmatprep.subr.bf16.mxu1 %v1629_v17  ;;  %v1664_v50 = vld [vmem:[%s2149_s1 + $0x1d8] sm:$0xff]   ;;  %v1667_v53 = vld [vmem:[%s2149_s1 + $0x120] sm:$0xff]   ;;  %v1670_v56 = vld [vmem:[%s2149_s1 + $0x168] sm:$0xff]  }
  0x13   :  { %v1665_v51 = vld [vmem:[%s2149_s1 + $0x198] sm:$0xff]   ;;  %v1668_v54 = vld [vmem:[%s2149_s1 + $0x1e0] sm:$0xff]   ;;  %v1671_v57 = vld [vmem:[%s2149_s1 + $0x128] sm:$0xff]  }
  0x14   :  { %1467 = vmatpush3.bf16.msra.mxu0 %v1630_v18  ;;  %v1669_v55 = vld [vmem:[%s2149_s1 + $0x1a0] sm:$0xff]   ;;  %v1672_v58 = vld [vmem:[%s2149_s1 + $0x1e8] sm:$0xff]   ;;  %v1674_v60 = vld [vmem:[%s2149_s1 + $0x170] sm:$0xff]  }
  0x15   :  { %1489 = vmatpush3.bf16.msra.mxu1 %v1631_v19  ;;  %1468 = vmatprep.subr.bf16.mxu0 %v1632_v20  ;;  %v1673_v59 = vld [vmem:[%s2149_s1 + $0x1a8] sm:$0xff]   ;;  %v1675_v61 = vld [vmem:[%s2149_s1 + $0x130] sm:$0xff]   ;;  %v1678_v0 = vld [vmem:[%s2149_s1 + $0x178] sm:$0xff]  }
  0x16   :  { %1490 = vmatprep.subr.bf16.mxu1 %v1633_v21  ;;  %v1676_v62 = vld [vmem:[%s2149_s1 + $0x1f0] sm:$0xff]   ;;  %v1679_v1 = vld [vmem:[%s2149_s1 + $0x138] sm:$0xff]   ;;  %v1685_v6 = vld [vmem:[%s2149_s1 + $0x240] sm:$0xff]  }
  0x17   :  { %v1677_v63 = vld [vmem:[%s2149_s1 + $0x1b0] sm:$0xff]   ;;  %v1680_v2 = vld [vmem:[%s2149_s1 + $0x1f8] sm:$0xff]   ;;  %v1689_v9 = vld [vmem:[%s2149_s1 + $0x200] sm:$0xff]  }
  0x18   :  { %1469 = vmatpush3.bf16.msra.mxu0 %v1634_v22  ;;  %v1681_v3 = vld [vmem:[%s2150_s0 + $0x10] ss:$56 sps:$4 sm:$0xff]   ;;  %v1683_v4 = vld [vmem:[%s2150_s0 + $0x14] ss:$56 sps:$4 sm:$0xff]   ;;  %v1684_v5 = vld [vmem:[%s2149_s1 + $0x1b8] sm:$0xff]  }
  0x19   :  { %1491 = vmatpush3.bf16.msra.mxu1 %v1635_v23  ;;  %1470 = vmatprep.subr.bf16.mxu0 %v1636_v24  ;;  %v1686_v7 = vld [vmem:[%s2150_s0 + $0x18] ss:$56 sps:$4 sm:$0xff]   ;;  %v1688_v8 = vld [vmem:[%s2150_s0 + $0x1c] ss:$56 sps:$4 sm:$0xff]   ;;  %v1690_v10 = vld [vmem:[%s2149_s1 + $0x2c0] sm:$0xff]  }
  0x1a   :  { %1492 = vmatprep.subr.bf16.mxu1 %v1637_v25  ;;  %v1691_v11 = vld [vmem:[%s2149_s1 + $0x280] sm:$0xff]   ;;  %v1692_v12 = vld [vmem:[%s2149_s1 + $0x248] sm:$0xff]   ;;  %v1696_v16 = vld [vmem:[%s2149_s1 + $0x250] sm:$0xff]  }
  0x1b   :  { %v1693_v13 = vld [vmem:[%s2149_s1 + $0x208] sm:$0xff]   ;;  %v1697_v17 = vld [vmem:[%s2149_s1 + $0x210] sm:$0xff]   ;;  %v1700_v20 = vld [vmem:[%s2149_s1 + $0x258] sm:$0xff]  }
  0x1c   :  { %1471 = vmatpush3.bf16.msra.mxu0 %v1638_v26  ;;  %v1694_v14 = vld [vmem:[%s2149_s1 + $0x2c8] sm:$0xff]   ;;  %v1698_v18 = vld [vmem:[%s2149_s1 + $0x2d0] sm:$0xff]   ;;  %v1701_v21 = vld [vmem:[%s2149_s1 + $0x218] sm:$0xff]  }
  0x1d   :  { %1493 = vmatpush3.bf16.msra.mxu1 %v1639_v27  ;;  %1472 = vmatprep.subr.bf16.mxu0 %v1640_v28  ;;  %v1695_v15 = vld [vmem:[%s2149_s1 + $0x288] sm:$0xff]   ;;  %v1699_v19 = vld [vmem:[%s2149_s1 + $0x290] sm:$0xff]   ;;  %v1702_v22 = vld [vmem:[%s2149_s1 + $0x2d8] sm:$0xff]  }
  0x1e   :  { %1494 = vmatprep.subr.bf16.mxu1 %v1641_v29  ;;  %v1703_v23 = vld [vmem:[%s2149_s1 + $0x298] sm:$0xff]   ;;  %v1704_v24 = vld [vmem:[%s2149_s1 + $0x260] sm:$0xff]   ;;  %v1708_v28 = vld [vmem:[%s2149_s1 + $0x268] sm:$0xff]  }
  0x1f   :  { %v1705_v25 = vld [vmem:[%s2149_s1 + $0x220] sm:$0xff]   ;;  %v1709_v29 = vld [vmem:[%s2149_s1 + $0x228] sm:$0xff]   ;;  %v1713_v33 = vld [vmem:[%s2149_s1 + $0x230] sm:$0xff]  }
  0x20   :  { %1473 = vmatpush3.bf16.msra.mxu0 %v1642_v30  ;;  %v1706_v26 = vld [vmem:[%s2149_s1 + $0x2e0] sm:$0xff]   ;;  %v1710_v30 = vld [vmem:[%s2149_s1 + $0x2e8] sm:$0xff]   ;;  %v1715_v35 = vld [vmem:[%s2149_s1 + $0x2b0] sm:$0xff]  }
  0x21   :  { %1495 = vmatpush3.bf16.msra.mxu1 %v1643_v31  ;;  %1502 = vmatprep.subr.bf16.mxu0 %v1650_v36  ;;  %v1707_v27 = vld [vmem:[%s2149_s1 + $0x2a0] sm:$0xff]   ;;  %v1711_v31 = vld [vmem:[%s2149_s1 + $0x2a8] sm:$0xff]   ;;  %v1716_v36 = vld [vmem:[%s2149_s1 + $0x278] sm:$0xff]  }
  0x22   :  { %1524 = vmatprep.subr.bf16.mxu1 %v1652_v38  ;;  %v1718_v38 = vld [vmem:[%s2149_s1 + $0x2f8] sm:$0xff]  }
  0x23   :  { %1036 = vmatmul.mubr.bf16.vlgmr.msra.gmra.mrb[0].mxu0 %v1644_v32  ;;  %v1712_v32 = vld [vmem:[%s2149_s1 + $0x270] sm:$0xff]  }
  0x24   :  { %1077 = vmatmul.mubr.bf16.vlgmr.msra.gmra.mrb[0].mxu1 %v1647_v34  ;;  %1503 = vmatpush3.bf16.msra.mxu0 %v1651_v37  ;;  %v1714_v34 = vld [vmem:[%s2149_s1 + $0x2f0] sm:$0xff]   ;;  %v1717_v37 = vld [vmem:[%s2149_s1 + $0x238] sm:$0xff]  }
  0x25   :  { %1525 = vmatpush3.bf16.msra.mxu1 %v1653_v39  ;;  %1504 = vmatprep.subr.bf16.mxu0 %v1654_v40  ;;  %v1719_v39 = vld [vmem:[%s2150_s0 + $0x20] ss:$56 sps:$4 sm:$0xff]   ;;  %v1721_v40 = vld [vmem:[%s2150_s0 + $0x24] ss:$56 sps:$4 sm:$0xff]  }
  0x26   :  { %1526 = vmatprep.subr.bf16.mxu1 %v1656_v42  ;;  %1117 = vmatprep.mubr.bf16.mxu0 %v1683_v4  ;;  %v1723_v42 = vld [vmem:[%s2149_s1 + $0x340] sm:$0xff]  }
  0x27   :  { %1158 = vmatprep.mubr.bf16.mxu1 %v1688_v8 }
  0x28   :  { %1505 = vmatpush3.bf16.msra.mxu0 %v1655_v41  ;;  %v1722_v41 = vld [vmem:[%s2149_s1 + $0x2b8] sm:$0xff]  }
  0x29   :  { %1527 = vmatpush3.bf16.msra.mxu1 %v1657_v43  ;;  %1506 = vmatprep.subr.bf16.mxu0 %v1658_v44  ;;  %v1724_v43 = vld [vmem:[%s2150_s0 + $0x28] ss:$56 sps:$4 sm:$0xff]   ;;  %v1726_v44 = vld [vmem:[%s2150_s0 + $0x2c] ss:$56 sps:$4 sm:$0xff]  }
  0x2a   :  { %1528 = vmatprep.subr.bf16.mxu1 %v1660_v46  ;;  %v1728_v46 = vld [vmem:[%s2149_s1 + $0x348] sm:$0xff]  }
  0x2c   :  { %1507 = vmatpush3.bf16.msra.mxu0 %v1659_v45  ;;  %v1727_v45 = vld [vmem:[%s2149_s1 + $0x300] sm:$0xff]  }
  0x2d   :  { %1529 = vmatpush3.bf16.msra.mxu1 %v1661_v47  ;;  %1508 = vmatprep.subr.bf16.mxu0 %v1662_v48  ;;  %v1729_v47 = vld [vmem:[%s2149_s1 + $0x308] sm:$0xff]   ;;  %v1730_v48 = vld [vmem:[%s2149_s1 + $0x350] sm:$0xff]  }
  0x2e   :  { %1530 = vmatprep.subr.bf16.mxu1 %v1664_v50  ;;  %v1732_v50 = vld [vmem:[%s2149_s1 + $0x358] sm:$0xff]  }
  0x30   :  { %1509 = vmatpush3.bf16.msra.mxu0 %v1663_v49  ;;  %v1731_v49 = vld [vmem:[%s2149_s1 + $0x310] sm:$0xff]  }
  0x31   :  { %1531 = vmatpush3.bf16.msra.mxu1 %v1665_v51  ;;  %1510 = vmatprep.subr.bf16.mxu0 %v1666_v52  ;;  %v1733_v51 = vld [vmem:[%s2149_s1 + $0x318] sm:$0xff]   ;;  %v1734_v52 = vld [vmem:[%s2149_s1 + $0x360] sm:$0xff]  }
  0x32   :  { %1532 = vmatprep.subr.bf16.mxu1 %v1668_v54  ;;  %v1736_v54 = vld [vmem:[%s2149_s1 + $0x368] sm:$0xff]  }
  0x34   :  { %1511 = vmatpush3.bf16.msra.mxu0 %v1667_v53  ;;  %v1735_v53 = vld [vmem:[%s2149_s1 + $0x320] sm:$0xff]  }
  0x35   :  { %1533 = vmatpush3.bf16.msra.mxu1 %v1669_v55  ;;  %1512 = vmatprep.subr.bf16.mxu0 %v1670_v56  ;;  %v1744_v55 = vld [vmem:[%s2150_s0 + $0x34] ss:$56 sps:$4 sm:$0xff]  }
  0x36   :  { %1534 = vmatprep.subr.bf16.mxu1 %v1672_v58  ;;  %v1737_v56 = vld [vmem:[%s2149_s1 + $0x328] sm:$0xff]   ;;  %v1739_v58 = vld [vmem:[%s2149_s1 + $0x330] sm:$0xff]  }
  0x38   :  { %1513 = vmatpush3.bf16.msra.mxu0 %v1671_v57  ;;  %v1738_v57 = vld [vmem:[%s2149_s1 + $0x370] sm:$0xff]  }
  0x39   :  { %1535 = vmatpush3.bf16.msra.mxu1 %v1673_v59  ;;  %1514 = vmatprep.subr.bf16.mxu0 %v1674_v60  ;;  %v1740_v59 = vld [vmem:[%s2149_s1 + $0x378] sm:$0xff]  }
  0x3a   :  { %1536 = vmatprep.subr.bf16.mxu1 %v1676_v62  ;;  %v1741_v60 = vld [vmem:[%s2149_s1 + $0x338] sm:$0xff]  }
  0x3c   :  { %1515 = vmatpush3.bf16.msra.mxu0 %v1675_v61  ;;  %v1742_v61 = vld [vmem:[%s2150_s0 + $0x30] ss:$56 sps:$4 sm:$0xff]  }
  0x3d   :  { %1537 = vmatpush3.bf16.msra.mxu1 %v1677_v63  ;;  %1516 = vmatprep.subr.bf16.mxu0 %v1678_v0 }
  0x3e   :  { %1538 = vmatprep.subr.bf16.mxu1 %v1680_v2 }
  0x40   :  { %1517 = vmatpush3.bf16.msra.mxu0 %v1679_v1 }
  0x41   :  { %1539 = vmatpush3.bf16.msra.mxu1 %v1684_v5  ;;  %1546 = vmatprep.subr.bf16.mxu0 %v1685_v6 }
  0x42   :  { %1568 = vmatprep.subr.bf16.mxu1 %v1690_v10 }
  0x43   :  { %1118 = vmatmul.mubr.bf16.vlgmr.msra.gmra.mrb[4].mxu0 %v1681_v3 }
  0x44   :  { %1547 = vmatpush3.bf16.msra.mxu0 %v1689_v9  ;;  %1159 = vmatmul.mubr.bf16.vlgmr.msra.gmra.mrb[4].mxu1 %v1686_v7 }
  0x45   :  { %1569 = vmatpush3.bf16.msra.mxu1 %v1691_v11  ;;  %1548 = vmatprep.subr.bf16.mxu0 %v1692_v12 }
  0x46   :  { %1570 = vmatprep.subr.bf16.mxu1 %v1694_v14  ;;  %1199 = vmatprep.mubr.bf16.mxu0 %v1721_v40 }
  0x47   :  { %1240 = vmatprep.mubr.bf16.mxu1 %v1726_v44 }
  0x48   :  { %1549 = vmatpush3.bf16.msra.mxu0 %v1693_v13 }
  0x49   :  { %1571 = vmatpush3.bf16.msra.mxu1 %v1695_v15  ;;  %1550 = vmatprep.subr.bf16.mxu0 %v1696_v16 }
  0x4a   :  { %1572 = vmatprep.subr.bf16.mxu1 %v1698_v18 }
  0x4c   :  { %1551 = vmatpush3.bf16.msra.mxu0 %v1697_v17 }
  0x4d   :  { %1573 = vmatpush3.bf16.msra.mxu1 %v1699_v19  ;;  %1552 = vmatprep.subr.bf16.mxu0 %v1700_v20 }
  0x4e   :  { %1574 = vmatprep.subr.bf16.mxu1 %v1702_v22 }
  0x50   :  { %1553 = vmatpush3.bf16.msra.mxu0 %v1701_v21 }
  0x51   :  { %1575 = vmatpush3.bf16.msra.mxu1 %v1703_v23  ;;  %1554 = vmatprep.subr.bf16.mxu0 %v1704_v24 }
  0x52   :  { %1576 = vmatprep.subr.bf16.mxu1 %v1706_v26 }
  0x54   :  { %1555 = vmatpush3.bf16.msra.mxu0 %v1705_v25 }
  0x55   :  { %1577 = vmatpush3.bf16.msra.mxu1 %v1707_v27  ;;  %1556 = vmatprep.subr.bf16.mxu0 %v1708_v28 }
  0x56   :  { %1578 = vmatprep.subr.bf16.mxu1 %v1710_v30 }
  0x58   :  { %1557 = vmatpush3.bf16.msra.mxu0 %v1709_v29 }
  0x59   :  { %1579 = vmatpush3.bf16.msra.mxu1 %v1711_v31  ;;  %1558 = vmatprep.subr.bf16.mxu0 %v1712_v32 }
  0x5a   :  { %1580 = vmatprep.subr.bf16.mxu1 %v1714_v34 }
  0x5c   :  { %1559 = vmatpush3.bf16.msra.mxu0 %v1713_v33 }
  0x5d   :  { %1581 = vmatpush3.bf16.msra.mxu1 %v1715_v35  ;;  %1560 = vmatprep.subr.bf16.mxu0 %v1716_v36 }
  0x5e   :  { %1582 = vmatprep.subr.bf16.mxu1 %v1718_v38 }
  0x60   :  { %1561 = vmatpush3.bf16.msra.mxu0 %v1717_v37 }
  0x61   :  { %1583 = vmatpush3.bf16.msra.mxu1 %v1722_v41  ;;  %1590 = vmatprep.subr.bf16.mxu0 %v1723_v42 }
  0x63   :  { %1200 = vmatmul.mubr.bf16.vlgmr.msra.gmra.mrb[8].mxu0 %v1719_v39 }
  0x64   :  { %1591 = vmatpush3.bf16.msra.mxu0 %v1727_v45  ;;  %1241 = vmatmul.mubr.bf16.vlgmr.msra.gmra.mrb[8].mxu1 %v1724_v43 }
  0x65   :  { %1592 = vmatprep.subr.bf16.mxu0 %v1728_v46  ;;  %1281 = vmatprep.mubr.bf16.mxu0 %v1744_v55 }
  0x68   :  { %1593 = vmatpush3.bf16.msra.mxu0 %v1729_v47 }
  0x69   :  { %1594 = vmatprep.subr.bf16.mxu0 %v1730_v48 }
  0x6c   :  { %1595 = vmatpush3.bf16.msra.mxu0 %v1731_v49 }
  0x6d   :  { %1596 = vmatprep.subr.bf16.mxu0 %v1732_v50 }
  0x70   :  { %1597 = vmatpush3.bf16.msra.mxu0 %v1733_v51  ;;  %v1448_v51 = vld [vmem:[%s2151_s2] ss:$0 sm:$0xff] }
  0x71   :  { %1598 = vmatprep.subr.bf16.mxu0 %v1734_v52 }
  0x74   :  { %1599 = vmatpush3.bf16.msra.mxu0 %v1735_v53 }
  0x75   :  { %1600 = vmatprep.subr.bf16.mxu0 %v1736_v54 }
  0x78   :  { %1601 = vmatpush3.bf16.msra.mxu0 %v1737_v56 }
  0x79   :  { %1602 = vmatprep.subr.bf16.mxu0 %v1738_v57 }
  0x7c   :  { %1603 = vmatpush3.bf16.msra.mxu0 %v1739_v58 }
  0x7d   :  { %1604 = vmatprep.subr.bf16.mxu0 %v1740_v59 }
  0x80   :  { %1605 = vmatpush3.bf16.msra.mxu0 %v1741_v60 }
  0x83   :  { %1282 = vmatmul.mubr.bf16.vlgmr.msra.gmra.mrb[12].mxu0 %v1742_v61 }
  0xf6   :  { %v1474_v62 = vpop.f32.mrb[0].mxu0 }
  0xf7   :  { %v1496_v63 = vpop.f32.mrb[0].mxu1  ;;  %v1475_v0 = vpop.f32.mrb[1].mxu0 }
  0xf8   :  { %v1476_v1 = vadd.f32 %v1475_v0, %v1474_v62  ;;  %v1497_v2 = vpop.f32.mrb[1].mxu1  ;;  %v1477_v3 = vpop.f32.mrb[2].mxu0 }
  0xf9   :  { %v1498_v4 = vadd.f32 %v1497_v2, %v1496_v63  ;;  %v1499_v5 = vpop.f32.mrb[2].mxu1  ;;  %v1478_v6 = vpop.f32.mrb[3].mxu0 }
  0xfa   :  { %v1479_v7 = vadd.f32 %v1478_v6, %v1477_v3  ;;  %v1500_v8 = vpop.f32.mrb[3].mxu1 }
  0xfb   :  { %v1079_v9 = vadd.f32 %v1498_v4, %v1476_v1  ;;  %v1501_v10 = vadd.f32 %v1500_v8, %v1499_v5 }
  0xfd   :  { %v1082_v11 = vadd.f32 %v1501_v10, %v1479_v7 }
 0x116   :  { %v1518_v12 = vpop.f32.mrb[4].mxu0 }
 0x117   :  { %v1519_v13 = vpop.f32.mrb[5].mxu0  ;;  %v1540_v18 = vpop.f32.mrb[4].mxu1 }
 0x118   :  { %v1520_v14 = vadd.f32 %v1519_v13, %v1518_v12  ;;  %v1521_v15 = vpop.f32.mrb[6].mxu0  ;;  %v1541_v20 = vpop.f32.mrb[5].mxu1 }
 0x119   :  { %v1522_v16 = vpop.f32.mrb[7].mxu0  ;;  %v1542_v22 = vadd.f32 %v1541_v20, %v1540_v18  ;;  %v1543_v23 = vpop.f32.mrb[6].mxu1 }
 0x11a   :  { %v1120_v17 = vadd.f32 %v1520_v14, %v1079_v9  ;;  %v1523_v19 = vadd.f32 %v1522_v16, %v1521_v15  ;;  %v1544_v24 = vpop.f32.mrb[7].mxu1 }
 0x11b   :  { %v1545_v26 = vadd.f32 %v1544_v24, %v1543_v23 }
 0x11c   :  { %v1123_v21 = vadd.f32 %v1523_v19, %v1082_v11  ;;  %v1161_v25 = vadd.f32 %v1542_v22, %v1120_v17 }
 0x11e   :  { %v1164_v27 = vadd.f32 %v1545_v26, %v1123_v21 }
 0x136   :  { %v1562_v28 = vpop.f32.mrb[8].mxu0 }
 0x137   :  { %v1563_v29 = vpop.f32.mrb[9].mxu0  ;;  %v1584_v32 = vpop.f32.mrb[8].mxu1 }
 0x138   :  { %v1564_v30 = vadd.f32 %v1563_v29, %v1562_v28  ;;  %v1565_v31 = vpop.f32.mrb[10].mxu0  ;;  %v1585_v36 = vpop.f32.mrb[9].mxu1 }
 0x139   :  { %v1566_v33 = vpop.f32.mrb[11].mxu0  ;;  %v1586_v37 = vadd.f32 %v1585_v36, %v1584_v32  ;;  %v1587_v38 = vpop.f32.mrb[10].mxu1 }
 0x13a   :  { %v1202_v34 = vadd.f32 %v1564_v30, %v1161_v25  ;;  %v1567_v35 = vadd.f32 %v1566_v33, %v1565_v31  ;;  %v1588_v40 = vpop.f32.mrb[11].mxu1 }
 0x13b   :  { %v1589_v42 = vadd.f32 %v1588_v40, %v1587_v38 }
 0x13c   :  { %v1205_v39 = vadd.f32 %v1567_v35, %v1164_v27  ;;  %v1243_v41 = vadd.f32 %v1586_v37, %v1202_v34 }
 0x13e   :  { %v1246_v43 = vadd.f32 %v1589_v42, %v1205_v39 }
 0x156   :  { %v1606_v44 = vpop.f32.mrb[12].mxu0 }
 0x157   :  { %v1607_v45 = vpop.f32.mrb[13].mxu0 }
 0x158   :  { %v1608_v46 = vadd.f32 %v1607_v45, %v1606_v44  ;;  %v1609_v47 = vpop.f32.mrb[14].mxu0 }
 0x159   :  { %v1610_v48 = vpop.f32.mrb[15].mxu0 }
 0x15a   :  { %v1284_v49 = vadd.f32 %v1608_v46, %v1243_v41  ;;  %v1611_v50 = vadd.f32 %v1610_v48, %v1609_v47 }
 0x15c   :  { %v1287_v52 = vadd.f32 %v1611_v50, %v1246_v43  ;;  %v1306_v53 = vadd.f32 %v1448_v51, %v1284_v49 }
 0x15e   :  { %v1307_v54 = vadd.f32 %v1448_v51, %v1287_v52 }
 0x160   :  { %v1456_v55 = vpack.c.bf16 %v1307_v54, %v1306_v53 }
 0x162   :  { %1457 = vst [vmem:[%s2152_s3] sm:$0xff] %v1456_v55  }

</bundles_post_ra>
